<compile_context>
chip_gen: v7x
topology: tpu7x:2x2x1
jax: 0.10.0
libtpu: 0.0.40
codegen_flags: <defaults>
</compile_context>

<pallas_src>
import functools
import numpy as np
import jax
import jax.numpy as jnp
from jax.experimental import pallas as pl
from jax.experimental.pallas import tpu as pltpu


# ----------------------------------------------------------------------------
# In-kernel helpers
# ----------------------------------------------------------------------------
def _edge_masks(shape):
    """Lane masks: (j > 0) and (j < L-1) for zero 'same' padding."""
    L = shape[-1]
    lane = jax.lax.broadcasted_iota(jnp.int32, shape, len(shape) - 1)
    return lane > 0, lane < (L - 1)


def _shifted_taps(a, not_first, not_last):
    """a: (R, L). Returns (a[j-1], a[j], a[j+1]) with zero fill at the edges."""
    L = a.shape[-1]
    am = jnp.where(not_first, pltpu.roll(a, 1, a.ndim - 1), 0.0)      # x[j-1]
    ap = jnp.where(not_last, pltpu.roll(a, L - 1, a.ndim - 1), 0.0)   # x[j+1]
    return am, a, ap


def _conv_body(a, w_stacked, not_first, not_last):
    """a: (C, L) activated input; w_stacked: (C_out, 3*C). One MXU matmul."""
    am, a0, ap = _shifted_taps(a, not_first, not_last)
    xs = jnp.concatenate([am, a0, ap], axis=0)                        # (3C, L)
    return jnp.dot(w_stacked, xs, preferred_element_type=jnp.float32)


def _bn_scale_shift(sin_ref, qin_ref, g_ref, b_ref, count, eps):
    """Reduce partial per-channel stats -> per-channel affine (scale, shift)."""
    tot = jnp.sum(sin_ref[...], axis=0)                               # (C, 1)
    tot2 = jnp.sum(qin_ref[...], axis=0)                              # (C, 1)
    mean = tot * (1.0 / count)
    var = tot2 * (1.0 / count) - mean * mean                          # biased var
    inv = jax.lax.rsqrt(var + eps)
    scale = inv * g_ref[...].astype(jnp.float32)
    shift = b_ref[...].astype(jnp.float32) - mean * scale
    return scale, shift


# ----------------------------------------------------------------------------
# Pallas kernels
# ----------------------------------------------------------------------------
def _first_conv_kernel(x_ref, w_ref, out_ref, *, apply_relu):
    # x_ref: (Nb, 1, L); w_ref: (C_out, 3); out_ref: (Nb, C_out, L)
    nb = x_ref.shape[0]
    L = x_ref.shape[-1]
    w = w_ref[...].astype(jnp.float32)
    wm, w0, wp = w[:, 0:1], w[:, 1:2], w[:, 2:3]                      # (C_out, 1)
    not_first, not_last = _edge_masks((1, L))
    for n in range(nb):
        x = x_ref[n].astype(jnp.float32)                              # (1, L)
        xm, x0, xp = _shifted_taps(x, not_first, not_last)
        acc = wm * xm + w0 * x0 + wp * xp                             # VPU, (C_out, L)
        if apply_relu:
            acc = jnp.maximum(acc, 0.0)
        out_ref[n] = acc.astype(out_ref.dtype)


def _hidden_conv_kernel(a_ref, w_ref, z_ref, psum_ref, psq_ref):
    # a_ref: (Nb, C, L) already-activated input; w_ref: (C, 3C)
    # z_ref: (Nb, C, L) pre-BN conv output; psum/psq: (1, C, 1) partial stats
    nb, C, L = a_ref.shape
    not_first, not_last = _edge_masks((C, L))
    w = w_ref[...].astype(jnp.float32)
    s = jnp.zeros((C, 1), jnp.float32)
    q = jnp.zeros((C, 1), jnp.float32)
    for n in range(nb):
        a = a_ref[n].astype(jnp.float32)
        z = _conv_body(a, w, not_first, not_last)
        z_ref[n] = z.astype(z_ref.dtype)
        s = s + jnp.sum(z, axis=1, keepdims=True)
        q = q + jnp.sum(z * z, axis=1, keepdims=True)
    psum_ref[0] = s
    psq_ref[0] = q


def _bn_relu_conv_kernel(z_ref, sin_ref, qin_ref, g_ref, b_ref, w_ref,
                         zo_ref, psum_ref, psq_ref, *, count, eps, apply_bn):
    # Prologue: BN(+gamma/beta)+ReLU of previous layer; then hidden conv + stats.
    nb, C, L = z_ref.shape
    not_first, not_last = _edge_masks((C, L))
    w = w_ref[...].astype(jnp.float32)
    if apply_bn:
        scale, shift = _bn_scale_shift(sin_ref, qin_ref, g_ref, b_ref, count, eps)
    s = jnp.zeros((C, 1), jnp.float32)
    q = jnp.zeros((C, 1), jnp.float32)
    for n in range(nb):
        z = z_ref[n].astype(jnp.float32)
        if apply_bn:
            a = jnp.maximum(z * scale + shift, 0.0)
        else:
            a = jnp.maximum(z, 0.0)
        zo = _conv_body(a, w, not_first, not_last)
        zo_ref[n] = zo.astype(zo_ref.dtype)
        s = s + jnp.sum(zo, axis=1, keepdims=True)
        q = q + jnp.sum(zo * zo, axis=1, keepdims=True)
    psum_ref[0] = s
    psq_ref[0] = q


def _bn_relu_last_conv_kernel(z_ref, sin_ref, qin_ref, g_ref, b_ref, w_ref,
                              out_ref, *, count, eps, apply_bn):
    # BN+ReLU prologue, then C_out=1 conv via VPU FMA + sublane reduction.
    nb, C, L = z_ref.shape
    not_first, not_last = _edge_masks((C, L))
    w = w_ref[...].astype(jnp.float32)                                # (C, 3)
    wm, w0, wp = w[:, 0:1], w[:, 1:2], w[:, 2:3]
    if apply_bn:
        scale, shift = _bn_scale_shift(sin_ref, qin_ref, g_ref, b_ref, count, eps)
    for n in range(nb):
        z = z_ref[n].astype(jnp.float32)
        if apply_bn:
            a = jnp.maximum(z * scale + shift, 0.0)
        else:
            a = jnp.maximum(z, 0.0)
        am, a0, ap = _shifted_taps(a, not_first, not_last)
        t = wm * am + w0 * a0 + wp * ap                               # (C, L)
        out_ref[n] = jnp.sum(t, axis=0, keepdims=True).astype(out_ref.dtype)


def _bn_apply_relu_kernel(z_ref, sin_ref, qin_ref, g_ref, b_ref, out_ref,
                          *, count, eps, apply_bn):
    # Standalone BN+ReLU (only used for out_idx early returns).
    nb = z_ref.shape[0]
    if apply_bn:
        scale, shift = _bn_scale_shift(sin_ref, qin_ref, g_ref, b_ref, count, eps)
    for n in range(nb):
        z = z_ref[n].astype(jnp.float32)
        if apply_bn:
            a = z * scale + shift
        else:
            a = z
        out_ref[n] = jnp.maximum(a, 0.0).astype(out_ref.dtype)


# ----------------------------------------------------------------------------
# pallas_call wrappers
# ----------------------------------------------------------------------------
_PAR = pltpu.CompilerParams(dimension_semantics=("parallel",))


def _pick_block_n(N, C, L, budget_bytes=4 << 20):
    per_sample = C * L * 4
    nb = 1
    for d in range(1, N + 1):
        if N % d == 0 and d * per_sample <= budget_bytes:
            nb = d
    return nb


def first_conv(x, w_first3, *, apply_relu, block_n):
    N, Ci, L = x.shape
    assert Ci == 1, "first layer specialized for image_channels == 1"
    C_out = w_first3.shape[0]
    nb = block_n
    kernel = functools.partial(_first_conv_kernel, apply_relu=apply_relu)
    return pl.pallas_call(
        kernel,
        out_shape=jax.ShapeDtypeStruct((N, C_out, L), x.dtype),
        grid=(N // nb,),
        in_specs=[pl.BlockSpec((nb, 1, L), lambda g: (g, 0, 0)),
                  pl.BlockSpec((C_out, 3), lambda g: (0, 0))],
        out_specs=pl.BlockSpec((nb, C_out, L), lambda g: (g, 0, 0)),
        compiler_params=_PAR,
    )(x, w_first3)


def hidden_conv_stats(a, w_stk, *, block_n):
    N, C, L = a.shape
    nb = block_n
    G = N // nb
    return pl.pallas_call(
        _hidden_conv_kernel,
        out_shape=(jax.ShapeDtypeStruct((N, C, L), a.dtype),
                   jax.ShapeDtypeStruct((G, C, 1), jnp.float32),
                   jax.ShapeDtypeStruct((G, C, 1), jnp.float32)),
        grid=(G,),
        in_specs=[pl.BlockSpec((nb, C, L), lambda g: (g, 0, 0)),
                  pl.BlockSpec((C, 3 * C), lambda g: (0, 0))],
        out_specs=(pl.BlockSpec((nb, C, L), lambda g: (g, 0, 0)),
                   pl.BlockSpec((1, C, 1), lambda g: (g, 0, 0)),
                   pl.BlockSpec((1, C, 1), lambda g: (g, 0, 0))),
        compiler_params=_PAR,
    )(a, w_stk)


def bn_relu_conv_stats(z, psum, psq, gamma, beta, w_stk, *,
                       count, eps, apply_bn, block_n):
    N, C, L = z.shape
    nb = block_n
    G = N // nb
    Gin = psum.shape[0]
    kernel = functools.partial(_bn_relu_conv_kernel, count=count, eps=eps,
                               apply_bn=apply_bn)
    return pl.pallas_call(
        kernel,
        out_shape=(jax.ShapeDtypeStruct((N, C, L), z.dtype),
                   jax.ShapeDtypeStruct((G, C, 1), jnp.float32),
                   jax.ShapeDtypeStruct((G, C, 1), jnp.float32)),
        grid=(G,),
        in_specs=[pl.BlockSpec((nb, C, L), lambda g: (g, 0, 0)),
                  pl.BlockSpec((Gin, C, 1), lambda g: (0, 0, 0)),
                  pl.BlockSpec((Gin, C, 1), lambda g: (0, 0, 0)),
                  pl.BlockSpec((C, 1), lambda g: (0, 0)),
                  pl.BlockSpec((C, 1), lambda g: (0, 0)),
                  pl.BlockSpec((C, 3 * C), lambda g: (0, 0))],
        out_specs=(pl.BlockSpec((nb, C, L), lambda g: (g, 0, 0)),
                   pl.BlockSpec((1, C, 1), lambda g: (g, 0, 0)),
                   pl.BlockSpec((1, C, 1), lambda g: (g, 0, 0))),
        compiler_params=_PAR,
    )(z, psum, psq, gamma, beta, w_stk)


def bn_relu_last_conv(z, psum, psq, gamma, beta, w_last3, *,
                      count, eps, apply_bn, block_n):
    N, C, L = z.shape
    nb = block_n
    G = N // nb
    Gin = psum.shape[0]
    kernel = functools.partial(_bn_relu_last_conv_kernel, count=count, eps=eps,
                               apply_bn=apply_bn)
    return pl.pallas_call(
        kernel,
        out_shape=jax.ShapeDtypeStruct((N, 1, L), z.dtype),
        grid=(G,),
        in_specs=[pl.BlockSpec((nb, C, L), lambda g: (g, 0, 0)),
                  pl.BlockSpec((Gin, C, 1), lambda g: (0, 0, 0)),
                  pl.BlockSpec((Gin, C, 1), lambda g: (0, 0, 0)),
                  pl.BlockSpec((C, 1), lambda g: (0, 0)),
                  pl.BlockSpec((C, 1), lambda g: (0, 0)),
                  pl.BlockSpec((C, 3), lambda g: (0, 0))],
        out_specs=pl.BlockSpec((nb, 1, L), lambda g: (g, 0, 0)),
        compiler_params=_PAR,
    )(z, psum, psq, gamma, beta, w_last3)


def bn_apply_relu(z, psum, psq, gamma, beta, *, count, eps, apply_bn, block_n):
    N, C, L = z.shape
    nb = block_n
    G = N // nb
    Gin = psum.shape[0]
    kernel = functools.partial(_bn_apply_relu_kernel, count=count, eps=eps,
                               apply_bn=apply_bn)
    return pl.pallas_call(
        kernel,
        out_shape=jax.ShapeDtypeStruct((N, C, L), z.dtype),
        grid=(G,),
        in_specs=[pl.BlockSpec((nb, C, L), lambda g: (g, 0, 0)),
                  pl.BlockSpec((Gin, C, 1), lambda g: (0, 0, 0)),
                  pl.BlockSpec((Gin, C, 1), lambda g: (0, 0, 0)),
                  pl.BlockSpec((C, 1), lambda g: (0, 0)),
                  pl.BlockSpec((C, 1), lambda g: (0, 0))],
        out_specs=pl.BlockSpec((nb, C, L), lambda g: (g, 0, 0)),
        compiler_params=_PAR,
    )(z, psum, psq, gamma, beta)


# ----------------------------------------------------------------------------
# Parameter init (deterministic, mirrors torch init.orthogonal_ / BN init)
# ----------------------------------------------------------------------------
def _orthogonal(key, shape):
    rows, cols = shape[0], int(np.prod(shape[1:]))
    flat = (rows, cols) if rows >= cols else (cols, rows)
    a = jax.random.normal(key, flat, jnp.float32)
    q, r = jnp.linalg.qr(a)
    q = q * jnp.sign(jnp.diag(r))
    if rows < cols:
        q = q.T
    return q[:rows, :cols].reshape(shape)


def init_params(key, depth, n_channels, image_channels):
    keys = jax.random.split(key, depth)
    return {
        "first": _orthogonal(keys[0], (n_channels, image_channels, 3)),
        "hidden": [_orthogonal(keys[1 + i], (n_channels, n_channels, 3))
                   for i in range(depth - 2)],
        "last": _orthogonal(keys[depth - 1], (image_channels, n_channels, 3)),
        "gamma": [jnp.ones((n_channels,), jnp.float32) for _ in range(depth - 2)],
        "beta": [jnp.zeros((n_channels,), jnp.float32) for _ in range(depth - 2)],
    }


# ----------------------------------------------------------------------------
# Forward (mirrors intermediate_out_DnCNN.forward, incl. out_idx)
# ----------------------------------------------------------------------------
def dncnn_forward(params, x, out_idx=-1, use_bnorm=True, eps=1e-4, block_n=None):
    N, Ci, L = x.shape
    assert Ci == 1 and params["last"].shape[0] == 1, \
        "kernels specialized for image_channels == 1 (module default)"
    C = params["first"].shape[0]
    nb = block_n if block_n is not None else _pick_block_n(N, C, L)
    assert N % nb == 0
    count = N * L

    # Kernel-friendly weight layouts (tiny, traced once / const-folded under jit).
    w_first3 = params["first"].reshape(C, 3)                          # (C, 3)
    w_hidden = [jnp.transpose(w, (0, 2, 1)).reshape(C, 3 * C)         # (C, 3C)
                for w in params["hidden"]]
    w_last3 = params["last"][0]                                       # (C, 3)
    gammas = [g.reshape(C, 1) for g in params["gamma"]]
    betas = [b.reshape(C, 1) for b in params["beta"]]

    if out_idx == 1:
        return first_conv(x, w_first3, apply_relu=False, block_n=nb)
    a = first_conv(x, w_first3, apply_relu=True, block_n=nb)
    if out_idx == 2:
        return a

    n_hidden = len(params["hidden"])
    # First hidden conv (input already activated) + partial BN stats.
    z, ps, pq = hidden_conv_stats(a, w_hidden[0], block_n=nb)
    if out_idx == 3:
        return z
    if out_idx == 4:
        return bn_apply_relu(z, ps, pq, gammas[0], betas[0], count=count,
                             eps=eps, apply_bn=use_bnorm, block_n=nb)
    # Remaining hidden layers: fused BN+ReLU (of previous) + conv + stats.
    for i in range(1, n_hidden):
        z, ps, pq = bn_relu_conv_stats(z, ps, pq, gammas[i - 1], betas[i - 1],
                                       w_hidden[i], count=count, eps=eps,
                                       apply_bn=use_bnorm, block_n=nb)
        if out_idx == 2 + 2 * i + 1:
            return z
        if out_idx == 2 + 2 * i + 2:
            return bn_apply_relu(z, ps, pq, gammas[i], betas[i], count=count,
                                 eps=eps, apply_bn=use_bnorm, block_n=nb)
    # Final: fused BN+ReLU (of last hidden) + last conv (C_out = 1).
    return bn_relu_last_conv(z, ps, pq, gammas[n_hidden - 1], betas[n_hidden - 1],
                             w_last3, count=count, eps=eps,
                             apply_bn=use_bnorm, block_n=nb)


# ----------------------------------------------------------------------------
# Pure-JAX reference (for correctness check)
# ----------------------------------------------------------------------------
def _conv_ref(x, w):
    return jax.lax.conv_general_dilated(
        x, w, window_strides=(1,), padding=((1, 1),),
        dimension_numbers=("NCH", "OIH", "NCH"))


def _bn_relu_ref(y, gamma, beta, eps=1e-4):
    mean = jnp.mean(y, axis=(0, 2), keepdims=True)
    var = jnp.mean((y - mean) ** 2, axis=(0, 2), keepdims=True)
    out = (y - mean) * jax.lax.rsqrt(var + eps)
    out = out * gamma.reshape(1, -1, 1) + beta.reshape(1, -1, 1)
    return jnp.maximum(out, 0.0)


def dncnn_forward_ref(params, x):
    out = jnp.maximum(_conv_ref(x, params["first"]), 0.0)
    for i, w in enumerate(params["hidden"]):
        out = _conv_ref(out, w)
        out = _bn_relu_ref(out, params["gamma"][i], params["beta"][i])
    return _conv_ref(out, params["last"])


# ----------------------------------------------------------------------------
if __name__ == "__main__":
    depth = 5            # small depth for the demo (module default is 20)
    n_channels = 64
    image_channels = 1
    N, L = 4, 256        # block_n=2 -> 2 batch blocks, exercises partial stats

    key = jax.random.PRNGKey(0)
    pkey, xkey = jax.random.split(key)
    params = init_params(pkey, depth, n_channels, image_channels)
    x = jax.random.normal(xkey, (N, image_channels, L), jnp.float32)

    fwd = jax.jit(functools.partial(dncnn_forward, block_n=2))
    out = jax.block_until_ready(fwd(params, x))          # full forward

    ref = jax.block_until_ready(dncnn_forward_ref(params, x))
    np.testing.assert_allclose(np.asarray(out), np.asarray(ref),
                               rtol=1e-3, atol=1e-3)
    assert out.shape == (N, image_channels, L)

    # Exercise the out_idx early-return kernels (compile/run smoke check).
    pre1 = jax.block_until_ready(dncnn_forward(params, x, out_idx=1, block_n=2))
    assert pre1.shape == (N, n_channels, L)
    mid4 = jax.block_until_ready(dncnn_forward(params, x, out_idx=4, block_n=2))
    assert mid4.shape == (N, n_channels, L)

    print("KERNEL_OK")
</pallas_src>

<mosaic_0001>
module attributes {stable_mosaic.version = 11 : i64} {
  func.func @_first_conv_kernel(%arg0: i32, %arg1: memref<2x1x256xf32, #tpu.memory_space<vmem>>, %arg2: memref<64x3xf32, #tpu.memory_space<vmem>>, %arg3: memref<2x64x256xf32, #tpu.memory_space<vmem>>) attributes {dimension_semantics = [#tpu.dimension_semantics<parallel>], iteration_bounds = array<i64: 2>, scalar_prefetch = 0 : i64, scratch_operands = 0 : i64, tpu.core_type = #tpu.core_type<tc>, window_params = [{transform_indices = @transform_0, window_bounds = array<i64: 2, 1, 256>}, {pipeline_mode = #tpu.pipeline_mode<synchronous>, transform_indices = @transform_1, window_bounds = array<i64: 64, 3>}, {transform_indices = @transform_2, window_bounds = array<i64: 2, 64, 256>}]} {
    %c0 = arith.constant 0 : index
    %c0_0 = arith.constant 0 : index
    %0 = vector.load %arg2[%c0, %c0_0] : memref<64x3xf32, #tpu.memory_space<vmem>>, vector<64x3xf32>
    %1 = vector.extract_strided_slice %0 {offsets = [0, 0], sizes = [64, 1], strides = [1, 1]} : vector<64x3xf32> to vector<64x1xf32>
    %2 = vector.extract_strided_slice %0 {offsets = [0, 1], sizes = [64, 1], strides = [1, 1]} : vector<64x3xf32> to vector<64x1xf32>
    %3 = vector.extract_strided_slice %0 {offsets = [0, 2], sizes = [64, 1], strides = [1, 1]} : vector<64x3xf32> to vector<64x1xf32>
    %4 = tpu.iota {dimensions = array<i32: 1>} : vector<1x256xi32>
    %c0_i32 = arith.constant 0 : i32
    %5 = vector.broadcast %c0_i32 : i32 to vector<1x256xi32>
    %6 = arith.cmpi sgt, %4, %5 : vector<1x256xi32>
    %c255_i32 = arith.constant 255 : i32
    %7 = vector.broadcast %c255_i32 : i32 to vector<1x256xi32>
    %8 = arith.cmpi slt, %4, %7 : vector<1x256xi32>
    %c0_1 = arith.constant 0 : index
    %c0_2 = arith.constant 0 : index
    %c0_3 = arith.constant 0 : index
    %9 = vector.load %arg1[%c0_1, %c0_2, %c0_3] : memref<2x1x256xf32, #tpu.memory_space<vmem>>, vector<1x1x256xf32>
    %10 = vector.shape_cast %9 : vector<1x1x256xf32> to vector<1x256xf32>
    %c1_i32 = arith.constant 1 : i32
    %11 = tpu.dynamic_rotate %10 by %c1_i32 dim 1 : vector<1x256xf32>, i32 -> vector<1x256xf32>
    %cst = arith.constant 0.000000e+00 : f32
    %12 = vector.broadcast %cst : f32 to vector<1x256xf32>
    %13 = arith.select %6, %11, %12 : vector<1x256xi1>, vector<1x256xf32>
    %c255_i32_4 = arith.constant 255 : i32
    %14 = tpu.dynamic_rotate %10 by %c255_i32_4 dim 1 : vector<1x256xf32>, i32 -> vector<1x256xf32>
    %cst_5 = arith.constant 0.000000e+00 : f32
    %15 = vector.broadcast %cst_5 : f32 to vector<1x256xf32>
    %16 = arith.select %8, %14, %15 : vector<1x256xi1>, vector<1x256xf32>
    %17 = vector.broadcast %1 : vector<64x1xf32> to vector<64x256xf32>
    %18 = vector.broadcast %13 : vector<1x256xf32> to vector<64x256xf32>
    %19 = arith.mulf %17, %18 : vector<64x256xf32>
    %20 = vector.broadcast %2 : vector<64x1xf32> to vector<64x256xf32>
    %21 = vector.broadcast %10 : vector<1x256xf32> to vector<64x256xf32>
    %22 = arith.mulf %20, %21 : vector<64x256xf32>
    %23 = arith.addf %19, %22 : vector<64x256xf32>
    %24 = vector.broadcast %3 : vector<64x1xf32> to vector<64x256xf32>
    %25 = vector.broadcast %16 : vector<1x256xf32> to vector<64x256xf32>
    %26 = arith.mulf %24, %25 : vector<64x256xf32>
    %27 = arith.addf %23, %26 : vector<64x256xf32>
    %cst_6 = arith.constant 0.000000e+00 : f32
    %28 = vector.broadcast %cst_6 : f32 to vector<64x256xf32>
    %29 = arith.maximumf %27, %28 : vector<64x256xf32>
    %c0_7 = arith.constant 0 : index
    %c0_8 = arith.constant 0 : index
    %c0_9 = arith.constant 0 : index
    %30 = vector.load %arg3[%c0_7, %c0_8, %c0_9] : memref<2x64x256xf32, #tpu.memory_space<vmem>>, vector<1x64x256xf32>
    %31 = vector.shape_cast %30 : vector<1x64x256xf32> to vector<64x256xf32>
    %32 = vector.shape_cast %29 : vector<64x256xf32> to vector<1x64x256xf32>
    tpu.vector_store %arg3[%c0_7, %c0_8, %c0_9], %32 {strides = array<i32>} : memref<2x64x256xf32, #tpu.memory_space<vmem>>, vector<1x64x256xf32>,
    %c1 = arith.constant 1 : index
    %c0_10 = arith.constant 0 : index
    %c0_11 = arith.constant 0 : index
    %33 = vector.load %arg1[%c1, %c0_10, %c0_11] : memref<2x1x256xf32, #tpu.memory_space<vmem>>, vector<1x1x256xf32>
    %34 = vector.shape_cast %33 : vector<1x1x256xf32> to vector<1x256xf32>
    %c1_i32_12 = arith.constant 1 : i32
    %35 = tpu.dynamic_rotate %34 by %c1_i32_12 dim 1 : vector<1x256xf32>, i32 -> vector<1x256xf32>
    %cst_13 = arith.constant 0.000000e+00 : f32
    %36 = vector.broadcast %cst_13 : f32 to vector<1x256xf32>
    %37 = arith.select %6, %35, %36 : vector<1x256xi1>, vector<1x256xf32>
    %c255_i32_14 = arith.constant 255 : i32
    %38 = tpu.dynamic_rotate %34 by %c255_i32_14 dim 1 : vector<1x256xf32>, i32 -> vector<1x256xf32>
    %cst_15 = arith.constant 0.000000e+00 : f32
    %39 = vector.broadcast %cst_15 : f32 to vector<1x256xf32>
    %40 = arith.select %8, %38, %39 : vector<1x256xi1>, vector<1x256xf32>
    %41 = vector.broadcast %1 : vector<64x1xf32> to vector<64x256xf32>
    %42 = vector.broadcast %37 : vector<1x256xf32> to vector<64x256xf32>
    %43 = arith.mulf %41, %42 : vector<64x256xf32>
    %44 = vector.broadcast %2 : vector<64x1xf32> to vector<64x256xf32>
    %45 = vector.broadcast %34 : vector<1x256xf32> to vector<64x256xf32>
    %46 = arith.mulf %44, %45 : vector<64x256xf32>
    %47 = arith.addf %43, %46 : vector<64x256xf32>
    %48 = vector.broadcast %3 : vector<64x1xf32> to vector<64x256xf32>
    %49 = vector.broadcast %40 : vector<1x256xf32> to vector<64x256xf32>
    %50 = arith.mulf %48, %49 : vector<64x256xf32>
    %51 = arith.addf %47, %50 : vector<64x256xf32>
    %cst_16 = arith.constant 0.000000e+00 : f32
    %52 = vector.broadcast %cst_16 : f32 to vector<64x256xf32>
    %53 = arith.maximumf %51, %52 : vector<64x256xf32>
    %c1_17 = arith.constant 1 : index
    %c0_18 = arith.constant 0 : index
    %c0_19 = arith.constant 0 : index
    %54 = vector.load %arg3[%c1_17, %c0_18, %c0_19] : memref<2x64x256xf32, #tpu.memory_space<vmem>>, vector<1x64x256xf32>
    %55 = vector.shape_cast %54 : vector<1x64x256xf32> to vector<64x256xf32>
    %56 = vector.shape_cast %53 : vector<64x256xf32> to vector<1x64x256xf32>
    tpu.vector_store %arg3[%c1_17, %c0_18, %c0_19], %56 {strides = array<i32>} : memref<2x64x256xf32, #tpu.memory_space<vmem>>, vector<1x64x256xf32>,
    return
  }
  func.func @transform_0(%arg0: i32) -> (i32, i32, i32) {
    %c0_i32 = arith.constant 0 : i32
    %c0_i32_0 = arith.constant 0 : i32
    %c0_i32_1 = arith.constant 0 : i32
    return %arg0, %c0_i32, %c0_i32_0 : i32, i32, i32
  }
  func.func @transform_1(%arg0: i32) -> (i32, i32) {
    %c0_i32 = arith.constant 0 : i32
    %c0_i32_0 = arith.constant 0 : i32
    %c0_i32_1 = arith.constant 0 : i32
    return %c0_i32, %c0_i32_0 : i32, i32
  }
  func.func @transform_2(%arg0: i32) -> (i32, i32, i32) {
    %c0_i32 = arith.constant 0 : i32
    %c0_i32_0 = arith.constant 0 : i32
    %c0_i32_1 = arith.constant 0 : i32
    return %arg0, %c0_i32, %c0_i32_0 : i32, i32, i32
  }
}

module attributes {stable_mosaic.version = 11 : i64} {
  func.func @_hidden_conv_kernel(%arg0: i32, %arg1: memref<2x64x256xf32, #tpu.memory_space<vmem>>, %arg2: memref<64x192xf32, #tpu.memory_space<vmem>>, %arg3: memref<2x64x256xf32, #tpu.memory_space<vmem>>, %arg4: memref<1x64x1xf32, #tpu.memory_space<vmem>>, %arg5: memref<1x64x1xf32, #tpu.memory_space<vmem>>) attributes {dimension_semantics = [#tpu.dimension_semantics<parallel>], iteration_bounds = array<i64: 2>, scalar_prefetch = 0 : i64, scratch_operands = 0 : i64, tpu.core_type = #tpu.core_type<tc>, window_params = [{transform_indices = @transform_0, window_bounds = array<i64: 2, 64, 256>}, {pipeline_mode = #tpu.pipeline_mode<synchronous>, transform_indices = @transform_1, window_bounds = array<i64: 64, 192>}, {transform_indices = @transform_2, window_bounds = array<i64: 2, 64, 256>}, {transform_indices = @transform_3, window_bounds = array<i64: 1, 64, 1>}, {transform_indices = @transform_4, window_bounds = array<i64: 1, 64, 1>}]} {
    %0 = tpu.iota {dimensions = array<i32: 1>} : vector<64x256xi32>
    %c0_i32 = arith.constant 0 : i32
    %1 = vector.broadcast %c0_i32 : i32 to vector<64x256xi32>
    %2 = arith.cmpi sgt, %0, %1 : vector<64x256xi32>
    %c255_i32 = arith.constant 255 : i32
    %3 = vector.broadcast %c255_i32 : i32 to vector<64x256xi32>
    %4 = arith.cmpi slt, %0, %3 : vector<64x256xi32>
    %c0 = arith.constant 0 : index
    %c0_0 = arith.constant 0 : index
    %5 = vector.load %arg2[%c0, %c0_0] : memref<64x192xf32, #tpu.memory_space<vmem>>, vector<64x192xf32>
    %cst = arith.constant 0.000000e+00 : f32
    %6 = vector.broadcast %cst : f32 to vector<64x1xf32>
    %cst_1 = arith.constant 0.000000e+00 : f32
    %7 = vector.broadcast %cst_1 : f32 to vector<64x1xf32>
    %c0_2 = arith.constant 0 : index
    %c0_3 = arith.constant 0 : index
    %c0_4 = arith.constant 0 : index
    %8 = vector.load %arg1[%c0_2, %c0_3, %c0_4] : memref<2x64x256xf32, #tpu.memory_space<vmem>>, vector<1x64x256xf32>
    %9 = vector.shape_cast %8 : vector<1x64x256xf32> to vector<64x256xf32>
    %c1_i32 = arith.constant 1 : i32
    %10 = tpu.dynamic_rotate %9 by %c1_i32 dim 1 : vector<64x256xf32>, i32 -> vector<64x256xf32>
    %cst_5 = arith.constant 0.000000e+00 : f32
    %11 = vector.broadcast %cst_5 : f32 to vector<64x256xf32>
    %12 = arith.select %2, %10, %11 : vector<64x256xi1>, vector<64x256xf32>
    %c255_i32_6 = arith.constant 255 : i32
    %13 = tpu.dynamic_rotate %9 by %c255_i32_6 dim 1 : vector<64x256xf32>, i32 -> vector<64x256xf32>
    %cst_7 = arith.constant 0.000000e+00 : f32
    %14 = vector.broadcast %cst_7 : f32 to vector<64x256xf32>
    %15 = arith.select %4, %13, %14 : vector<64x256xi1>, vector<64x256xf32>
    %16 = tpu.concatenate %12, %9, %15 in 0 : vector<64x256xf32>, vector<64x256xf32>, vector<64x256xf32> -> vector<192x256xf32>
    %cst_8 = arith.constant dense<0.000000e+00> : vector<64x256xf32>
    %17 = tpu.matmul %5, %16, %cst_8 {dimension_numbers = #tpu.dot_dimension_numbers<[1], [0], [0], [1], [0, 0, 1, 1], [], []>} : vector<64x192xf32>, vector<192x256xf32>, vector<64x256xf32> -> vector<64x256xf32>
    %c0_9 = arith.constant 0 : index
    %c0_10 = arith.constant 0 : index
    %c0_11 = arith.constant 0 : index
    %18 = vector.load %arg3[%c0_9, %c0_10, %c0_11] : memref<2x64x256xf32, #tpu.memory_space<vmem>>, vector<1x64x256xf32>
    %19 = vector.shape_cast %18 : vector<1x64x256xf32> to vector<64x256xf32>
    %20 = vector.shape_cast %17 : vector<64x256xf32> to vector<1x64x256xf32>
    tpu.vector_store %arg3[%c0_9, %c0_10, %c0_11], %20 {strides = array<i32>} : memref<2x64x256xf32, #tpu.memory_space<vmem>>, vector<1x64x256xf32>,
    %cst_12 = arith.constant dense<0.000000e+00> : vector<64xf32>
    %21 = vector.multi_reduction <add>, %17, %cst_12 [1] : vector<64x256xf32> to vector<64xf32>
    %22 = vector.shape_cast %21 : vector<64xf32> to vector<64x1xf32>
    %23 = arith.addf %6, %22 : vector<64x1xf32>
    %24 = arith.mulf %17, %17 : vector<64x256xf32>
    %cst_13 = arith.constant dense<0.000000e+00> : vector<64xf32>
    %25 = vector.multi_reduction <add>, %24, %cst_13 [1] : vector<64x256xf32> to vector<64xf32>
    %26 = vector.shape_cast %25 : vector<64xf32> to vector<64x1xf32>
    %27 = arith.addf %7, %26 : vector<64x1xf32>
    %c1 = arith.constant 1 : index
    %c0_14 = arith.constant 0 : index
    %c0_15 = arith.constant 0 : index
    %28 = vector.load %arg1[%c1, %c0_14, %c0_15] : memref<2x64x256xf32, #tpu.memory_space<vmem>>, vector<1x64x256xf32>
    %29 = vector.shape_cast %28 : vector<1x64x256xf32> to vector<64x256xf32>
    %c1_i32_16 = arith.constant 1 : i32
    %30 = tpu.dynamic_rotate %29 by %c1_i32_16 dim 1 : vector<64x256xf32>, i32 -> vector<64x256xf32>
    %cst_17 = arith.constant 0.000000e+00 : f32
    %31 = vector.broadcast %cst_17 : f32 to vector<64x256xf32>
    %32 = arith.select %2, %30, %31 : vector<64x256xi1>, vector<64x256xf32>
    %c255_i32_18 = arith.constant 255 : i32
    %33 = tpu.dynamic_rotate %29 by %c255_i32_18 dim 1 : vector<64x256xf32>, i32 -> vector<64x256xf32>
    %cst_19 = arith.constant 0.000000e+00 : f32
    %34 = vector.broadcast %cst_19 : f32 to vector<64x256xf32>
    %35 = arith.select %4, %33, %34 : vector<64x256xi1>, vector<64x256xf32>
    %36 = tpu.concatenate %32, %29, %35 in 0 : vector<64x256xf32>, vector<64x256xf32>, vector<64x256xf32> -> vector<192x256xf32>
    %cst_20 = arith.constant dense<0.000000e+00> : vector<64x256xf32>
    %37 = tpu.matmul %5, %36, %cst_20 {dimension_numbers = #tpu.dot_dimension_numbers<[1], [0], [0], [1], [0, 0, 1, 1], [], []>} : vector<64x192xf32>, vector<192x256xf32>, vector<64x256xf32> -> vector<64x256xf32>
    %c1_21 = arith.constant 1 : index
    %c0_22 = arith.constant 0 : index
    %c0_23 = arith.constant 0 : index
    %38 = vector.load %arg3[%c1_21, %c0_22, %c0_23] : memref<2x64x256xf32, #tpu.memory_space<vmem>>, vector<1x64x256xf32>
    %39 = vector.shape_cast %38 : vector<1x64x256xf32> to vector<64x256xf32>
    %40 = vector.shape_cast %37 : vector<64x256xf32> to vector<1x64x256xf32>
    tpu.vector_store %arg3[%c1_21, %c0_22, %c0_23], %40 {strides = array<i32>} : memref<2x64x256xf32, #tpu.memory_space<vmem>>, vector<1x64x256xf32>,
    %cst_24 = arith.constant dense<0.000000e+00> : vector<64xf32>
    %41 = vector.multi_reduction <add>, %37, %cst_24 [1] : vector<64x256xf32> to vector<64xf32>
    %42 = vector.shape_cast %41 : vector<64xf32> to vector<64x1xf32>
    %43 = arith.addf %23, %42 : vector<64x1xf32>
    %44 = arith.mulf %37, %37 : vector<64x256xf32>
    %cst_25 = arith.constant dense<0.000000e+00> : vector<64xf32>
    %45 = vector.multi_reduction <add>, %44, %cst_25 [1] : vector<64x256xf32> to vector<64xf32>
    %46 = vector.shape_cast %45 : vector<64xf32> to vector<64x1xf32>
    %47 = arith.addf %27, %46 : vector<64x1xf32>
    %c0_26 = arith.constant 0 : index
    %c0_27 = arith.constant 0 : index
    %c0_28 = arith.constant 0 : index
    %48 = vector.load %arg4[%c0_26, %c0_27, %c0_28] : memref<1x64x1xf32, #tpu.memory_space<vmem>>, vector<1x64x1xf32>
    %49 = vector.shape_cast %48 : vector<1x64x1xf32> to vector<64x1xf32>
    %50 = vector.shape_cast %43 : vector<64x1xf32> to vector<1x64x1xf32>
    tpu.vector_store %arg4[%c0_26, %c0_27, %c0_28], %50 {strides = array<i32>} : memref<1x64x1xf32, #tpu.memory_space<vmem>>, vector<1x64x1xf32>,
    %c0_29 = arith.constant 0 : index
    %c0_30 = arith.constant 0 : index
    %c0_31 = arith.constant 0 : index
    %51 = vector.load %arg5[%c0_29, %c0_30, %c0_31] : memref<1x64x1xf32, #tpu.memory_space<vmem>>, vector<1x64x1xf32>
    %52 = vector.shape_cast %51 : vector<1x64x1xf32> to vector<64x1xf32>
    %53 = vector.shape_cast %47 : vector<64x1xf32> to vector<1x64x1xf32>
    tpu.vector_store %arg5[%c0_29, %c0_30, %c0_31], %53 {strides = array<i32>} : memref<1x64x1xf32, #tpu.memory_space<vmem>>, vector<1x64x1xf32>,
    return
  }
  func.func @transform_0(%arg0: i32) -> (i32, i32, i32) {
    %c0_i32 = arith.constant 0 : i32
    %c0_i32_0 = arith.constant 0 : i32
    %c0_i32_1 = arith.constant 0 : i32
    return %arg0, %c0_i32, %c0_i32_0 : i32, i32, i32
  }
  func.func @transform_1(%arg0: i32) -> (i32, i32) {
    %c0_i32 = arith.constant 0 : i32
    %c0_i32_0 = arith.constant 0 : i32
    %c0_i32_1 = arith.constant 0 : i32
    return %c0_i32, %c0_i32_0 : i32, i32
  }
  func.func @transform_2(%arg0: i32) -> (i32, i32, i32) {
    %c0_i32 = arith.constant 0 : i32
    %c0_i32_0 = arith.constant 0 : i32
    %c0_i32_1 = arith.constant 0 : i32
    return %arg0, %c0_i32, %c0_i32_0 : i32, i32, i32
  }
  func.func @transform_3(%arg0: i32) -> (i32, i32, i32) {
    %c0_i32 = arith.constant 0 : i32
    %c0_i32_0 = arith.constant 0 : i32
    %c0_i32_1 = arith.constant 0 : i32
    return %arg0, %c0_i32, %c0_i32_0 : i32, i32, i32
  }
  func.func @transform_4(%arg0: i32) -> (i32, i32, i32) {
    %c0_i32 = arith.constant 0 : i32
    %c0_i32_0 = arith.constant 0 : i32
    %c0_i32_1 = arith.constant 0 : i32
    return %arg0, %c0_i32, %c0_i32_0 : i32, i32, i32
  }
}

module attributes {stable_mosaic.version = 11 : i64} {
  func.func @_bn_relu_conv_kernel(%arg0: i32, %arg1: memref<2x64x256xf32, #tpu.memory_space<vmem>>, %arg2: memref<2x64x1xf32, #tpu.memory_space<vmem>>, %arg3: memref<2x64x1xf32, #tpu.memory_space<vmem>>, %arg4: memref<64x1xf32, #tpu.memory_space<vmem>>, %arg5: memref<64x1xf32, #tpu.memory_space<vmem>>, %arg6: memref<64x192xf32, #tpu.memory_space<vmem>>, %arg7: memref<2x64x256xf32, #tpu.memory_space<vmem>>, %arg8: memref<1x64x1xf32, #tpu.memory_space<vmem>>, %arg9: memref<1x64x1xf32, #tpu.memory_space<vmem>>) attributes {dimension_semantics = [#tpu.dimension_semantics<parallel>], iteration_bounds = array<i64: 2>, scalar_prefetch = 0 : i64, scratch_operands = 0 : i64, tpu.core_type = #tpu.core_type<tc>, window_params = [{transform_indices = @transform_0, window_bounds = array<i64: 2, 64, 256>}, {pipeline_mode = #tpu.pipeline_mode<synchronous>, transform_indices = @transform_1, window_bounds = array<i64: 2, 64, 1>}, {pipeline_mode = #tpu.pipeline_mode<synchronous>, transform_indices = @transform_2, window_bounds = array<i64: 2, 64, 1>}, {pipeline_mode = #tpu.pipeline_mode<synchronous>, transform_indices = @transform_3, window_bounds = array<i64: 64, 1>}, {pipeline_mode = #tpu.pipeline_mode<synchronous>, transform_indices = @transform_4, window_bounds = array<i64: 64, 1>}, {pipeline_mode = #tpu.pipeline_mode<synchronous>, transform_indices = @transform_5, window_bounds = array<i64: 64, 192>}, {transform_indices = @transform_6, window_bounds = array<i64: 2, 64, 256>}, {transform_indices = @transform_7, window_bounds = array<i64: 1, 64, 1>}, {transform_indices = @transform_8, window_bounds = array<i64: 1, 64, 1>}]} {
    %0 = tpu.iota {dimensions = array<i32: 1>} : vector<64x256xi32>
    %c0_i32 = arith.constant 0 : i32
    %1 = vector.broadcast %c0_i32 : i32 to vector<64x256xi32>
    %2 = arith.cmpi sgt, %0, %1 : vector<64x256xi32>
    %c255_i32 = arith.constant 255 : i32
    %3 = vector.broadcast %c255_i32 : i32 to vector<64x256xi32>
    %4 = arith.cmpi slt, %0, %3 : vector<64x256xi32>
    %c0 = arith.constant 0 : index
    %c0_0 = arith.constant 0 : index
    %5 = vector.load %arg6[%c0, %c0_0] : memref<64x192xf32, #tpu.memory_space<vmem>>, vector<64x192xf32>
    %c0_1 = arith.constant 0 : index
    %c0_2 = arith.constant 0 : index
    %c0_3 = arith.constant 0 : index
    %6 = vector.load %arg2[%c0_1, %c0_2, %c0_3] : memref<2x64x1xf32, #tpu.memory_space<vmem>>, vector<2x64x1xf32>
    %cst = arith.constant dense<0.000000e+00> : vector<64x1xf32>
    %7 = vector.multi_reduction <add>, %6, %cst [0] : vector<2x64x1xf32> to vector<64x1xf32>
    %c0_4 = arith.constant 0 : index
    %c0_5 = arith.constant 0 : index
    %c0_6 = arith.constant 0 : index
    %8 = vector.load %arg3[%c0_4, %c0_5, %c0_6] : memref<2x64x1xf32, #tpu.memory_space<vmem>>, vector<2x64x1xf32>
    %cst_7 = arith.constant dense<0.000000e+00> : vector<64x1xf32>
    %9 = vector.multi_reduction <add>, %8, %cst_7 [0] : vector<2x64x1xf32> to vector<64x1xf32>
    %cst_8 = arith.constant 9.765625E-4 : f32
    %10 = vector.broadcast %cst_8 : f32 to vector<64x1xf32>
    %11 = arith.mulf %7, %10 : vector<64x1xf32>
    %cst_9 = arith.constant 9.765625E-4 : f32
    %12 = vector.broadcast %cst_9 : f32 to vector<64x1xf32>
    %13 = arith.mulf %9, %12 : vector<64x1xf32>
    %14 = arith.mulf %11, %11 : vector<64x1xf32>
    %15 = arith.subf %13, %14 : vector<64x1xf32>
    %cst_10 = arith.constant 9.99999974E-5 : f32
    %16 = vector.broadcast %cst_10 : f32 to vector<64x1xf32>
    %17 = arith.addf %15, %16 : vector<64x1xf32>
    %18 = math.rsqrt %17 : vector<64x1xf32>
    %c0_11 = arith.constant 0 : index
    %c0_12 = arith.constant 0 : index
    %19 = vector.load %arg4[%c0_11, %c0_12] : memref<64x1xf32, #tpu.memory_space<vmem>>, vector<64x1xf32>
    %20 = arith.mulf %18, %19 : vector<64x1xf32>
    %c0_13 = arith.constant 0 : index
    %c0_14 = arith.constant 0 : index
    %21 = vector.load %arg5[%c0_13, %c0_14] : memref<64x1xf32, #tpu.memory_space<vmem>>, vector<64x1xf32>
    %22 = arith.mulf %11, %20 : vector<64x1xf32>
    %23 = arith.subf %21, %22 : vector<64x1xf32>
    %cst_15 = arith.constant 0.000000e+00 : f32
    %24 = vector.broadcast %cst_15 : f32 to vector<64x1xf32>
    %cst_16 = arith.constant 0.000000e+00 : f32
    %25 = vector.broadcast %cst_16 : f32 to vector<64x1xf32>
    %c0_17 = arith.constant 0 : index
    %c0_18 = arith.constant 0 : index
    %c0_19 = arith.constant 0 : index
    %26 = vector.load %arg1[%c0_17, %c0_18, %c0_19] : memref<2x64x256xf32, #tpu.memory_space<vmem>>, vector<1x64x256xf32>
    %27 = vector.shape_cast %26 : vector<1x64x256xf32> to vector<64x256xf32>
    %28 = vector.broadcast %20 : vector<64x1xf32> to vector<64x256xf32>
    %29 = arith.mulf %27, %28 : vector<64x256xf32>
    %30 = vector.broadcast %23 : vector<64x1xf32> to vector<64x256xf32>
    %31 = arith.addf %29, %30 : vector<64x256xf32>
    %cst_20 = arith.constant 0.000000e+00 : f32
    %32 = vector.broadcast %cst_20 : f32 to vector<64x256xf32>
    %33 = arith.maximumf %31, %32 : vector<64x256xf32>
    %c1_i32 = arith.constant 1 : i32
    %34 = tpu.dynamic_rotate %33 by %c1_i32 dim 1 : vector<64x256xf32>, i32 -> vector<64x256xf32>
    %cst_21 = arith.constant 0.000000e+00 : f32
    %35 = vector.broadcast %cst_21 : f32 to vector<64x256xf32>
    %36 = arith.select %2, %34, %35 : vector<64x256xi1>, vector<64x256xf32>
    %c255_i32_22 = arith.constant 255 : i32
    %37 = tpu.dynamic_rotate %33 by %c255_i32_22 dim 1 : vector<64x256xf32>, i32 -> vector<64x256xf32>
    %cst_23 = arith.constant 0.000000e+00 : f32
    %38 = vector.broadcast %cst_23 : f32 to vector<64x256xf32>
    %39 = arith.select %4, %37, %38 : vector<64x256xi1>, vector<64x256xf32>
    %40 = tpu.concatenate %36, %33, %39 in 0 : vector<64x256xf32>, vector<64x256xf32>, vector<64x256xf32> -> vector<192x256xf32>
    %cst_24 = arith.constant dense<0.000000e+00> : vector<64x256xf32>
    %41 = tpu.matmul %5, %40, %cst_24 {dimension_numbers = #tpu.dot_dimension_numbers<[1], [0], [0], [1], [0, 0, 1, 1], [], []>} : vector<64x192xf32>, vector<192x256xf32>, vector<64x256xf32> -> vector<64x256xf32>
    %c0_25 = arith.constant 0 : index
    %c0_26 = arith.constant 0 : index
    %c0_27 = arith.constant 0 : index
    %42 = vector.load %arg7[%c0_25, %c0_26, %c0_27] : memref<2x64x256xf32, #tpu.memory_space<vmem>>, vector<1x64x256xf32>
    %43 = vector.shape_cast %42 : vector<1x64x256xf32> to vector<64x256xf32>
    %44 = vector.shape_cast %41 : vector<64x256xf32> to vector<1x64x256xf32>
    tpu.vector_store %arg7[%c0_25, %c0_26, %c0_27], %44 {strides = array<i32>} : memref<2x64x256xf32, #tpu.memory_space<vmem>>, vector<1x64x256xf32>,
    %cst_28 = arith.constant dense<0.000000e+00> : vector<64xf32>
    %45 = vector.multi_reduction <add>, %41, %cst_28 [1] : vector<64x256xf32> to vector<64xf32>
    %46 = vector.shape_cast %45 : vector<64xf32> to vector<64x1xf32>
    %47 = arith.addf %24, %46 : vector<64x1xf32>
    %48 = arith.mulf %41, %41 : vector<64x256xf32>
    %cst_29 = arith.constant dense<0.000000e+00> : vector<64xf32>
    %49 = vector.multi_reduction <add>, %48, %cst_29 [1] : vector<64x256xf32> to vector<64xf32>
    %50 = vector.shape_cast %49 : vector<64xf32> to vector<64x1xf32>
    %51 = arith.addf %25, %50 : vector<64x1xf32>
    %c1 = arith.constant 1 : index
    %c0_30 = arith.constant 0 : index
    %c0_31 = arith.constant 0 : index
    %52 = vector.load %arg1[%c1, %c0_30, %c0_31] : memref<2x64x256xf32, #tpu.memory_space<vmem>>, vector<1x64x256xf32>
    %53 = vector.shape_cast %52 : vector<1x64x256xf32> to vector<64x256xf32>
    %54 = vector.broadcast %20 : vector<64x1xf32> to vector<64x256xf32>
    %55 = arith.mulf %53, %54 : vector<64x256xf32>
    %56 = vector.broadcast %23 : vector<64x1xf32> to vector<64x256xf32>
    %57 = arith.addf %55, %56 : vector<64x256xf32>
    %cst_32 = arith.constant 0.000000e+00 : f32
    %58 = vector.broadcast %cst_32 : f32 to vector<64x256xf32>
    %59 = arith.maximumf %57, %58 : vector<64x256xf32>
    %c1_i32_33 = arith.constant 1 : i32
    %60 = tpu.dynamic_rotate %59 by %c1_i32_33 dim 1 : vector<64x256xf32>, i32 -> vector<64x256xf32>
    %cst_34 = arith.constant 0.000000e+00 : f32
    %61 = vector.broadcast %cst_34 : f32 to vector<64x256xf32>
    %62 = arith.select %2, %60, %61 : vector<64x256xi1>, vector<64x256xf32>
    %c255_i32_35 = arith.constant 255 : i32
    %63 = tpu.dynamic_rotate %59 by %c255_i32_35 dim 1 : vector<64x256xf32>, i32 -> vector<64x256xf32>
    %cst_36 = arith.constant 0.000000e+00 : f32
    %64 = vector.broadcast %cst_36 : f32 to vector<64x256xf32>
    %65 = arith.select %4, %63, %64 : vector<64x256xi1>, vector<64x256xf32>
    %66 = tpu.concatenate %62, %59, %65 in 0 : vector<64x256xf32>, vector<64x256xf32>, vector<64x256xf32> -> vector<192x256xf32>
    %cst_37 = arith.constant dense<0.000000e+00> : vector<64x256xf32>
    %67 = tpu.matmul %5, %66, %cst_37 {dimension_numbers = #tpu.dot_dimension_numbers<[1], [0], [0], [1], [0, 0, 1, 1], [], []>} : vector<64x192xf32>, vector<192x256xf32>, vector<64x256xf32> -> vector<64x256xf32>
    %c1_38 = arith.constant 1 : index
    %c0_39 = arith.constant 0 : index
    %c0_40 = arith.constant 0 : index
    %68 = vector.load %arg7[%c1_38, %c0_39, %c0_40] : memref<2x64x256xf32, #tpu.memory_space<vmem>>, vector<1x64x256xf32>
    %69 = vector.shape_cast %68 : vector<1x64x256xf32> to vector<64x256xf32>
    %70 = vector.shape_cast %67 : vector<64x256xf32> to vector<1x64x256xf32>
    tpu.vector_store %arg7[%c1_38, %c0_39, %c0_40], %70 {strides = array<i32>} : memref<2x64x256xf32, #tpu.memory_space<vmem>>, vector<1x64x256xf32>,
    %cst_41 = arith.constant dense<0.000000e+00> : vector<64xf32>
    %71 = vector.multi_reduction <add>, %67, %cst_41 [1] : vector<64x256xf32> to vector<64xf32>
    %72 = vector.shape_cast %71 : vector<64xf32> to vector<64x1xf32>
    %73 = arith.addf %47, %72 : vector<64x1xf32>
    %74 = arith.mulf %67, %67 : vector<64x256xf32>
    %cst_42 = arith.constant dense<0.000000e+00> : vector<64xf32>
    %75 = vector.multi_reduction <add>, %74, %cst_42 [1] : vector<64x256xf32> to vector<64xf32>
    %76 = vector.shape_cast %75 : vector<64xf32> to vector<64x1xf32>
    %77 = arith.addf %51, %76 : vector<64x1xf32>
    %c0_43 = arith.constant 0 : index
    %c0_44 = arith.constant 0 : index
    %c0_45 = arith.constant 0 : index
    %78 = vector.load %arg8[%c0_43, %c0_44, %c0_45] : memref<1x64x1xf32, #tpu.memory_space<vmem>>, vector<1x64x1xf32>
    %79 = vector.shape_cast %78 : vector<1x64x1xf32> to vector<64x1xf32>
    %80 = vector.shape_cast %73 : vector<64x1xf32> to vector<1x64x1xf32>
    tpu.vector_store %arg8[%c0_43, %c0_44, %c0_45], %80 {strides = array<i32>} : memref<1x64x1xf32, #tpu.memory_space<vmem>>, vector<1x64x1xf32>,
    %c0_46 = arith.constant 0 : index
    %c0_47 = arith.constant 0 : index
    %c0_48 = arith.constant 0 : index
    %81 = vector.load %arg9[%c0_46, %c0_47, %c0_48] : memref<1x64x1xf32, #tpu.memory_space<vmem>>, vector<1x64x1xf32>
    %82 = vector.shape_cast %81 : vector<1x64x1xf32> to vector<64x1xf32>
    %83 = vector.shape_cast %77 : vector<64x1xf32> to vector<1x64x1xf32>
    tpu.vector_store %arg9[%c0_46, %c0_47, %c0_48], %83 {strides = array<i32>} : memref<1x64x1xf32, #tpu.memory_space<vmem>>, vector<1x64x1xf32>,
    return
  }
  func.func @transform_0(%arg0: i32) -> (i32, i32, i32) {
    %c0_i32 = arith.constant 0 : i32
    %c0_i32_0 = arith.constant 0 : i32
    %c0_i32_1 = arith.constant 0 : i32
    return %arg0, %c0_i32, %c0_i32_0 : i32, i32, i32
  }
  func.func @transform_1(%arg0: i32) -> (i32, i32, i32) {
    %c0_i32 = arith.constant 0 : i32
    %c0_i32_0 = arith.constant 0 : i32
    %c0_i32_1 = arith.constant 0 : i32
    %c0_i32_2 = arith.constant 0 : i32
    return %c0_i32, %c0_i32_0, %c0_i32_1 : i32, i32, i32
  }
  func.func @transform_2(%arg0: i32) -> (i32, i32, i32) {
    %c0_i32 = arith.constant 0 : i32
    %c0_i32_0 = arith.constant 0 : i32
    %c0_i32_1 = arith.constant 0 : i32
    %c0_i32_2 = arith.constant 0 : i32
    return %c0_i32, %c0_i32_0, %c0_i32_1 : i32, i32, i32
  }
  func.func @transform_3(%arg0: i32) -> (i32, i32) {
    %c0_i32 = arith.constant 0 : i32
    %c0_i32_0 = arith.constant 0 : i32
    %c0_i32_1 = arith.constant 0 : i32
    return %c0_i32, %c0_i32_0 : i32, i32
  }
  func.func @transform_4(%arg0: i32) -> (i32, i32) {
    %c0_i32 = arith.constant 0 : i32
    %c0_i32_0 = arith.constant 0 : i32
    %c0_i32_1 = arith.constant 0 : i32
    return %c0_i32, %c0_i32_0 : i32, i32
  }
  func.func @transform_5(%arg0: i32) -> (i32, i32) {
    %c0_i32 = arith.constant 0 : i32
    %c0_i32_0 = arith.constant 0 : i32
    %c0_i32_1 = arith.constant 0 : i32
    return %c0_i32, %c0_i32_0 : i32, i32
  }
  func.func @transform_6(%arg0: i32) -> (i32, i32, i32) {
    %c0_i32 = arith.constant 0 : i32
    %c0_i32_0 = arith.constant 0 : i32
    %c0_i32_1 = arith.constant 0 : i32
    return %arg0, %c0_i32, %c0_i32_0 : i32, i32, i32
  }
  func.func @transform_7(%arg0: i32) -> (i32, i32, i32) {
    %c0_i32 = arith.constant 0 : i32
    %c0_i32_0 = arith.constant 0 : i32
    %c0_i32_1 = arith.constant 0 : i32
    return %arg0, %c0_i32, %c0_i32_0 : i32, i32, i32
  }
  func.func @transform_8(%arg0: i32) -> (i32, i32, i32) {
    %c0_i32 = arith.constant 0 : i32
    %c0_i32_0 = arith.constant 0 : i32
    %c0_i32_1 = arith.constant 0 : i32
    return %arg0, %c0_i32, %c0_i32_0 : i32, i32, i32
  }
}

module attributes {stable_mosaic.version = 11 : i64} {
  func.func @_bn_relu_last_conv_kernel(%arg0: i32, %arg1: memref<2x64x256xf32, #tpu.memory_space<vmem>>, %arg2: memref<2x64x1xf32, #tpu.memory_space<vmem>>, %arg3: memref<2x64x1xf32, #tpu.memory_space<vmem>>, %arg4: memref<64x1xf32, #tpu.memory_space<vmem>>, %arg5: memref<64x1xf32, #tpu.memory_space<vmem>>, %arg6: memref<64x3xf32, #tpu.memory_space<vmem>>, %arg7: memref<2x1x256xf32, #tpu.memory_space<vmem>>) attributes {dimension_semantics = [#tpu.dimension_semantics<parallel>], iteration_bounds = array<i64: 2>, scalar_prefetch = 0 : i64, scratch_operands = 0 : i64, tpu.core_type = #tpu.core_type<tc>, window_params = [{transform_indices = @transform_0, window_bounds = array<i64: 2, 64, 256>}, {pipeline_mode = #tpu.pipeline_mode<synchronous>, transform_indices = @transform_1, window_bounds = array<i64: 2, 64, 1>}, {pipeline_mode = #tpu.pipeline_mode<synchronous>, transform_indices = @transform_2, window_bounds = array<i64: 2, 64, 1>}, {pipeline_mode = #tpu.pipeline_mode<synchronous>, transform_indices = @transform_3, window_bounds = array<i64: 64, 1>}, {pipeline_mode = #tpu.pipeline_mode<synchronous>, transform_indices = @transform_4, window_bounds = array<i64: 64, 1>}, {pipeline_mode = #tpu.pipeline_mode<synchronous>, transform_indices = @transform_5, window_bounds = array<i64: 64, 3>}, {transform_indices = @transform_6, window_bounds = array<i64: 2, 1, 256>}]} {
    %0 = tpu.iota {dimensions = array<i32: 1>} : vector<64x256xi32>
    %c0_i32 = arith.constant 0 : i32
    %1 = vector.broadcast %c0_i32 : i32 to vector<64x256xi32>
    %2 = arith.cmpi sgt, %0, %1 : vector<64x256xi32>
    %c255_i32 = arith.constant 255 : i32
    %3 = vector.broadcast %c255_i32 : i32 to vector<64x256xi32>
    %4 = arith.cmpi slt, %0, %3 : vector<64x256xi32>
    %c0 = arith.constant 0 : index
    %c0_0 = arith.constant 0 : index
    %5 = vector.load %arg6[%c0, %c0_0] : memref<64x3xf32, #tpu.memory_space<vmem>>, vector<64x3xf32>
    %6 = vector.extract_strided_slice %5 {offsets = [0, 0], sizes = [64, 1], strides = [1, 1]} : vector<64x3xf32> to vector<64x1xf32>
    %7 = vector.extract_strided_slice %5 {offsets = [0, 1], sizes = [64, 1], strides = [1, 1]} : vector<64x3xf32> to vector<64x1xf32>
    %8 = vector.extract_strided_slice %5 {offsets = [0, 2], sizes = [64, 1], strides = [1, 1]} : vector<64x3xf32> to vector<64x1xf32>
    %c0_1 = arith.constant 0 : index
    %c0_2 = arith.constant 0 : index
    %c0_3 = arith.constant 0 : index
    %9 = vector.load %arg2[%c0_1, %c0_2, %c0_3] : memref<2x64x1xf32, #tpu.memory_space<vmem>>, vector<2x64x1xf32>
    %cst = arith.constant dense<0.000000e+00> : vector<64x1xf32>
    %10 = vector.multi_reduction <add>, %9, %cst [0] : vector<2x64x1xf32> to vector<64x1xf32>
    %c0_4 = arith.constant 0 : index
    %c0_5 = arith.constant 0 : index
    %c0_6 = arith.constant 0 : index
    %11 = vector.load %arg3[%c0_4, %c0_5, %c0_6] : memref<2x64x1xf32, #tpu.memory_space<vmem>>, vector<2x64x1xf32>
    %cst_7 = arith.constant dense<0.000000e+00> : vector<64x1xf32>
    %12 = vector.multi_reduction <add>, %11, %cst_7 [0] : vector<2x64x1xf32> to vector<64x1xf32>
    %cst_8 = arith.constant 9.765625E-4 : f32
    %13 = vector.broadcast %cst_8 : f32 to vector<64x1xf32>
    %14 = arith.mulf %10, %13 : vector<64x1xf32>
    %cst_9 = arith.constant 9.765625E-4 : f32
    %15 = vector.broadcast %cst_9 : f32 to vector<64x1xf32>
    %16 = arith.mulf %12, %15 : vector<64x1xf32>
    %17 = arith.mulf %14, %14 : vector<64x1xf32>
    %18 = arith.subf %16, %17 : vector<64x1xf32>
    %cst_10 = arith.constant 9.99999974E-5 : f32
    %19 = vector.broadcast %cst_10 : f32 to vector<64x1xf32>
    %20 = arith.addf %18, %19 : vector<64x1xf32>
    %21 = math.rsqrt %20 : vector<64x1xf32>
    %c0_11 = arith.constant 0 : index
    %c0_12 = arith.constant 0 : index
    %22 = vector.load %arg4[%c0_11, %c0_12] : memref<64x1xf32, #tpu.memory_space<vmem>>, vector<64x1xf32>
    %23 = arith.mulf %21, %22 : vector<64x1xf32>
    %c0_13 = arith.constant 0 : index
    %c0_14 = arith.constant 0 : index
    %24 = vector.load %arg5[%c0_13, %c0_14] : memref<64x1xf32, #tpu.memory_space<vmem>>, vector<64x1xf32>
    %25 = arith.mulf %14, %23 : vector<64x1xf32>
    %26 = arith.subf %24, %25 : vector<64x1xf32>
    %c0_15 = arith.constant 0 : index
    %c0_16 = arith.constant 0 : index
    %c0_17 = arith.constant 0 : index
    %27 = vector.load %arg1[%c0_15, %c0_16, %c0_17] : memref<2x64x256xf32, #tpu.memory_space<vmem>>, vector<1x64x256xf32>
    %28 = vector.shape_cast %27 : vector<1x64x256xf32> to vector<64x256xf32>
    %29 = vector.broadcast %23 : vector<64x1xf32> to vector<64x256xf32>
    %30 = arith.mulf %28, %29 : vector<64x256xf32>
    %31 = vector.broadcast %26 : vector<64x1xf32> to vector<64x256xf32>
    %32 = arith.addf %30, %31 : vector<64x256xf32>
    %cst_18 = arith.constant 0.000000e+00 : f32
    %33 = vector.broadcast %cst_18 : f32 to vector<64x256xf32>
    %34 = arith.maximumf %32, %33 : vector<64x256xf32>
    %c1_i32 = arith.constant 1 : i32
    %35 = tpu.dynamic_rotate %34 by %c1_i32 dim 1 : vector<64x256xf32>, i32 -> vector<64x256xf32>
    %cst_19 = arith.constant 0.000000e+00 : f32
    %36 = vector.broadcast %cst_19 : f32 to vector<64x256xf32>
    %37 = arith.select %2, %35, %36 : vector<64x256xi1>, vector<64x256xf32>
    %c255_i32_20 = arith.constant 255 : i32
    %38 = tpu.dynamic_rotate %34 by %c255_i32_20 dim 1 : vector<64x256xf32>, i32 -> vector<64x256xf32>
    %cst_21 = arith.constant 0.000000e+00 : f32
    %39 = vector.broadcast %cst_21 : f32 to vector<64x256xf32>
    %40 = arith.select %4, %38, %39 : vector<64x256xi1>, vector<64x256xf32>
    %41 = vector.broadcast %6 : vector<64x1xf32> to vector<64x256xf32>
    %42 = arith.mulf %41, %37 : vector<64x256xf32>
    %43 = vector.broadcast %7 : vector<64x1xf32> to vector<64x256xf32>
    %44 = arith.mulf %43, %34 : vector<64x256xf32>
    %45 = arith.addf %42, %44 : vector<64x256xf32>
    %46 = vector.broadcast %8 : vector<64x1xf32> to vector<64x256xf32>
    %47 = arith.mulf %46, %40 : vector<64x256xf32>
    %48 = arith.addf %45, %47 : vector<64x256xf32>
    %cst_22 = arith.constant dense<0.000000e+00> : vector<256xf32>
    %49 = vector.multi_reduction <add>, %48, %cst_22 [0] : vector<64x256xf32> to vector<256xf32>
    %50 = vector.shape_cast %49 : vector<256xf32> to vector<1x256xf32>
    %c0_23 = arith.constant 0 : index
    %c0_24 = arith.constant 0 : index
    %c0_25 = arith.constant 0 : index
    %51 = vector.load %arg7[%c0_23, %c0_24, %c0_25] : memref<2x1x256xf32, #tpu.memory_space<vmem>>, vector<1x1x256xf32>
    %52 = vector.shape_cast %51 : vector<1x1x256xf32> to vector<1x256xf32>
    %53 = vector.shape_cast %50 : vector<1x256xf32> to vector<1x1x256xf32>
    tpu.vector_store %arg7[%c0_23, %c0_24, %c0_25], %53 {strides = array<i32>} : memref<2x1x256xf32, #tpu.memory_space<vmem>>, vector<1x1x256xf32>,
    %c1 = arith.constant 1 : index
    %c0_26 = arith.constant 0 : index
    %c0_27 = arith.constant 0 : index
    %54 = vector.load %arg1[%c1, %c0_26, %c0_27] : memref<2x64x256xf32, #tpu.memory_space<vmem>>, vector<1x64x256xf32>
    %55 = vector.shape_cast %54 : vector<1x64x256xf32> to vector<64x256xf32>
    %56 = vector.broadcast %23 : vector<64x1xf32> to vector<64x256xf32>
    %57 = arith.mulf %55, %56 : vector<64x256xf32>
    %58 = vector.broadcast %26 : vector<64x1xf32> to vector<64x256xf32>
    %59 = arith.addf %57, %58 : vector<64x256xf32>
    %cst_28 = arith.constant 0.000000e+00 : f32
    %60 = vector.broadcast %cst_28 : f32 to vector<64x256xf32>
    %61 = arith.maximumf %59, %60 : vector<64x256xf32>
    %c1_i32_29 = arith.constant 1 : i32
    %62 = tpu.dynamic_rotate %61 by %c1_i32_29 dim 1 : vector<64x256xf32>, i32 -> vector<64x256xf32>
    %cst_30 = arith.constant 0.000000e+00 : f32
    %63 = vector.broadcast %cst_30 : f32 to vector<64x256xf32>
    %64 = arith.select %2, %62, %63 : vector<64x256xi1>, vector<64x256xf32>
    %c255_i32_31 = arith.constant 255 : i32
    %65 = tpu.dynamic_rotate %61 by %c255_i32_31 dim 1 : vector<64x256xf32>, i32 -> vector<64x256xf32>
    %cst_32 = arith.constant 0.000000e+00 : f32
    %66 = vector.broadcast %cst_32 : f32 to vector<64x256xf32>
    %67 = arith.select %4, %65, %66 : vector<64x256xi1>, vector<64x256xf32>
    %68 = vector.broadcast %6 : vector<64x1xf32> to vector<64x256xf32>
    %69 = arith.mulf %68, %64 : vector<64x256xf32>
    %70 = vector.broadcast %7 : vector<64x1xf32> to vector<64x256xf32>
    %71 = arith.mulf %70, %61 : vector<64x256xf32>
    %72 = arith.addf %69, %71 : vector<64x256xf32>
    %73 = vector.broadcast %8 : vector<64x1xf32> to vector<64x256xf32>
    %74 = arith.mulf %73, %67 : vector<64x256xf32>
    %75 = arith.addf %72, %74 : vector<64x256xf32>
    %cst_33 = arith.constant dense<0.000000e+00> : vector<256xf32>
    %76 = vector.multi_reduction <add>, %75, %cst_33 [0] : vector<64x256xf32> to vector<256xf32>
    %77 = vector.shape_cast %76 : vector<256xf32> to vector<1x256xf32>
    %c1_34 = arith.constant 1 : index
    %c0_35 = arith.constant 0 : index
    %c0_36 = arith.constant 0 : index
    %78 = vector.load %arg7[%c1_34, %c0_35, %c0_36] : memref<2x1x256xf32, #tpu.memory_space<vmem>>, vector<1x1x256xf32>
    %79 = vector.shape_cast %78 : vector<1x1x256xf32> to vector<1x256xf32>
    %80 = vector.shape_cast %77 : vector<1x256xf32> to vector<1x1x256xf32>
    tpu.vector_store %arg7[%c1_34, %c0_35, %c0_36], %80 {strides = array<i32>} : memref<2x1x256xf32, #tpu.memory_space<vmem>>, vector<1x1x256xf32>,
    return
  }
  func.func @transform_0(%arg0: i32) -> (i32, i32, i32) {
    %c0_i32 = arith.constant 0 : i32
    %c0_i32_0 = arith.constant 0 : i32
    %c0_i32_1 = arith.constant 0 : i32
    return %arg0, %c0_i32, %c0_i32_0 : i32, i32, i32
  }
  func.func @transform_1(%arg0: i32) -> (i32, i32, i32) {
    %c0_i32 = arith.constant 0 : i32
    %c0_i32_0 = arith.constant 0 : i32
    %c0_i32_1 = arith.constant 0 : i32
    %c0_i32_2 = arith.constant 0 : i32
    return %c0_i32, %c0_i32_0, %c0_i32_1 : i32, i32, i32
  }
  func.func @transform_2(%arg0: i32) -> (i32, i32, i32) {
    %c0_i32 = arith.constant 0 : i32
    %c0_i32_0 = arith.constant 0 : i32
    %c0_i32_1 = arith.constant 0 : i32
    %c0_i32_2 = arith.constant 0 : i32
    return %c0_i32, %c0_i32_0, %c0_i32_1 : i32, i32, i32
  }
  func.func @transform_3(%arg0: i32) -> (i32, i32) {
    %c0_i32 = arith.constant 0 : i32
    %c0_i32_0 = arith.constant 0 : i32
    %c0_i32_1 = arith.constant 0 : i32
    return %c0_i32, %c0_i32_0 : i32, i32
  }
  func.func @transform_4(%arg0: i32) -> (i32, i32) {
    %c0_i32 = arith.constant 0 : i32
    %c0_i32_0 = arith.constant 0 : i32
    %c0_i32_1 = arith.constant 0 : i32
    return %c0_i32, %c0_i32_0 : i32, i32
  }
  func.func @transform_5(%arg0: i32) -> (i32, i32) {
    %c0_i32 = arith.constant 0 : i32
    %c0_i32_0 = arith.constant 0 : i32
    %c0_i32_1 = arith.constant 0 : i32
    return %c0_i32, %c0_i32_0 : i32, i32
  }
  func.func @transform_6(%arg0: i32) -> (i32, i32, i32) {
    %c0_i32 = arith.constant 0 : i32
    %c0_i32_0 = arith.constant 0 : i32
    %c0_i32_1 = arith.constant 0 : i32
    return %arg0, %c0_i32, %c0_i32_0 : i32, i32, i32
  }
}

</mosaic_0001>

<bundles_post_ra>
// kernel: dncnn_forward.5
= control target key start
LH: loop header
LB: loop body
LE: loop exit
PB: predicated region body
PF: predicated region fallthrough
CT: control target
= control target key end

     0   :  { %s719_s9 = smov 0   ;;  %s1075_s0 = inlined_call_operand.vmem [shape: f32[4,1,256], index: 0, kind: input, shape index: {}]   ;;  %s1076_s1 = inlined_call_operand.vmem [shape: f32[64,3], index: 1, kind: input, shape index: {}]   ;;  %s1077_s2 = inlined_call_operand.vmem [shape: f32[4,64,256], index: 2, kind: output, shape index: {}]  }
   0x1 LB: > { %s642_s10 = sadd.s32 4294967295, %s697_s9   ;;  %p646_p0 = scmp.ge.s32.totalorder %s697_s9, 1  ;;  %s697_s9 = sphi %s719_s9, %s12_s9  }
   0x2   : > { %p113_p1 = scmp.lt.s32.totalorder %s697_s9, 3 }
   0x4   : > { %p114_p2 = pnand %p646_p0, %p113_p1 }
   0x5   : > { %v150_v0 = vld [vmem:[%s1076_s1 + $0x8] sm:$0xff] (!%p114_p2)  ;;  %s647_s13 = sshll.u32 (!%p114_p2), %s642_s10, 1  ;;  %v157_v1 = vlaneseq (!%p114_p2)  ;;  %v699_v2 = vmov (!%p114_p2), 0   ;;  %s700_s18 = smov (!%p114_p2), 127   ;;  %v151_v9 = vld [vmem:[%s1076_s1 + $0x10] sm:$0xff] (!%p114_p2)  ;;  %v149_v10 = vld [vmem:[%s1076_s1] sm:$0xff] (!%p114_p2) }
   0x6   : > { %117 = sbr.rel (%p114_p2) target bundleno = 237 (0xed), region = 28  ;;  %686 = vset.pattern.permute.xlu1 (!%p114_p2), %v699_v2  ;;  %p137_p3 = scmp.lt.s32.totalorder (!%p114_p2), %s647_s13, 3  ;;  %685 = vset.pattern.permute.xlu0 (!%p114_p2), %v699_v2  ;;  %v153_v11 = vld [vmem:[%s1076_s1 + $0x20] sm:$0xff] (!%p114_p2)  ;;  %v152_v12 = vld [vmem:[%s1076_s1 + $0x18] sm:$0xff] (!%p114_p2)  ;;  %v155_v13 = vld [vmem:[%s1076_s1 + $0x30] sm:$0xff] (!%p114_p2)  ;;  %v702_v16 = vmov (!%p114_p2), 1  }
   0x7   : > { %201 = vperm.xlu1 (!%p114_p2), %686, %v150_v0   ;;  %v167_v3 = vshrl.u32 (!%p114_p2), %v157_v1, 7  ;;  %s701_s19 = smov (!%p114_p2), 1   ;;  %v154_v14 = vld [vmem:[%s1076_s1 + $0x28] sm:$0xff] (!%p114_p2)  ;;  %v156_v15 = vld [vmem:[%s1076_s1 + $0x38] sm:$0xff] (!%p114_p2)  ;;  %v703_v17 = vmov (!%p114_p2), 2   ;;  %v801_v30 = vand.u32 (!%p114_p2), 127, %v157_v1 }
   0x9   : > { %v733_v4 = vsub.s32 (!%p114_p2), 0, %v167_v3  ;;  %v172_v5 = vsub.s32 (!%p114_p2), 1, %v167_v3  ;;  %vm180_vm0 = vcmp.lt.s32.totalorder (!%p114_p2), %v801_v30, 1  ;;  %vm160_vm1 = vcmp.gt.s32.totalorder (!%p114_p2), %v801_v30, 0 }
   0xa   : > { %v816_v36 = vadd.s32 (!%p114_p2), 128, %v801_v30  ;;  %vm189_vm2 = vcmp.lt.s32.totalorder (!%p114_p2), %v801_v30, 127 }
   0xc   : > { %vm163_vm3 = vcmp.lt.s32.totalorder (!%p114_p2), %v816_v36, 255 }
   0xd   : > { %s1079_s13 = smov (!%p137_p3, %s647_s13), 3 }
   0xe   : > { %s648_s14 = sshll.u32 %s1079_s13, 1  ;;  %s671_s6 = sshll.u32 %s1079_s13, 7 }
   0xf   : > { %s739_s17 = scalar_lea.vmem %s1075_s0, %s648_s14  ;;  %s906_s10 = scalar_lea.vmem %s1077_s2, %s671_s6 }
  0x10   : > { %v164_v6 = vld [vmem:[%s739_s17] sm:$0x3]  ;;  %v652_v18 = vld [vmem:[%s739_s17 + $0x2] sm:$0x3] }
  0x11   : > { %v743_v7 = vrot.slane %v164_v6, %v733_v4  ;;  %v749_v8 = vrot.slane %v164_v6, %v172_v5  ;;  %v777_v19 = vrot.slane %v652_v18, %v172_v5  ;;  %v780_v20 = vrot.slane %v652_v18, %v733_v4 }
  0x13   : > { %185 = vrot.lane.b32.xlu1 %v743_v7, %s700_s18  ;;  %176 = vrot.lane.b32.xlu0 %v743_v7, %s701_s19 }
  0x17   : > { %187 = vrot.lane.b32.xlu1 %v749_v8, %s700_s18  ;;  %178 = vrot.lane.b32.xlu0 %v749_v8, %s701_s19 }
  0x1b   : > { %206 = vperm.xlu1 %686, %v151_v9   ;;  %196 = vperm.xlu0 %685, %v149_v10  }
  0x1f   : > { %216 = vperm.xlu1 %686, %v153_v11   ;;  %211 = vperm.xlu0 %685, %v152_v12  }
  0x23   : > { %226 = vperm.xlu1 %686, %v155_v13   ;;  %221 = vperm.xlu0 %685, %v154_v14  }
  0x27   : > { %687 = vset.pattern.permute.xlu1 %v702_v16  ;;  %231 = vperm.xlu0 %685, %v156_v15  }
  0x28   : > { %259 = vperm.xlu1 %687, %v149_v10  }
  0x2b   : > { %688 = vset.pattern.permute.xlu0 %v702_v16 }
  0x2c   : > { %267 = vperm.xlu1 %687, %v151_v9   ;;  %263 = vperm.xlu0 %688, %v150_v0  }
  0x30   : > { %271 = vperm.xlu1 %687, %v152_v12   ;;  %275 = vperm.xlu0 %688, %v153_v11  }
  0x34   : > { %279 = vperm.xlu1 %687, %v154_v14   ;;  %283 = vperm.xlu0 %688, %v155_v13  }
  0x38   : > { %287 = vperm.xlu1 %687, %v156_v15   ;;  %689 = vset.pattern.permute.xlu0 %v703_v17 }
  0x39   : > { %323 = vperm.xlu0 %689, %v149_v10  }
  0x3c   : > { %690 = vset.pattern.permute.xlu1 %v703_v17 }
  0x3d   : > { %327 = vperm.xlu1 %690, %v150_v0   ;;  %335 = vperm.xlu0 %689, %v152_v12  }
  0x41   : > { %331 = vperm.xlu1 %690, %v151_v9   ;;  %343 = vperm.xlu0 %689, %v154_v14  }
  0x45   : > { %339 = vperm.xlu1 %690, %v153_v11   ;;  %351 = vperm.xlu0 %689, %v156_v15  }
  0x49   : > { %347 = vperm.xlu1 %690, %v155_v13   ;;  %441 = vrot.lane.b32.xlu0 %v777_v19, %s701_s19 }
  0x4d   : > { %439 = vrot.lane.b32.xlu1 %v780_v20, %s701_s19  ;;  %449 = vrot.lane.b32.xlu0 %v777_v19, %s700_s18 }
  0x51   : > { %447 = vrot.lane.b32.xlu1 %v780_v20, %s700_s18 }
  0x85   : > { %v177_v22 = vpop.permute.xlu0 %176 }
  0x86   : > { %v790_v21 = vpop.permute.xlu1 %201 }
  0x89   : > { %v179_v24 = vpop.permute.xlu0 %178 }
  0x8a   : > { %v186_v23 = vpop.permute.xlu1 %185  ;;  %v182_v35 = vsel %vm180_vm0, %v179_v24, %v177_v22  ;;  %v181_v37 = vsel %vm180_vm0, %v177_v22, %v179_v24 }
  0x8b   : > { %v183_v38 = vsel %vm160_vm1, %v182_v35, 0.0  ;;  %v241_v43 = vrot.slane %v181_v37, %v733_v4 }
  0x8c   : > { %v237_v42 = vrot.slane %v183_v38, %v733_v4 }
  0x8d   : > { %v245_v49 = vmul.f32 %v241_v43, %v790_v21 }
  0x8e   : > { %v188_v25 = vpop.permute.xlu1 %187  ;;  %v244_v48 = vmul.f32 %v237_v42, %v790_v21 }
  0x8f   : > { %v191_v41 = vsel %vm189_vm2, %v188_v25, %v186_v23  ;;  %v190_v46 = vsel %vm189_vm2, %v186_v23, %v188_v25 }
  0x90   : > { %v193_v47 = vsel %vm163_vm3, %v191_v41, 0.0  ;;  %v843_v50 = vrot.slane %v190_v46, %v733_v4 }
  0x91   : > { %v846_v51 = vrot.slane %v193_v47, %v733_v4 }
  0x9a   : > { %v792_v26 = vpop.permute.xlu1 %206  ;;  %v794_v27 = vpop.permute.xlu0 %196 }
  0x9b   : > { %v246_v52 = vmul.f32 %v237_v42, %v792_v26  ;;  %v247_v53 = vmul.f32 %v241_v43, %v792_v26  ;;  %v242_v56 = vmul.f32 %v237_v42, %v794_v27  ;;  %v243_v57 = vmul.f32 %v241_v43, %v794_v27 }
  0x9e   : > { %v796_v28 = vpop.permute.xlu1 %216  ;;  %v798_v29 = vpop.permute.xlu0 %211 }
  0x9f   : > { %v250_v58 = vmul.f32 %v237_v42, %v796_v28  ;;  %v251_v59 = vmul.f32 %v241_v43, %v796_v28  ;;  %v248_v60 = vmul.f32 %v237_v42, %v798_v29  ;;  %v249_v61 = vmul.f32 %v241_v43, %v798_v29 }
  0xa2   : > { %v803_v31 = vpop.permute.xlu1 %226  ;;  %v805_v32 = vpop.permute.xlu0 %221 }
  0xa3   : > { %v865_v0 = vmul.f32 %v237_v42, %v803_v31  ;;  %v868_v1 = vmul.f32 %v241_v43, %v803_v31  ;;  %v252_v5 = vmul.f32 %v237_v42, %v805_v32  ;;  %v253_v6 = vmul.f32 %v241_v43, %v805_v32 }
  0xa6   : > { %v808_v33 = vpop.permute.xlu0 %231 }
  0xa7   : > { %v810_v34 = vpop.permute.xlu1 %259  ;;  %v256_v9 = vmul.f32 %v237_v42, %v808_v33  ;;  %v257_v10 = vmul.f32 %v241_v43, %v808_v33 }
  0xa8   : > { %v290_v62 = vmul.f32 %v810_v34, %v743_v7  ;;  %v291_v63 = vmul.f32 %v810_v34, %v749_v8 }
  0xaa   : > { %v306_v17 = vadd.f32 %v290_v62, %v242_v56  ;;  %v307_v18 = vadd.f32 %v291_v63, %v243_v57 }
  0xab   : > { %v823_v39 = vpop.permute.xlu1 %267  ;;  %v825_v40 = vpop.permute.xlu0 %263 }
  0xac   : > { %v294_v2 = vmul.f32 %v823_v39, %v743_v7  ;;  %v295_v3 = vmul.f32 %v823_v39, %v749_v8  ;;  %v292_v12 = vmul.f32 %v825_v40, %v743_v7  ;;  %v293_v13 = vmul.f32 %v825_v40, %v749_v8 }
  0xae   : > { %v310_v24 = vadd.f32 %v294_v2, %v246_v52  ;;  %v311_v25 = vadd.f32 %v295_v3, %v247_v53  ;;  %v308_v46 = vadd.f32 %v292_v12, %v244_v48  ;;  %v309_v47 = vadd.f32 %v293_v13, %v245_v49 }
  0xaf   : > { %v832_v44 = vpop.permute.xlu1 %271  ;;  %v834_v45 = vpop.permute.xlu0 %275 }
  0xb0   : > { %v296_v14 = vmul.f32 %v832_v44, %v743_v7  ;;  %v297_v15 = vmul.f32 %v832_v44, %v749_v8  ;;  %v298_v35 = vmul.f32 %v834_v45, %v743_v7  ;;  %v299_v37 = vmul.f32 %v834_v45, %v749_v8 }
  0xb2   : > { %v312_v52 = vadd.f32 %v296_v14, %v248_v60  ;;  %v313_v53 = vadd.f32 %v297_v15, %v249_v61 }
  0xb3   : > { %v850_v54 = vpop.permute.xlu1 %279  ;;  %v852_v55 = vpop.permute.xlu0 %283 }
  0xb4   : > { %v300_v38 = vmul.f32 %v850_v54, %v743_v7  ;;  %v301_v41 = vmul.f32 %v850_v54, %v749_v8 }
  0xb6   : > { %v316_v60 = vadd.f32 %v300_v38, %v252_v5  ;;  %v317_v61 = vadd.f32 %v301_v41, %v253_v6 }
  0xb7   : > { %v878_v11 = vpop.permute.xlu1 %287 }
  0xb8   : > { %v888_v16 = vpop.permute.xlu0 %323  ;;  %v304_v14 = vmul.f32 %v878_v11, %v743_v7 }
  0xb9   : > { %v362_v22 = vmul.f32 %v843_v50, %v888_v16  ;;  %v363_v23 = vmul.f32 %v846_v51, %v888_v16 }
  0xbb   : > { %v378_v42 = vadd.f32 %v362_v22, %v306_v17  ;;  %v379_v43 = vadd.f32 %v363_v23, %v307_v18  ;;  %v314_v17 = vadd.f32 %v298_v35, %v250_v58  ;;  %v315_v18 = vadd.f32 %v299_v37, %v251_v59 }
  0xbc   : > { %v908_v56 = vpop.permute.xlu1 %327  ;;  %v910_v57 = vpop.permute.xlu0 %335  ;;  %v305_v58 = vmul.f32 %v878_v11, %v749_v8 }
  0xbd   : > { %v394_v62 = vmax.f32 %v378_v42, 0.0  ;;  %v395_v63 = vmax.f32 %v379_v43, 0.0  ;;  %v364_v2 = vmul.f32 %v843_v50, %v908_v56  ;;  %v365_v3 = vmul.f32 %v846_v51, %v908_v56 }
  0xbe   : > { %v368_v48 = vmul.f32 %v843_v50, %v910_v57  ;;  %v369_v49 = vmul.f32 %v846_v51, %v910_v57 }
  0xbf   : > { %410 = vst [vmem:[%s906_s10] sm:$0xff] %v394_v62  ;;  %411 = vst [vmem:[%s906_s10 + $0x8] sm:$0xff] %v395_v63  ;;  %v380_v12 = vadd.f32 %v364_v2, %v308_v46  ;;  %v381_v13 = vadd.f32 %v365_v3, %v309_v47  ;;  %v302_v46 = vmul.f32 %v852_v55, %v743_v7 }
  0xc0   : > { %v384_v59 = vadd.f32 %v368_v48, %v312_v52  ;;  %v385_v15 = vadd.f32 %v369_v49, %v313_v53  ;;  %v926_v22 = vpop.permute.xlu1 %331  ;;  %v928_v23 = vpop.permute.xlu0 %343  ;;  %v303_v47 = vmul.f32 %v852_v55, %v749_v8  ;;  %v320_v62 = vadd.f32 %v304_v14, %v256_v9 }
  0xc1   : > { %v396_v5 = vmax.f32 %v380_v12, 0.0  ;;  %v397_v6 = vmax.f32 %v381_v13, 0.0  ;;  %v366_v35 = vmul.f32 %v843_v50, %v926_v22  ;;  %v367_v37 = vmul.f32 %v846_v51, %v926_v22 }
  0xc2   : > { %v400_v38 = vmax.f32 %v384_v59, 0.0  ;;  %v401_v41 = vmax.f32 %v385_v15, 0.0  ;;  %v372_v42 = vmul.f32 %v843_v50, %v928_v23  ;;  %v373_v43 = vmul.f32 %v846_v51, %v928_v23 }
  0xc3   : > { %412 = vst [vmem:[%s906_s10 + $0x10] sm:$0xff] %v396_v5  ;;  %413 = vst [vmem:[%s906_s10 + $0x18] sm:$0xff] %v397_v6  ;;  %v382_v52 = vadd.f32 %v366_v35, %v310_v24  ;;  %v383_v53 = vadd.f32 %v367_v37, %v311_v25  ;;  %v321_v63 = vadd.f32 %v305_v58, %v257_v10 }
  0xc4   : > { %416 = vst [vmem:[%s906_s10 + $0x30] sm:$0xff] %v400_v38  ;;  %417 = vst [vmem:[%s906_s10 + $0x38] sm:$0xff] %v401_v41  ;;  %v388_v2 = vadd.f32 %v372_v42, %v316_v60  ;;  %v389_v3 = vadd.f32 %v373_v43, %v317_v61  ;;  %v946_v48 = vpop.permute.xlu1 %339  ;;  %v948_v49 = vpop.permute.xlu0 %351  ;;  %v318_v14 = vadd.f32 %v302_v46, %v865_v0 }
  0xc5   : > { %v398_v7 = vmax.f32 %v382_v52, 0.0  ;;  %v399_v8 = vmax.f32 %v383_v53, 0.0  ;;  %v370_v24 = vmul.f32 %v843_v50, %v946_v48  ;;  %v371_v9 = vmul.f32 %v846_v51, %v946_v48 }
  0xc6   : > { %v404_v10 = vmax.f32 %v388_v2, 0.0  ;;  %v405_v25 = vmax.f32 %v389_v3, 0.0  ;;  %v376_v60 = vmul.f32 %v843_v50, %v948_v49  ;;  %v377_v61 = vmul.f32 %v846_v51, %v948_v49 }
  0xc7   : > { %414 = vst [vmem:[%s906_s10 + $0x20] sm:$0xff] %v398_v7  ;;  %415 = vst [vmem:[%s906_s10 + $0x28] sm:$0xff] %v399_v8  ;;  %v386_v12 = vadd.f32 %v370_v24, %v314_v17  ;;  %v387_v13 = vadd.f32 %v371_v9, %v315_v18  ;;  %v319_v58 = vadd.f32 %v303_v47, %v868_v1 }
  0xc8   : > { %420 = vst [vmem:[%s906_s10 + $0x50] sm:$0xff] %v404_v10  ;;  %421 = vst [vmem:[%s906_s10 + $0x58] sm:$0xff] %v405_v25  ;;  %v392_v59 = vadd.f32 %v376_v60, %v320_v62  ;;  %v393_v15 = vadd.f32 %v377_v61, %v321_v63  ;;  %v964_v5 = vpop.permute.xlu1 %347  ;;  %v442_v38 = vpop.permute.xlu0 %441  ;;  %v479_v42 = vmul.f32 %v780_v20, %v810_v34 }
  0xc9   : > { %v402_v6 = vmax.f32 %v386_v12, 0.0  ;;  %v403_v35 = vmax.f32 %v387_v13, 0.0  ;;  %v374_v17 = vmul.f32 %v843_v50, %v964_v5  ;;  %v375_v18 = vmul.f32 %v846_v51, %v964_v5 }
  0xca   : > { %v408_v37 = vmax.f32 %v392_v59, 0.0  ;;  %v409_v0 = vmax.f32 %v393_v15, 0.0  ;;  %v480_v43 = vmul.f32 %v777_v19, %v810_v34  ;;  %v483_v46 = vmul.f32 %v780_v20, %v823_v39 }
  0xcb   : > { %418 = vst [vmem:[%s906_s10 + $0x40] sm:$0xff] %v402_v6  ;;  %419 = vst [vmem:[%s906_s10 + $0x48] sm:$0xff] %v403_v35  ;;  %v390_v1 = vadd.f32 %v374_v17, %v318_v14  ;;  %v391_v41 = vadd.f32 %v375_v18, %v319_v58  ;;  %v484_v50 = vmul.f32 %v777_v19, %v823_v39 }
  0xcc   : > { %424 = vst [vmem:[%s906_s10 + $0x70] sm:$0xff] %v408_v37  ;;  %425 = vst [vmem:[%s906_s10 + $0x78] sm:$0xff] %v409_v0  ;;  %v440_v51 = vpop.permute.xlu1 %439  ;;  %v481_v34 = vmul.f32 %v780_v20, %v825_v40  ;;  %v482_v63 = vmul.f32 %v777_v19, %v825_v40  ;;  %v485_v3 = vmul.f32 %v780_v20, %v832_v44  ;;  %v450_v18 = vpop.permute.xlu0 %449 }
  0xcd   : > { %v406_v47 = vmax.f32 %v390_v1, 0.0  ;;  %v407_v52 = vmax.f32 %v391_v41, 0.0  ;;  %v443_v53 = vsel %vm180_vm0, %v440_v51, %v442_v38  ;;  %v444_v62 = vsel %vm180_vm0, %v442_v38, %v440_v51 }
  0xce   : > { %v445_v39 = vsel %vm160_vm1, %v444_v62, 0.0  ;;  %v462_v2 = vrot.slane %v443_v53, %v733_v4  ;;  %v486_v7 = vmul.f32 %v777_v19, %v832_v44  ;;  %v487_v8 = vmul.f32 %v780_v20, %v834_v45 }
  0xcf   : > { %422 = vst [vmem:[%s906_s10 + $0x60] sm:$0xff] %v406_v47  ;;  %423 = vst [vmem:[%s906_s10 + $0x68] sm:$0xff] %v407_v52  ;;  %v458_v24 = vrot.slane %v445_v39, %v733_v4  ;;  %v488_v40 = vmul.f32 %v777_v19, %v834_v45  ;;  %v489_v9 = vmul.f32 %v780_v20, %v850_v54 }
  0xd0   : > { %v464_v10 = vmul.f32 %v462_v2, %v794_v27  ;;  %v468_v25 = vmul.f32 %v462_v2, %v792_v26  ;;  %v490_v44 = vmul.f32 %v777_v19, %v850_v54  ;;  %v491_v60 = vmul.f32 %v780_v20, %v852_v55  ;;  %v448_v17 = vpop.permute.xlu1 %447 }
  0xd1   : > { %v463_v61 = vmul.f32 %v458_v24, %v794_v27  ;;  %v467_v12 = vmul.f32 %v458_v24, %v792_v26  ;;  %v492_v45 = vmul.f32 %v777_v19, %v852_v55  ;;  %v493_v13 = vmul.f32 %v780_v20, %v878_v11 }
  0xd2   : > { %v465_v14 = vmul.f32 %v458_v24, %v790_v21  ;;  %v466_v58 = vmul.f32 %v462_v2, %v790_v21  ;;  %v494_v54 = vmul.f32 %v777_v19, %v878_v11  ;;  %v469_v59 = vmul.f32 %v458_v24, %v798_v29 }
  0xd3   : > { %v470_v15 = vmul.f32 %v462_v2, %v798_v29  ;;  %v471_v27 = vmul.f32 %v458_v24, %v796_v28  ;;  %v472_v26 = vmul.f32 %v462_v2, %v796_v28  ;;  %v473_v55 = vmul.f32 %v458_v24, %v805_v32 }
  0xd4   : > { %v474_v6 = vmul.f32 %v462_v2, %v805_v32  ;;  %v475_v20 = vmul.f32 %v458_v24, %v803_v31  ;;  %v476_v35 = vmul.f32 %v462_v2, %v803_v31  ;;  %v477_v21 = vmul.f32 %v458_v24, %v808_v33 }
  0xd5   : > { %v478_v19 = vmul.f32 %v462_v2, %v808_v33  ;;  %v495_v11 = vadd.f32 %v479_v42, %v463_v61  ;;  %v496_v29 = vadd.f32 %v480_v43, %v464_v10  ;;  %v497_v37 = vadd.f32 %v481_v34, %v465_v14 }
  0xd6   : > { %v498_v0 = vadd.f32 %v482_v63, %v466_v58  ;;  %v499_v38 = vadd.f32 %v483_v46, %v467_v12  ;;  %v500_v28 = vadd.f32 %v484_v50, %v468_v25  ;;  %v501_v1 = vadd.f32 %v485_v3, %v469_v59 }
  0xd7   : > { %v502_v41 = vadd.f32 %v486_v7, %v470_v15  ;;  %v503_v51 = vadd.f32 %v487_v8, %v471_v27  ;;  %v504_v32 = vadd.f32 %v488_v40, %v472_v26  ;;  %v505_v47 = vadd.f32 %v489_v9, %v473_v55 }
  0xd8   : > { %v451_v31 = vsel %vm189_vm2, %v448_v17, %v450_v18  ;;  %v452_v52 = vsel %vm189_vm2, %v450_v18, %v448_v17  ;;  %v506_v33 = vadd.f32 %v490_v44, %v474_v6  ;;  %v507_v42 = vadd.f32 %v491_v60, %v475_v20 }
  0xd9   : > { %v454_v43 = vsel %vm163_vm3, %v452_v52, 0.0  ;;  %v514_v53 = vrot.slane %v451_v31, %v733_v4  ;;  %v508_v46 = vadd.f32 %v492_v45, %v476_v35  ;;  %v509_v50 = vadd.f32 %v493_v13, %v477_v21 }
  0xda   : > { %v510_v62 = vadd.f32 %v494_v54, %v478_v19  ;;  %v518_v34 = vrot.slane %v454_v43, %v733_v4 }
  0xdb   : > { %v519_v63 = vmul.f32 %v514_v53, %v888_v16  ;;  %v521_v39 = vmul.f32 %v514_v53, %v908_v56  ;;  %v523_v2 = vmul.f32 %v514_v53, %v926_v22  ;;  %v525_v30 = vmul.f32 %v514_v53, %v910_v57 }
  0xdc   : > { %v520_v3 = vmul.f32 %v518_v34, %v888_v16  ;;  %v522_v36 = vmul.f32 %v518_v34, %v908_v56  ;;  %v524_v7 = vmul.f32 %v518_v34, %v926_v22  ;;  %v526_v8 = vmul.f32 %v518_v34, %v910_v57 }
  0xdd   : > { %v527_v24 = vmul.f32 %v514_v53, %v946_v48  ;;  %v528_v4 = vmul.f32 %v518_v34, %v946_v48  ;;  %v529_v40 = vmul.f32 %v514_v53, %v928_v23  ;;  %v530_v9 = vmul.f32 %v518_v34, %v928_v23 }
  0xde   : > { %v531_v10 = vmul.f32 %v514_v53, %v964_v5  ;;  %v532_v25 = vmul.f32 %v518_v34, %v964_v5  ;;  %v533_v16 = vmul.f32 %v514_v53, %v948_v49  ;;  %v534_v56 = vmul.f32 %v518_v34, %v948_v49 }
  0xdf   : > { %v535_v44 = vadd.f32 %v519_v63, %v495_v11  ;;  %v536_v22 = vadd.f32 %v520_v3, %v496_v29  ;;  %v537_v60 = vadd.f32 %v521_v39, %v497_v37  ;;  %v538_v57 = vadd.f32 %v522_v36, %v498_v0 }
  0xe0   : > { %v539_v61 = vadd.f32 %v523_v2, %v499_v38  ;;  %v540_v12 = vadd.f32 %v524_v7, %v500_v28  ;;  %v541_v45 = vadd.f32 %v525_v30, %v501_v1  ;;  %v542_v48 = vadd.f32 %v526_v8, %v502_v41 }
  0xe1   : > { %v543_v13 = vadd.f32 %v527_v24, %v503_v51  ;;  %v544_v14 = vadd.f32 %v528_v4, %v504_v32  ;;  %v545_v58 = vadd.f32 %v529_v40, %v505_v47  ;;  %v546_v23 = vadd.f32 %v530_v9, %v506_v33 }
  0xe2   : > { %v547_v54 = vadd.f32 %v531_v10, %v507_v42  ;;  %v548_v59 = vadd.f32 %v532_v25, %v508_v46  ;;  %v549_v5 = vadd.f32 %v533_v16, %v509_v50  ;;  %v550_v15 = vadd.f32 %v534_v56, %v510_v62 }
  0xe3   : > { %v551_v49 = vmax.f32 %v535_v44, 0.0  ;;  %v552_v27 = vmax.f32 %v536_v22, 0.0  ;;  %v553_v26 = vmax.f32 %v537_v60, 0.0  ;;  %v554_v55 = vmax.f32 %v538_v57, 0.0 }
  0xe4   : > { %v555_v6 = vmax.f32 %v539_v61, 0.0  ;;  %v556_v20 = vmax.f32 %v540_v12, 0.0  ;;  %v557_v35 = vmax.f32 %v541_v45, 0.0  ;;  %v558_v21 = vmax.f32 %v542_v48, 0.0 }
  0xe5   : > { %v559_v19 = vmax.f32 %v543_v13, 0.0  ;;  %v560_v11 = vmax.f32 %v544_v14, 0.0  ;;  %v561_v17 = vmax.f32 %v545_v58, 0.0  ;;  %v562_v18 = vmax.f32 %v546_v23, 0.0  ;;  %653 = vst [vmem:[%s906_s10 + $0x80] sm:$0xff] %v551_v49  ;;  %654 = vst [vmem:[%s906_s10 + $0x88] sm:$0xff] %v552_v27 }
  0xe6   : > { %655 = vst [vmem:[%s906_s10 + $0x90] sm:$0xff] %v553_v26  ;;  %656 = vst [vmem:[%s906_s10 + $0x98] sm:$0xff] %v554_v55  ;;  %v563_v29 = vmax.f32 %v547_v54, 0.0  ;;  %v564_v37 = vmax.f32 %v548_v59, 0.0  ;;  %v565_v0 = vmax.f32 %v549_v5, 0.0  ;;  %v566_v38 = vmax.f32 %v550_v15, 0.0 }
  0xe7   : > { %657 = vst [vmem:[%s906_s10 + $0xa0] sm:$0xff] %v555_v6  ;;  %658 = vst [vmem:[%s906_s10 + $0xa8] sm:$0xff] %v556_v20 }
  0xe8   : > { %659 = vst [vmem:[%s906_s10 + $0xb0] sm:$0xff] %v557_v35  ;;  %660 = vst [vmem:[%s906_s10 + $0xb8] sm:$0xff] %v558_v21 }
  0xe9   : > { %661 = vst [vmem:[%s906_s10 + $0xc0] sm:$0xff] %v559_v19  ;;  %662 = vst [vmem:[%s906_s10 + $0xc8] sm:$0xff] %v560_v11 }
  0xea   : > { %663 = vst [vmem:[%s906_s10 + $0xd0] sm:$0xff] %v561_v17  ;;  %664 = vst [vmem:[%s906_s10 + $0xd8] sm:$0xff] %v562_v18 }
  0xeb   : > { %665 = vst [vmem:[%s906_s10 + $0xe0] sm:$0xff] %v563_v29  ;;  %666 = vst [vmem:[%s906_s10 + $0xe8] sm:$0xff] %v564_v37 }
  0xec   : > { %667 = vst [vmem:[%s906_s10 + $0xf0] sm:$0xff] %v565_v0  ;;  %668 = vst [vmem:[%s906_s10 + $0xf8] sm:$0xff] %v566_v38 }
  0xed PF: > { %s12_s9 = sadd.s32 1, %s697_s9  }
  0xee   : > { %p9_p4 = scmp.ge.s32.totalorder %s12_s9, 4  }
  0xf0   :  { %11 = sbr.rel (!%p9_p4) target bundleno = 1 (0x1), region = 60 }

// kernel: dncnn_forward.6
= control target key start
LH: loop header
LB: loop body
LE: loop exit
PB: predicated region body
PF: predicated region fallthrough
CT: control target
= control target key end

     0   :  { %s1548_s15 = smov 0   ;;  %s2160_s0 = inlined_call_operand.vmem [shape: f32[4,64,256], index: 0, kind: input, shape index: {}]   ;;  %s2161_s1 = inlined_call_operand.vmem [shape: f32[64,192], index: 1, kind: input, shape index: {}]   ;;  %s2162_s2 = inlined_call_operand.vmem [shape: f32[4,64,256], index: 2, kind: output, shape index: {0}]   ;;  %s2163_s3 = inlined_call_operand.vmem [shape: f32[2,64,1], index: 3, kind: output, shape index: {1}]   ;;  %s2164_s4 = inlined_call_operand.vmem [shape: f32[2,64,1], index: 4, kind: output, shape index: {2}]  }
   0x1 LB: > { %s1554_s16 = sadd.s32 4294967295, %s1519_s15   ;;  %p1134_p0 = scmp.ge.s32.totalorder %s1519_s15, 1  ;;  %s1519_s15 = sphi %s1548_s15, %s15_s15  }
   0x2   : > { %p169_p1 = scmp.lt.s32.totalorder %s1519_s15, 3 }
   0x4   : > { %p170_p2 = pnand %p1134_p0, %p169_p1 }
   0x5   : > { %s1135_s17 = sshll.u32 (!%p170_p2), %s1554_s16, 1  ;;  %s1521_s22 = smov (!%p170_p2), 1   ;;  %vm400_vm0 = vcmask (!%p170_p2), 523264   ;;  %vm989_vm7 = vcmask (!%p170_p2), 7168  }
   0x6   : > { %173 = sbr.rel (%p170_p2) target bundleno = 628 (0x274), region = 28  ;;  %p208_p3 = scmp.lt.s32.totalorder (!%p170_p2), %s1135_s17, 3 }
   0x7   : > { %s1522_s23 = smov (!%p170_p2), 127   ;;  %p221_p4 = scmp.lt.s32.totalorder (!%p170_p2), %s1554_s16, 1 }
   0xd   : > { %s2176_s17 = smov (!%p208_p3, %s1135_s17), 3  ;;  %s2178_s16 = smov (!%p221_p4, %s1554_s16), 1 }
   0xe   : > { %s1227_s18 = sshll.u32 %s2176_s17, 7  ;;  %s1229_s17 = sshll.u32 %s2178_s16, 6 }
   0xf   : > { %s1567_s21 = scalar_lea.vmem %s2160_s0, %s1227_s18  ;;  %s2061_s10 = scalar_lea.vmem %s2162_s2, %s1227_s18 }
  0x10   : > { %v1570_v0 = vld [vmem:[%s1567_s21 + $0x80] sm:$0xff]  ;;  %v1573_v1 = vld [vmem:[%s1567_s21 + $0x90] sm:$0xff]  ;;  %v1586_v5 = vld [vmem:[%s1567_s21 + $0x88] sm:$0xff]  ;;  %s2118_s12 = scalar_lea.vmem %s2163_s3, %s1229_s17  ;;  %s2125_s16 = scalar_lea.vmem %s2164_s4, %s1229_s17 }
  0x11   : > { %v1576_v2 = vld [vmem:[%s1567_s21] sm:$0xff]  ;;  %v1580_v3 = vpack.i.bf16 %v1573_v1, %v1570_v0  ;;  %v1583_v4 = vld [vmem:[%s1567_s21 + $0x10] sm:$0xff]  ;;  %v1589_v6 = vld [vmem:[%s1567_s21 + $0x98] sm:$0xff]  ;;  %v1309_v53 = vpack.c.bf16 %v1573_v1, %v1570_v0 }
  0x12   : > { %v1593_v7 = vpack.i.bf16 %v1583_v4, %v1576_v2  ;;  %v1596_v8 = vld [vmem:[%s1567_s21 + $0x8] sm:$0xff]  ;;  %v1599_v9 = vld [vmem:[%s1567_s21 + $0x18] sm:$0xff]  ;;  %v1605_v10 = vpack.i.bf16 %v1589_v6, %v1586_v5  ;;  %v1618_v14 = vld [vmem:[%s1567_s21 + $0x20] sm:$0xff]  ;;  %v1253_v45 = vpack.c.bf16 %v1583_v4, %v1576_v2  ;;  %v1307_v50 = vpack.c.bf16 %v1589_v6, %v1586_v5 }
  0x13   : > { %1364 = vrot.lane.b32.xlu1 %v1580_v3, %s1521_s22  ;;  %v1358_v11 = vpack.i.bf16 %v1599_v9, %v1596_v8  ;;  %v1612_v12 = vld [vmem:[%s1567_s21 + $0x28] sm:$0xff]  ;;  %v1615_v13 = vld [vmem:[%s1567_s21 + $0x38] sm:$0xff]  ;;  %v1621_v15 = vld [vmem:[%s1567_s21 + $0x30] sm:$0xff]  ;;  %v1251_v41 = vpack.c.bf16 %v1599_v9, %v1596_v8 }
  0x14   : > { %1354 = vrot.lane.b32.xlu0 %v1593_v7, %s1521_s22  ;;  %v1627_v16 = vpack.i.bf16 %v1615_v13, %v1612_v12  ;;  %v1632_v17 = vpack.i.bf16 %v1621_v15, %v1618_v14  ;;  %v1635_v18 = vld [vmem:[%s1567_s21 + $0xa8] sm:$0xff]  ;;  %v1638_v19 = vld [vmem:[%s1567_s21 + $0xb8] sm:$0xff]  ;;  %v1641_v20 = vld [vmem:[%s1567_s21 + $0xa0] sm:$0xff]  ;;  %v1255_v49 = vpack.c.bf16 %v1615_v13, %v1612_v12  ;;  %v1257_v52 = vpack.c.bf16 %v1621_v15, %v1618_v14 }
  0x15   : > { %v1644_v21 = vld [vmem:[%s1567_s21 + $0xb0] sm:$0xff]  ;;  %v1388_v22 = vpack.i.bf16 %v1638_v19, %v1635_v18  ;;  %v1655_v24 = vld [vmem:[%s1567_s21 + $0x48] sm:$0xff]  ;;  %v1658_v25 = vld [vmem:[%s1567_s21 + $0x58] sm:$0xff]  ;;  %v1311_v55 = vpack.c.bf16 %v1638_v19, %v1635_v18 }
  0x16   : > { %v1383_v23 = vpack.i.bf16 %v1644_v21, %v1641_v20  ;;  %v1661_v26 = vld [vmem:[%s1567_s21 + $0x40] sm:$0xff]  ;;  %v1664_v27 = vld [vmem:[%s1567_s21 + $0x50] sm:$0xff]  ;;  %v1398_v28 = vpack.i.bf16 %v1658_v25, %v1655_v24  ;;  %v1673_v30 = vld [vmem:[%s1567_s21 + $0xc8] sm:$0xff]  ;;  %v1259_v54 = vpack.c.bf16 %v1658_v25, %v1655_v24  ;;  %v1313_v57 = vpack.c.bf16 %v1644_v21, %v1641_v20 }
  0x17   : > { %1369 = vrot.lane.b32.xlu1 %v1605_v10, %s1521_s22  ;;  %v1393_v29 = vpack.i.bf16 %v1664_v27, %v1661_v26  ;;  %v1676_v31 = vld [vmem:[%s1567_s21 + $0xd8] sm:$0xff]  ;;  %v1679_v32 = vld [vmem:[%s1567_s21 + $0xc0] sm:$0xff]  ;;  %v1682_v33 = vld [vmem:[%s1567_s21 + $0xd0] sm:$0xff]  ;;  %v1261_v56 = vpack.c.bf16 %v1664_v27, %v1661_v26 }
  0x18   : > { %1359 = vrot.lane.b32.xlu0 %v1358_v11, %s1521_s22  ;;  %v1408_v34 = vpack.i.bf16 %v1676_v31, %v1673_v30  ;;  %v1403_v35 = vpack.i.bf16 %v1682_v33, %v1679_v32  ;;  %v1691_v36 = vld [vmem:[%s1567_s21 + $0x68] sm:$0xff]  ;;  %v1694_v37 = vld [vmem:[%s1567_s21 + $0x78] sm:$0xff]  ;;  %v1697_v38 = vld [vmem:[%s1567_s21 + $0x60] sm:$0xff] }
  0x19   : > { %v1700_v39 = vld [vmem:[%s1567_s21 + $0x70] sm:$0xff]  ;;  %v1418_v40 = vpack.i.bf16 %v1694_v37, %v1691_v36  ;;  %v1711_v43 = vld [vmem:[%s1567_s21 + $0xe8] sm:$0xff]  ;;  %v1714_v44 = vld [vmem:[%s1567_s21 + $0xf8] sm:$0xff] }
  0x1a   : > { %v1413_v42 = vpack.i.bf16 %v1700_v39, %v1697_v38  ;;  %v1719_v46 = vld [vmem:[%s1567_s21 + $0xe0] sm:$0xff]  ;;  %v1722_v47 = vld [vmem:[%s1567_s21 + $0xf0] sm:$0xff]  ;;  %v1428_v48 = vpack.i.bf16 %v1714_v44, %v1711_v43 }
  0x1b   : > { %1379 = vrot.lane.b32.xlu1 %v1627_v16, %s1521_s22  ;;  %v1423_v51 = vpack.i.bf16 %v1722_v47, %v1719_v46  ;;  %v242_v26 = vld [vmem:[%s2161_s1 + $0x20] sm:$0xff] }
  0x1c   : > { %1374 = vrot.lane.b32.xlu0 %v1632_v17, %s1521_s22 }
  0x1f   : > { %1389 = vrot.lane.b32.xlu1 %v1388_v22, %s1521_s22 }
  0x20   : > { %1384 = vrot.lane.b32.xlu0 %v1383_v23, %s1521_s22 }
  0x23   : > { %1399 = vrot.lane.b32.xlu1 %v1398_v28, %s1521_s22 }
  0x24   : > { %1394 = vrot.lane.b32.xlu0 %v1393_v29, %s1521_s22 }
  0x27   : > { %1409 = vrot.lane.b32.xlu1 %v1408_v34, %s1521_s22 }
  0x28   : > { %1404 = vrot.lane.b32.xlu0 %v1403_v35, %s1521_s22 }
  0x2b   : > { %1419 = vrot.lane.b32.xlu1 %v1418_v40, %s1521_s22 }
  0x2c   : > { %1414 = vrot.lane.b32.xlu0 %v1413_v42, %s1521_s22 }
  0x2f   : > { %1429 = vrot.lane.b32.xlu1 %v1428_v48, %s1521_s22 }
  0x30   : > { %1424 = vrot.lane.b32.xlu0 %v1423_v51, %s1521_s22 }
  0x33   : > { %1439 = vrot.lane.b32.xlu1 %v1358_v11, %s1522_s23 }
  0x34   : > { %1434 = vrot.lane.b32.xlu0 %v1593_v7, %s1522_s23  ;;  %v239_v7 = vld [vmem:[%s2161_s1 + $0x8] sm:$0xff] }
  0x35   : > { %1161 = vmatprep.mubr.msk.f32.mxu0 %vm400_vm0, %v239_v7  ;;  %1201 = vmatprep.mubr.msk.f32.mxu1 %vm400_vm0, %v239_v7 }
  0x37   : > { %1449 = vrot.lane.b32.xlu1 %v1605_v10, %s1522_s23 }
  0x38   : > { %1444 = vrot.lane.b32.xlu0 %v1580_v3, %s1522_s23  ;;  %v231_v3 = vlaneseq }
  0x3a   : > { %v1770_v11 = vand.u32 127, %v231_v3 }
  0x3b   : > { %1459 = vrot.lane.b32.xlu1 %v1627_v16, %s1522_s23 }
  0x3c   : > { %1454 = vrot.lane.b32.xlu0 %v1632_v17, %s1522_s23  ;;  %vm302_vm1 = vcmp.lt.s32.totalorder %v1770_v11, 1  ;;  %vm234_vm2 = vcmp.gt.s32.totalorder %v1770_v11, 0  ;;  %v233_v8 = vadd.s32 128, %v1770_v11  ;;  %vm367_vm4 = vcmp.lt.s32.totalorder %v1770_v11, 127  ;;  %v243_v11 = vld [vmem:[%s2161_s1 + $0x28] sm:$0xff] }
  0x3d   : > { %vm1793_vm3 = vmpackc.low %vm234_vm2, %vm234_vm2 }
  0x3e   : > { %vm237_vm5 = vcmp.lt.s32.totalorder %v233_v8, 255 }
  0x3f   : > { %1469 = vrot.lane.b32.xlu1 %v1388_v22, %s1522_s23  ;;  %vm1911_vm6 = vmpackc.low %vm237_vm5, %vm237_vm5 }
  0x40   : > { %1464 = vrot.lane.b32.xlu0 %v1383_v23, %s1522_s23 }
  0x43   : > { %1479 = vrot.lane.b32.xlu1 %v1398_v28, %s1522_s23 }
  0x44   : > { %1474 = vrot.lane.b32.xlu0 %v1393_v29, %s1522_s23 }
  0x47   : > { %1489 = vrot.lane.b32.xlu1 %v1408_v34, %s1522_s23 }
  0x48   : > { %1484 = vrot.lane.b32.xlu0 %v1403_v35, %s1522_s23 }
  0x4b   : > { %1499 = vrot.lane.b32.xlu1 %v1418_v40, %s1522_s23 }
  0x4c   : > { %1494 = vrot.lane.b32.xlu0 %v1413_v42, %s1522_s23 }
  0x4f   : > { %1509 = vrot.lane.b32.xlu1 %v1428_v48, %s1522_s23 }
  0x50   : > { %1504 = vrot.lane.b32.xlu0 %v1423_v51, %s1522_s23 }
  0x85   : > { %v1365_v10 = vpop.permute.xlu1 %1364 }
  0x86   : > { %v1355_v16 = vpop.permute.xlu0 %1354  ;;  %v1367_v22 = vunpack.i.h.bf16 %v1365_v10  ;;  %v1366_v23 = vunpack.i.l.bf16 %v1365_v10 }
  0x87   : > { %v1357_v35 = vunpack.i.h.bf16 %v1355_v16  ;;  %v1356_v40 = vunpack.i.l.bf16 %v1355_v16 }
  0x89   : > { %v1370_v17 = vpop.permute.xlu1 %1369 }
  0x8a   : > { %v1372_v28 = vunpack.i.h.bf16 %v1370_v17  ;;  %v1371_v29 = vunpack.i.l.bf16 %v1370_v17  ;;  %v1360_v34 = vpop.permute.xlu0 %1359 }
  0x8b   : > { %v1362_v42 = vunpack.i.h.bf16 %v1360_v34  ;;  %v1361_v48 = vunpack.i.l.bf16 %v1360_v34 }
  0x8c   : > { %v683_v51 = vsel %vm302_vm1, %v1366_v23, %v1371_v29  ;;  %v684_v7 = vsel %vm302_vm1, %v1367_v22, %v1372_v28  ;;  %v691_v3 = vsel %vm302_vm1, %v1371_v29, %v1366_v23  ;;  %v692_v63 = vsel %vm302_vm1, %v1372_v28, %v1367_v22 }
  0x8d   : > { %v1380_v10 = vpop.permute.xlu1 %1379  ;;  %v303_v17 = vsel %vm302_vm1, %v1356_v40, %v1361_v48  ;;  %v304_v16 = vsel %vm302_vm1, %v1357_v35, %v1362_v42  ;;  %v1287_v34 = vpack.c.bf16 %v684_v7, %v683_v51  ;;  %v311_v62 = vsel %vm302_vm1, %v1361_v48, %v1356_v40 }
  0x8e   : > { %v1382_v61 = vunpack.i.h.bf16 %v1380_v10  ;;  %v1381_v60 = vunpack.i.l.bf16 %v1380_v10  ;;  %v1375_v59 = vpop.permute.xlu0 %1374  ;;  %v1231_v58 = vpack.c.bf16 %v304_v16, %v303_v17  ;;  %v312_v23 = vsel %vm302_vm1, %v1362_v42, %v1357_v35 }
  0x8f   : > { %v1377_v28 = vunpack.i.h.bf16 %v1375_v59  ;;  %v1376_v29 = vunpack.i.l.bf16 %v1375_v59  ;;  %1288 = vmatprep.subr.bf16.mxu1 %v1287_v34  ;;  %v1233_v51 = vpack.c.bf16 %v312_v23, %v311_v62  ;;  %v1289_v7 = vpack.c.bf16 %v692_v63, %v691_v3 }
  0x90   : > { %1232 = vmatprep.subr.bf16.mxu0 %v1231_v58  ;;  %v2172_v22 = vpack.c.bf16 %v1682_v33, %v1679_v32 }
  0x91   : > { %v314_v40 = vsel %vm302_vm1, %v1382_v61, %v1377_v28  ;;  %v313_v48 = vsel %vm302_vm1, %v1381_v60, %v1376_v29  ;;  %1235 = vmatpush1.bf16.msk.msra.mxu0 %vm1793_vm3, %v1233_v51  ;;  %1291 = vmatpush1.bf16.msk.msra.mxu1 %vm1793_vm3, %v1289_v7  ;;  %v1390_v35 = vpop.permute.xlu1 %1389  ;;  %v305_v59 = vsel %vm302_vm1, %v1376_v29, %v1381_v60 }
  0x92   : > { %v1238_v42 = vpack.c.bf16 %v314_v40, %v313_v48  ;;  %v1392_v62 = vunpack.i.h.bf16 %v1390_v35  ;;  %v1391_v63 = vunpack.i.l.bf16 %v1390_v35  ;;  %v1385_v58 = vpop.permute.xlu0 %1384  ;;  %v306_v3 = vsel %vm302_vm1, %v1377_v28, %v1382_v61 }
  0x93   : > { %v1387_v10 = vunpack.i.h.bf16 %v1385_v58  ;;  %v1386_v17 = vunpack.i.l.bf16 %v1385_v58  ;;  %v1236_v16 = vpack.c.bf16 %v306_v3, %v305_v59 }
  0x95   : > { %v694_v34 = vsel %vm302_vm1, %v1392_v62, %v1387_v10  ;;  %v693_v23 = vsel %vm302_vm1, %v1391_v63, %v1386_v17  ;;  %1237 = vmatprep.subr.bf16.mxu0 %v1236_v16  ;;  %v1400_v51 = vpop.permute.xlu1 %1399  ;;  %v685_v60 = vsel %vm302_vm1, %v1386_v17, %v1391_v63  ;;  %v686_v29 = vsel %vm302_vm1, %v1387_v10, %v1392_v62 }
  0x96   : > { %v1294_v7 = vpack.c.bf16 %v694_v34, %v693_v23  ;;  %1240 = vmatpush1.bf16.msk.msra.mxu0 %vm1793_vm3, %v1238_v42  ;;  %v1402_v61 = vunpack.i.h.bf16 %v1400_v51  ;;  %v1401_v28 = vunpack.i.l.bf16 %v1400_v51  ;;  %v1395_v40 = vpop.permute.xlu0 %1394  ;;  %v1292_v48 = vpack.c.bf16 %v686_v29, %v685_v60 }
  0x97   : > { %v1397_v35 = vunpack.i.h.bf16 %v1395_v40  ;;  %v1396_v59 = vunpack.i.l.bf16 %v1395_v40 }
  0x98   : > { %1293 = vmatprep.subr.bf16.mxu1 %v1292_v48 }
  0x99   : > { %v316_v58 = vsel %vm302_vm1, %v1402_v61, %v1397_v35  ;;  %v315_v63 = vsel %vm302_vm1, %v1401_v28, %v1396_v59  ;;  %1296 = vmatpush1.bf16.msk.msra.mxu1 %vm1793_vm3, %v1294_v7  ;;  %v1410_v62 = vpop.permute.xlu1 %1409  ;;  %v307_v42 = vsel %vm302_vm1, %v1396_v59, %v1401_v28  ;;  %v308_v3 = vsel %vm302_vm1, %v1397_v35, %v1402_v61 }
  0x9a   : > { %v1243_v10 = vpack.c.bf16 %v316_v58, %v315_v63  ;;  %v1412_v17 = vunpack.i.h.bf16 %v1410_v62  ;;  %v1411_v16 = vunpack.i.l.bf16 %v1410_v62  ;;  %v1405_v34 = vpop.permute.xlu0 %1404  ;;  %v1241_v23 = vpack.c.bf16 %v308_v3, %v307_v42 }
  0x9b   : > { %v1407_v51 = vunpack.i.h.bf16 %v1405_v34  ;;  %v1406_v60 = vunpack.i.l.bf16 %v1405_v34 }
  0x9c   : > { %1242 = vmatprep.subr.bf16.mxu0 %v1241_v23 }
  0x9d   : > { %v696_v29 = vsel %vm302_vm1, %v1412_v17, %v1407_v51  ;;  %v695_v7 = vsel %vm302_vm1, %v1411_v16, %v1406_v60  ;;  %1245 = vmatpush1.bf16.msk.msra.mxu0 %vm1793_vm3, %v1243_v10  ;;  %v1420_v28 = vpop.permute.xlu1 %1419  ;;  %v687_v61 = vsel %vm302_vm1, %v1406_v60, %v1411_v16  ;;  %v688_v40 = vsel %vm302_vm1, %v1407_v51, %v1412_v17 }
  0x9e   : > { %v1299_v48 = vpack.c.bf16 %v696_v29, %v695_v7  ;;  %v1422_v35 = vunpack.i.h.bf16 %v1420_v28  ;;  %v1421_v59 = vunpack.i.l.bf16 %v1420_v28  ;;  %v1415_v58 = vpop.permute.xlu0 %1414  ;;  %v1297_v63 = vpack.c.bf16 %v688_v40, %v687_v61 }
  0x9f   : > { %v1417_v62 = vunpack.i.h.bf16 %v1415_v58  ;;  %v1416_v42 = vunpack.i.l.bf16 %v1415_v58 }
  0xa0   : > { %1298 = vmatprep.subr.bf16.mxu1 %v1297_v63 }
  0xa1   : > { %v318_v3 = vsel %vm302_vm1, %v1422_v35, %v1417_v62  ;;  %v317_v10 = vsel %vm302_vm1, %v1421_v59, %v1416_v42  ;;  %1301 = vmatpush1.bf16.msk.msra.mxu1 %vm1793_vm3, %v1299_v48  ;;  %v1430_v16 = vpop.permute.xlu1 %1429  ;;  %v309_v17 = vsel %vm302_vm1, %v1416_v42, %v1421_v59  ;;  %v310_v34 = vsel %vm302_vm1, %v1417_v62, %v1422_v35 }
  0xa2   : > { %v1248_v23 = vpack.c.bf16 %v318_v3, %v317_v10  ;;  %v1432_v51 = vunpack.i.h.bf16 %v1430_v16  ;;  %v1431_v60 = vunpack.i.l.bf16 %v1430_v16  ;;  %v1425_v29 = vpop.permute.xlu0 %1424  ;;  %v1246_v7 = vpack.c.bf16 %v310_v34, %v309_v17 }
  0xa3   : > { %v1427_v28 = vunpack.i.h.bf16 %v1425_v29  ;;  %v1426_v61 = vunpack.i.l.bf16 %v1425_v29 }
  0xa4   : > { %1247 = vmatprep.subr.bf16.mxu0 %v1246_v7 }
  0xa5   : > { %v698_v40 = vsel %vm302_vm1, %v1432_v51, %v1427_v28  ;;  %v697_v48 = vsel %vm302_vm1, %v1431_v60, %v1426_v61  ;;  %1250 = vmatpush1.bf16.msk.msra.mxu0 %vm1793_vm3, %v1248_v23  ;;  %v1440_v59 = vpop.permute.xlu1 %1439  ;;  %v689_v35 = vsel %vm302_vm1, %v1426_v61, %v1431_v60  ;;  %v690_v58 = vsel %vm302_vm1, %v1427_v28, %v1432_v51 }
  0xa6   : > { %v1304_v63 = vpack.c.bf16 %v698_v40, %v697_v48  ;;  %v1435_v62 = vpop.permute.xlu0 %1434  ;;  %1252 = vmatprep.subr.bf16.mxu0 %v1251_v41  ;;  %v1302_v42 = vpack.c.bf16 %v690_v58, %v689_v35  ;;  %v1442_v9 = vunpack.i.h.bf16 %v1440_v59  ;;  %v1441_v41 = vunpack.i.l.bf16 %v1440_v59 }
  0xa7   : > { %v1437_v16 = vunpack.i.h.bf16 %v1435_v62  ;;  %v1436_v2 = vunpack.i.l.bf16 %v1435_v62  ;;  %v2173_v60 = vpack.c.bf16 %v1714_v44, %v1711_v43  ;;  %v2174_v59 = vpack.c.bf16 %v1722_v47, %v1719_v46 }
  0xa8   : > { %1303 = vmatprep.subr.bf16.mxu1 %v1302_v42 }
  0xa9   : > { %1254 = vmatpush1.bf16.msra.mxu0 %v1253_v45  ;;  %1306 = vmatpush1.bf16.msk.msra.mxu1 %vm1793_vm3, %v1304_v63  ;;  %v1450_v3 = vpop.permute.xlu1 %1449  ;;  %v377_v5 = vsel %vm367_vm4, %v1442_v9, %v1437_v16  ;;  %v376_v6 = vsel %vm367_vm4, %v1441_v41, %v1436_v2  ;;  %v368_v15 = vsel %vm367_vm4, %v1436_v2, %v1441_v41 }
  0xaa   : > { %v1445_v10 = vpop.permute.xlu0 %1444  ;;  %1256 = vmatprep.subr.bf16.mxu0 %v1255_v49  ;;  %1308 = vmatprep.subr.bf16.mxu1 %v1307_v50  ;;  %v1452_v13 = vunpack.i.h.bf16 %v1450_v3  ;;  %v1451_v1 = vunpack.i.l.bf16 %v1450_v3  ;;  %v369_v24 = vsel %vm367_vm4, %v1437_v16, %v1442_v9 }
  0xab   : > { %v1447_v0 = vunpack.i.h.bf16 %v1445_v10  ;;  %v1446_v14 = vunpack.i.l.bf16 %v1445_v10  ;;  %v1270_v20 = vpack.c.bf16 %v369_v24, %v368_v15 }
  0xad   : > { %1258 = vmatpush1.bf16.msra.mxu0 %v1257_v52  ;;  %1310 = vmatpush1.bf16.msra.mxu1 %v1309_v53  ;;  %v1460_v4 = vpop.permute.xlu1 %1459  ;;  %v2167_v52 = vpack.c.bf16 %v1694_v37, %v1691_v36  ;;  %v2168_v53 = vpack.c.bf16 %v1676_v31, %v1673_v30  ;;  %v755_v37 = vsel %vm367_vm4, %v1451_v1, %v1446_v14 }
  0xae   : > { %v1455_v12 = vpop.permute.xlu0 %1454  ;;  %1260 = vmatprep.subr.bf16.mxu0 %v1259_v54  ;;  %1312 = vmatprep.subr.bf16.mxu1 %v1311_v55  ;;  %v1462_v25 = vunpack.i.h.bf16 %v1460_v4  ;;  %v1461_v18 = vunpack.i.l.bf16 %v1460_v4  ;;  %v1267_v54 = vpack.c.bf16 %v377_v5, %v376_v6  ;;  %v756_v55 = vsel %vm367_vm4, %v1452_v13, %v1447_v0 }
  0xaf   : > { %v1457_v19 = vunpack.i.h.bf16 %v1455_v12  ;;  %v1456_v45 = vunpack.i.l.bf16 %v1455_v12  ;;  %v747_v29 = vsel %vm367_vm4, %v1446_v14, %v1451_v1  ;;  %v1323_v28 = vpack.c.bf16 %v756_v55, %v755_v37 }
  0xb1   : > { %1262 = vmatpush1.bf16.msra.mxu0 %v1261_v56  ;;  %1314 = vmatpush1.bf16.msra.mxu1 %v1313_v57  ;;  %v1470_v49 = vpop.permute.xlu1 %1469  ;;  %v379_v30 = vsel %vm367_vm4, %v1462_v25, %v1457_v19  ;;  %v378_v31 = vsel %vm367_vm4, %v1461_v18, %v1456_v45  ;;  %v2171_v57 = vpack.c.bf16 %v1700_v39, %v1697_v38 }
  0xb2   : > { %v1465_v50 = vpop.permute.xlu0 %1464  ;;  %1264 = vmatprep.subr.bf16.mxu0 %v2167_v52  ;;  %1316 = vmatprep.subr.bf16.mxu1 %v2168_v53  ;;  %v1472_v21 = vunpack.i.h.bf16 %v1470_v49  ;;  %v1471_v27 = vunpack.i.l.bf16 %v1470_v49  ;;  %v748_v38 = vsel %vm367_vm4, %v1447_v0, %v1452_v13  ;;  %v370_v33 = vsel %vm367_vm4, %v1456_v45, %v1461_v18 }
  0xb3   : > { %v1467_v56 = vunpack.i.h.bf16 %v1465_v50  ;;  %v1466_v36 = vunpack.i.l.bf16 %v1465_v50  ;;  %v371_v7 = vsel %vm367_vm4, %v1457_v19, %v1462_v25  ;;  %v1272_v61 = vpack.c.bf16 %v379_v30, %v378_v31 }
  0xb4   : > { %v1275_v42 = vpack.c.bf16 %v371_v7, %v370_v33  ;;  %v1326_v3 = vpack.c.bf16 %v748_v38, %v747_v29  ;;  %v245_v29 = vld [vmem:[%s2161_s1 + $0x38] sm:$0xff]  ;;  %v244_v38 = vld [vmem:[%s2161_s1 + $0x30] sm:$0xff] }
  0xb5   : > { %1266 = vmatpush1.bf16.msra.mxu0 %v2171_v57  ;;  %1318 = vmatpush1.bf16.msra.mxu1 %v2172_v22  ;;  %v1480_v17 = vpop.permute.xlu1 %1479  ;;  %v758_v43 = vsel %vm367_vm4, %v1472_v21, %v1467_v56  ;;  %v757_v44 = vsel %vm367_vm4, %v1471_v27, %v1466_v36  ;;  %v749_v41 = vsel %vm367_vm4, %v1466_v36, %v1471_v27  ;;  %v238_v22 = vld [vmem:[%s2161_s1] sm:$0xff]  ;;  %v249_v33 = vld [vmem:[%s2161_s1 + $0x58] sm:$0xff]  ;;  %v248_v7 = vld [vmem:[%s2161_s1 + $0x50] sm:$0xff] }
  0xb6   : > { %v1482_v34 = vunpack.i.h.bf16 %v1480_v17  ;;  %v1481_v23 = vunpack.i.l.bf16 %v1480_v17  ;;  %v1475_v51 = vpop.permute.xlu0 %1474  ;;  %1269 = vmatprep.subr.msk.bf16.mxu0 %vm1911_vm6, %v1267_v54  ;;  %1320 = vmatprep.subr.bf16.mxu1 %v2173_v60  ;;  %v1328_v10 = vpack.c.bf16 %v758_v43, %v757_v44  ;;  %v750_v2 = vsel %vm367_vm4, %v1467_v56, %v1472_v21  ;;  %v240_v60 = vld [vmem:[%s2161_s1 + $0x10] sm:$0xff]  ;;  %v253_v43 = vld [vmem:[%s2161_s1 + $0x78] sm:$0xff] }
  0xb7   : > { %v1477_v39 = vunpack.i.h.bf16 %v1475_v51  ;;  %v1476_v32 = vunpack.i.l.bf16 %v1475_v51  ;;  %v1331_v24 = vpack.c.bf16 %v750_v2, %v749_v41  ;;  %v252_v44 = vld [vmem:[%s2161_s1 + $0x70] sm:$0xff] }
  0xb9   : > { %v381_v40 = vsel %vm367_vm4, %v1482_v34, %v1477_v39  ;;  %v380_v48 = vsel %vm367_vm4, %v1481_v23, %v1476_v32  ;;  %1271 = vmatpush1.bf16.msra.mxu0 %v1270_v20  ;;  %1322 = vmatpush1.bf16.msra.mxu1 %v2174_v59  ;;  %v1490_v35 = vpop.permute.xlu1 %1489  ;;  %v372_v47 = vsel %vm367_vm4, %v1476_v32, %v1481_v23  ;;  %v241_v23 = vld [vmem:[%s2161_s1 + $0x18] sm:$0xff]  ;;  %v246_v32 = vld [vmem:[%s2161_s1 + $0x40] sm:$0xff] }
  0xba   : > { %v1492_v58 = vunpack.i.h.bf16 %v1490_v35  ;;  %v1491_v63 = vunpack.i.l.bf16 %v1490_v35  ;;  %v1485_v62 = vpop.permute.xlu0 %1484  ;;  %1274 = vmatprep.subr.msk.bf16.mxu0 %vm1911_vm6, %v1272_v61  ;;  %1325 = vmatprep.subr.msk.bf16.mxu1 %vm1911_vm6, %v1323_v28  ;;  %v1277_v46 = vpack.c.bf16 %v381_v40, %v380_v48  ;;  %v373_v16 = vsel %vm367_vm4, %v1477_v39, %v1482_v34  ;;  %v247_v39 = vld [vmem:[%s2161_s1 + $0x48] sm:$0xff]  ;;  %v250_v61 = vld [vmem:[%s2161_s1 + $0x60] sm:$0xff] }
  0xbb   : > { %v1487_v8 = vunpack.i.h.bf16 %v1485_v62  ;;  %v1486_v9 = vunpack.i.l.bf16 %v1485_v62  ;;  %v1280_v15 = vpack.c.bf16 %v373_v16, %v372_v47  ;;  %v251_v28 = vld [vmem:[%s2161_s1 + $0x68] sm:$0xff] }
  0xbd   : > { %v760_v4 = vsel %vm367_vm4, %v1492_v58, %v1487_v8  ;;  %v759_v12 = vsel %vm367_vm4, %v1491_v63, %v1486_v9  ;;  %1276 = vmatpush1.bf16.msra.mxu0 %v1275_v42  ;;  %1327 = vmatpush1.bf16.msra.mxu1 %v1326_v3  ;;  %v1500_v5 = vpop.permute.xlu1 %1499  ;;  %v751_v18 = vsel %vm367_vm4, %v1486_v9, %v1491_v63 }
  0xbe   : > { %v1502_v6 = vunpack.i.h.bf16 %v1500_v5  ;;  %v1501_v13 = vunpack.i.l.bf16 %v1500_v5  ;;  %v1495_v0 = vpop.permute.xlu0 %1494  ;;  %1279 = vmatprep.subr.msk.bf16.mxu0 %vm1911_vm6, %v1277_v46  ;;  %1330 = vmatprep.subr.msk.bf16.mxu1 %vm1911_vm6, %v1328_v10  ;;  %v1333_v25 = vpack.c.bf16 %v760_v4, %v759_v12  ;;  %v752_v19 = vsel %vm367_vm4, %v1487_v8, %v1492_v58 }
  0xbf   : > { %v1497_v1 = vunpack.i.h.bf16 %v1495_v0  ;;  %v1496_v14 = vunpack.i.l.bf16 %v1495_v0  ;;  %v1336_v37 = vpack.c.bf16 %v752_v19, %v751_v18 }
  0xc1   : > { %v383_v45 = vsel %vm367_vm4, %v1502_v6, %v1497_v1  ;;  %v382_v49 = vsel %vm367_vm4, %v1501_v13, %v1496_v14  ;;  %1281 = vmatpush1.bf16.msra.mxu0 %v1280_v15  ;;  %1332 = vmatpush1.bf16.msra.mxu1 %v1331_v24  ;;  %v1510_v50 = vpop.permute.xlu1 %1509  ;;  %v374_v52 = vsel %vm367_vm4, %v1496_v14, %v1501_v13 }
  0xc2   : > { %v1282_v53 = vpack.c.bf16 %v383_v45, %v382_v49  ;;  %v1512_v54 = vunpack.i.h.bf16 %v1510_v50  ;;  %v1511_v55 = vunpack.i.l.bf16 %v1510_v50  ;;  %v1505_v20 = vpop.permute.xlu0 %1504  ;;  %1335 = vmatprep.subr.msk.bf16.mxu1 %vm1911_vm6, %v1333_v25  ;;  %v375_v21 = vsel %vm367_vm4, %v1497_v1, %v1502_v6 }
  0xc3   : > { %v1507_v27 = vunpack.i.h.bf16 %v1505_v20  ;;  %v1506_v56 = vunpack.i.l.bf16 %v1505_v20  ;;  %v1285_v36 = vpack.c.bf16 %v375_v21, %v374_v52 }
  0xc4   : > { %1284 = vmatprep.subr.msk.bf16.mxu0 %vm1911_vm6, %v1282_v53 }
  0xc5   : > { %v762_v30 = vsel %vm367_vm4, %v1512_v54, %v1507_v27  ;;  %v761_v31 = vsel %vm367_vm4, %v1511_v55, %v1506_v56  ;;  %1286 = vmatpush1.bf16.msra.mxu0 %v1285_v36  ;;  %1337 = vmatpush1.bf16.msra.mxu1 %v1336_v37  ;;  %v753_v57 = vsel %vm367_vm4, %v1506_v56, %v1511_v55 }
  0xc6   : > { %v1338_v17 = vpack.c.bf16 %v762_v30, %v761_v31  ;;  %v754_v34 = vsel %vm367_vm4, %v1507_v27, %v1512_v54 }
  0xc7   : > { %v1341_v51 = vpack.c.bf16 %v754_v34, %v753_v57 }
  0xc8   : > { %1340 = vmatprep.subr.msk.bf16.mxu1 %vm1911_vm6, %v1338_v17  ;;  %490 = vmatmul.mubr.f32.vlgmr.msra.gmra.mrb[0].mxu0 %v238_v22 }
  0xc9   : > { %1342 = vmatpush1.bf16.msra.mxu1 %v1341_v51  ;;  %1162 = vmatprep.mubr.msk.f32.mxu0 %vm400_vm0, %v241_v23 }
  0xcc   : > { %844 = vmatmul.mubr.f32.vlgmr.msra.gmra.mrb[0].mxu1 %v238_v22  ;;  %496 = vmatmul.mubr.f32.gmra.mrb[2].mxu0 %v240_v60 }
  0xcd   : > { %1202 = vmatprep.mubr.msk.f32.mxu1 %vm400_vm0, %v241_v23  ;;  %1163 = vmatprep.mubr.msk.f32.mxu0 %vm400_vm0, %v243_v11 }
  0xd0   : > { %850 = vmatmul.mubr.f32.gmra.mrb[2].mxu1 %v240_v60  ;;  %502 = vmatmul.mubr.f32.gmra.mrb[4].mxu0 %v242_v26 }
  0xd1   : > { %1203 = vmatprep.mubr.msk.f32.mxu1 %vm400_vm0, %v243_v11  ;;  %1164 = vmatprep.mubr.msk.f32.mxu0 %vm400_vm0, %v245_v29 }
  0xd4   : > { %856 = vmatmul.mubr.f32.gmra.mrb[4].mxu1 %v242_v26  ;;  %508 = vmatmul.mubr.f32.gmra.mrb[6].mxu0 %v244_v38 }
  0xd5   : > { %1204 = vmatprep.mubr.msk.f32.mxu1 %vm400_vm0, %v245_v29  ;;  %1165 = vmatprep.mubr.msk.f32.mxu0 %vm400_vm0, %v247_v39 }
  0xd8   : > { %862 = vmatmul.mubr.f32.gmra.mrb[6].mxu1 %v244_v38  ;;  %514 = vmatmul.mubr.f32.gmra.mrb[8].mxu0 %v246_v32 }
  0xd9   : > { %1205 = vmatprep.mubr.msk.f32.mxu1 %vm400_vm0, %v247_v39  ;;  %1166 = vmatprep.mubr.msk.f32.mxu0 %vm400_vm0, %v249_v33 }
  0xdc   : > { %868 = vmatmul.mubr.f32.gmra.mrb[8].mxu1 %v246_v32  ;;  %520 = vmatmul.mubr.f32.gmra.mrb[10].mxu0 %v248_v7 }
  0xdd   : > { %1206 = vmatprep.mubr.msk.f32.mxu1 %vm400_vm0, %v249_v33  ;;  %1167 = vmatprep.mubr.msk.f32.mxu0 %vm400_vm0, %v251_v28 }
  0xe0   : > { %874 = vmatmul.mubr.f32.gmra.mrb[10].mxu1 %v248_v7  ;;  %526 = vmatmul.mubr.f32.gmra.mrb[12].mxu0 %v250_v61 }
  0xe1   : > { %1207 = vmatprep.mubr.msk.f32.mxu1 %vm400_vm0, %v251_v28  ;;  %1168 = vmatprep.mubr.msk.f32.mxu0 %vm400_vm0, %v253_v43 }
  0xe4   : > { %880 = vmatmul.mubr.f32.gmra.mrb[12].mxu1 %v250_v61  ;;  %532 = vmatmul.mubr.f32.gmra.mrb[14].mxu0 %v252_v44 }
  0xe5   : > { %1208 = vmatprep.mubr.msk.f32.mxu1 %vm400_vm0, %v253_v43 }
  0xe8   : > { %886 = vmatmul.mubr.f32.gmra.mrb[14].mxu1 %v252_v44 }
 0x19b   : > { %v491_v40 = vpop.f32.mrb[0].mxu0 }
 0x19c   : > { %538 = vst [vmem:[%s2061_s10] sm:$0xff] %v491_v40  ;;  %v493_v48 = vpop.f32.mrb[1].mxu0  ;;  %v586_v59 = vmul.f32 %v491_v40, %v491_v40 }
 0x19d   : > { %539 = vst [vmem:[%s2061_s10 + $0x8] sm:$0xff] %v493_v48  ;;  %v554_v35 = vadd.f32 %v493_v48, %v491_v40  ;;  %v587_v58 = vmul.f32 %v493_v48, %v493_v48 }
 0x19f   : > { %v845_v63 = vpop.f32.mrb[0].mxu1  ;;  %555 = vadd.xlane.f32.xlu0 %v554_v35  ;;  %v497_v62 = vpop.f32.mrb[2].mxu0  ;;  %v602_v42 = vadd.f32 %v587_v58, %v586_v59 }
 0x1a0   : > { %1209 = vst [vmem:[%s2061_s10 + $0x80] sm:$0xff] %v845_v63  ;;  %v847_v3 = vpop.f32.mrb[1].mxu1  ;;  %540 = vst [vmem:[%s2061_s10 + $0x10] sm:$0xff] %v497_v62  ;;  %v499_v10 = vpop.f32.mrb[3].mxu0  ;;  %v941_v8 = vmul.f32 %v845_v63, %v845_v63  ;;  %v588_v9 = vmul.f32 %v497_v62, %v497_v62 }
 0x1a1   : > { %1210 = vst [vmem:[%s2061_s10 + $0x88] sm:$0xff] %v847_v3  ;;  %v909_v41 = vadd.f32 %v847_v3, %v845_v63  ;;  %541 = vst [vmem:[%s2061_s10 + $0x18] sm:$0xff] %v499_v10  ;;  %v942_v46 = vmul.f32 %v847_v3, %v847_v3  ;;  %v589_v47 = vmul.f32 %v499_v10, %v499_v10 }
 0x1a2   : > { %v557_v16 = vadd.f32 %v499_v10, %v497_v62 }
 0x1a3   : > { %910 = vadd.xlane.f32.xlu1 %v909_v41  ;;  %v851_v2 = vpop.f32.mrb[2].mxu1  ;;  %v957_v4 = vadd.f32 %v942_v46, %v941_v8  ;;  %v605_v12 = vadd.f32 %v589_v47, %v588_v9  ;;  %v503_v5 = vpop.f32.mrb[4].mxu0 }
 0x1a4   : > { %1211 = vst [vmem:[%s2061_s10 + $0x90] sm:$0xff] %v851_v2  ;;  %v853_v6 = vpop.f32.mrb[3].mxu1  ;;  %542 = vst [vmem:[%s2061_s10 + $0x20] sm:$0xff] %v503_v5  ;;  %v943_v13 = vmul.f32 %v851_v2, %v851_v2  ;;  %v505_v0 = vpop.f32.mrb[5].mxu0  ;;  %v590_v1 = vmul.f32 %v503_v5, %v503_v5 }
 0x1a5   : > { %1212 = vst [vmem:[%s2061_s10 + $0x98] sm:$0xff] %v853_v6  ;;  %v912_v14 = vadd.f32 %v853_v6, %v851_v2  ;;  %v944_v15 = vmul.f32 %v853_v6, %v853_v6  ;;  %543 = vst [vmem:[%s2061_s10 + $0x28] sm:$0xff] %v505_v0  ;;  %v560_v24 = vadd.f32 %v505_v0, %v503_v5 }
 0x1a6   : > { %v591_v25 = vmul.f32 %v505_v0, %v505_v0 }
 0x1a7   : > { %603 = vadd.xlane.f32.xlu1 %v602_v42  ;;  %913 = vadd.xlane.f32.xlu0 %v912_v14  ;;  %v857_v18 = vpop.f32.mrb[4].mxu1  ;;  %v960_v19 = vadd.f32 %v944_v15, %v943_v13  ;;  %v509_v45 = vpop.f32.mrb[6].mxu0 }
 0x1a8   : > { %v2073_v49 = vadd.f32 %v591_v25, %v590_v1  ;;  %1213 = vst [vmem:[%s2061_s10 + $0xa0] sm:$0xff] %v857_v18  ;;  %v859_v50 = vpop.f32.mrb[5].mxu1  ;;  %544 = vst [vmem:[%s2061_s10 + $0x30] sm:$0xff] %v509_v45  ;;  %v511_v52 = vpop.f32.mrb[7].mxu0  ;;  %v945_v53 = vmul.f32 %v857_v18, %v857_v18  ;;  %v592_v54 = vmul.f32 %v509_v45, %v509_v45 }
 0x1a9   : > { %1214 = vst [vmem:[%s2061_s10 + $0xa8] sm:$0xff] %v859_v50  ;;  %v915_v55 = vadd.f32 %v859_v50, %v857_v18  ;;  %545 = vst [vmem:[%s2061_s10 + $0x38] sm:$0xff] %v511_v52  ;;  %v563_v20 = vadd.f32 %v511_v52, %v509_v45  ;;  %v946_v21 = vmul.f32 %v859_v50, %v859_v50 }
 0x1aa   : > { %v593_v27 = vmul.f32 %v511_v52, %v511_v52 }
 0x1ab   : > { %958 = vadd.xlane.f32.xlu1 %v957_v4  ;;  %606 = vadd.xlane.f32.xlu0 %v605_v12  ;;  %v863_v56 = vpop.f32.mrb[6].mxu1  ;;  %v2079_v36 = vadd.f32 %v946_v21, %v945_v53  ;;  %v515_v37 = vpop.f32.mrb[8].mxu0 }
 0x1ac   : > { %v2081_v30 = vadd.f32 %v593_v27, %v592_v54  ;;  %1215 = vst [vmem:[%s2061_s10 + $0xb0] sm:$0xff] %v863_v56  ;;  %v865_v31 = vpop.f32.mrb[7].mxu1  ;;  %546 = vst [vmem:[%s2061_s10 + $0x40] sm:$0xff] %v515_v37  ;;  %v517_v57 = vpop.f32.mrb[9].mxu0  ;;  %v947_v22 = vmul.f32 %v863_v56, %v863_v56  ;;  %v594_v17 = vmul.f32 %v515_v37, %v515_v37 }
 0x1ad   : > { %1216 = vst [vmem:[%s2061_s10 + $0xb8] sm:$0xff] %v865_v31  ;;  %v918_v34 = vadd.f32 %v865_v31, %v863_v56  ;;  %547 = vst [vmem:[%s2061_s10 + $0x48] sm:$0xff] %v517_v57  ;;  %v2087_v23 = vadd.f32 %v517_v57, %v515_v37  ;;  %v948_v51 = vmul.f32 %v865_v31, %v865_v31 }
 0x1ae   : > { %v595_v60 = vmul.f32 %v517_v57, %v517_v57 }
 0x1af   : > { %961 = vadd.xlane.f32.xlu0 %v960_v19  ;;  %558 = vadd.xlane.f32.xlu1 %v557_v16  ;;  %v869_v11 = vpop.f32.mrb[8].mxu1  ;;  %v521_v26 = vpop.f32.mrb[10].mxu0  ;;  %v2089_v29 = vadd.f32 %v948_v51, %v947_v22 }
 0x1b0   : > { %v2091_v38 = vadd.f32 %v595_v60, %v594_v17  ;;  %1217 = vst [vmem:[%s2061_s10 + $0xc0] sm:$0xff] %v869_v11  ;;  %v871_v39 = vpop.f32.mrb[9].mxu1  ;;  %548 = vst [vmem:[%s2061_s10 + $0x50] sm:$0xff] %v521_v26  ;;  %v523_v32 = vpop.f32.mrb[11].mxu0  ;;  %v949_v33 = vmul.f32 %v869_v11, %v869_v11  ;;  %v596_v7 = vmul.f32 %v521_v26, %v521_v26 }
 0x1b1   : > { %1218 = vst [vmem:[%s2061_s10 + $0xc8] sm:$0xff] %v871_v39  ;;  %v921_v28 = vadd.f32 %v871_v39, %v869_v11  ;;  %549 = vst [vmem:[%s2061_s10 + $0x58] sm:$0xff] %v523_v32  ;;  %v569_v61 = vadd.f32 %v523_v32, %v521_v26  ;;  %v950_v43 = vmul.f32 %v871_v39, %v871_v39 }
 0x1b2   : > { %v597_v44 = vmul.f32 %v523_v32, %v523_v32 }
 0x1b3   : > { %916 = vadd.xlane.f32.xlu1 %v915_v55  ;;  %561 = vadd.xlane.f32.xlu0 %v560_v24  ;;  %v875_v40 = vpop.f32.mrb[10].mxu1  ;;  %v969_v48 = vadd.f32 %v950_v43, %v949_v33  ;;  %v527_v59 = vpop.f32.mrb[12].mxu0 }
 0x1b4   : > { %v617_v35 = vadd.f32 %v597_v44, %v596_v7  ;;  %1219 = vst [vmem:[%s2061_s10 + $0xd0] sm:$0xff] %v875_v40  ;;  %v877_v58 = vpop.f32.mrb[11].mxu1  ;;  %550 = vst [vmem:[%s2061_s10 + $0x60] sm:$0xff] %v527_v59  ;;  %v529_v63 = vpop.f32.mrb[13].mxu0  ;;  %v951_v62 = vmul.f32 %v875_v40, %v875_v40  ;;  %v598_v42 = vmul.f32 %v527_v59, %v527_v59 }
 0x1b5   : > { %1220 = vst [vmem:[%s2061_s10 + $0xd8] sm:$0xff] %v877_v58  ;;  %v924_v3 = vadd.f32 %v877_v58, %v875_v40  ;;  %551 = vst [vmem:[%s2061_s10 + $0x68] sm:$0xff] %v529_v63  ;;  %v572_v10 = vadd.f32 %v529_v63, %v527_v59  ;;  %v952_v8 = vmul.f32 %v877_v58, %v877_v58 }
 0x1b6   : > { %v599_v9 = vmul.f32 %v529_v63, %v529_v63 }
 0x1b7   : > { %609 = vadd.xlane.f32.xlu1 %v2073_v49  ;;  %564 = vadd.xlane.f32.xlu0 %v563_v20  ;;  %v881_v41 = vpop.f32.mrb[12].mxu1  ;;  %v533_v46 = vpop.f32.mrb[14].mxu0  ;;  %v972_v47 = vadd.f32 %v952_v8, %v951_v62 }
 0x1b8   : > { %v620_v16 = vadd.f32 %v599_v9, %v598_v42  ;;  %1221 = vst [vmem:[%s2061_s10 + $0xe0] sm:$0xff] %v881_v41  ;;  %v883_v2 = vpop.f32.mrb[13].mxu1  ;;  %552 = vst [vmem:[%s2061_s10 + $0x70] sm:$0xff] %v533_v46  ;;  %v535_v4 = vpop.f32.mrb[15].mxu0  ;;  %v953_v12 = vmul.f32 %v881_v41, %v881_v41  ;;  %v600_v5 = vmul.f32 %v533_v46, %v533_v46 }
 0x1b9   : > { %1222 = vst [vmem:[%s2061_s10 + $0xe8] sm:$0xff] %v883_v2  ;;  %v927_v6 = vadd.f32 %v883_v2, %v881_v41  ;;  %553 = vst [vmem:[%s2061_s10 + $0x78] sm:$0xff] %v535_v4  ;;  %v601_v13 = vmul.f32 %v535_v4, %v535_v4  ;;  %v575_v0 = vadd.f32 %v535_v4, %v533_v46 }
 0x1ba   : > { %v954_v1 = vmul.f32 %v883_v2, %v883_v2 }
 0x1bb   : > { %964 = vadd.xlane.f32.xlu1 %v2079_v36  ;;  %919 = vadd.xlane.f32.xlu0 %v918_v34  ;;  %v887_v14 = vpop.f32.mrb[14].mxu1  ;;  %v623_v24 = vadd.f32 %v601_v13, %v600_v5 }
 0x1bc   : > { %v975_v15 = vadd.f32 %v954_v1, %v953_v12  ;;  %1223 = vst [vmem:[%s2061_s10 + $0xf0] sm:$0xff] %v887_v14  ;;  %v889_v25 = vpop.f32.mrb[15].mxu1  ;;  %v955_v18 = vmul.f32 %v887_v14, %v887_v14 }
 0x1bd   : > { %1224 = vst [vmem:[%s2061_s10 + $0xf8] sm:$0xff] %v889_v25  ;;  %v956_v19 = vmul.f32 %v889_v25, %v889_v25  ;;  %v930_v45 = vadd.f32 %v889_v25, %v887_v14 }
 0x1bf   : > { %612 = vadd.xlane.f32.xlu0 %v2081_v30  ;;  %567 = vadd.xlane.f32.xlu1 %v2087_v23  ;;  %v978_v49 = vadd.f32 %v956_v19, %v955_v18 }
 0x1c3   : > { %967 = vadd.xlane.f32.xlu0 %v2089_v29  ;;  %922 = vadd.xlane.f32.xlu1 %v921_v28 }
 0x1c7   : > { %615 = vadd.xlane.f32.xlu1 %v2091_v38  ;;  %570 = vadd.xlane.f32.xlu0 %v569_v61 }
 0x1cb   : > { %970 = vadd.xlane.f32.xlu1 %v969_v48  ;;  %925 = vadd.xlane.f32.xlu0 %v924_v3 }
 0x1cf   : > { %618 = vadd.xlane.f32.xlu0 %v617_v35  ;;  %573 = vadd.xlane.f32.xlu1 %v572_v10 }
 0x1d3   : > { %973 = vadd.xlane.f32.xlu0 %v972_v47  ;;  %928 = vadd.xlane.f32.xlu1 %v927_v6 }
 0x1d7   : > { %621 = vadd.xlane.f32.xlu1 %v620_v16  ;;  %576 = vadd.xlane.f32.xlu0 %v575_v0 }
 0x1db   : > { %976 = vadd.xlane.f32.xlu1 %v975_v15  ;;  %931 = vadd.xlane.f32.xlu0 %v930_v45 }
 0x1df   : > { %624 = vadd.xlane.f32.xlu0 %v623_v24 }
 0x1e3   : > { %979 = vadd.xlane.f32.xlu0 %v978_v49 }
 0x22c   : > { %v556_v50 = vpop.xlane.xlu0 %555 }
 0x230   : > { %v911_v52 = vpop.xlane.xlu1 %910 }
 0x231   : > { %v933_v53 = vadd.f32 %v911_v52, %v556_v50 }
 0x233   : > { %990 = vst.msk [vmem:[%s2118_s12] sm:$0xff] %vm989_vm7, %v933_v53 }
 0x234   : > { %v604_v54 = vpop.xlane.xlu1 %603  ;;  %v914_v55 = vpop.xlane.xlu0 %913 }
 0x238   : > { %v959_v20 = vpop.xlane.xlu1 %958  ;;  %v607_v21 = vpop.xlane.xlu0 %606 }
 0x239   : > { %v981_v27 = vadd.f32 %v959_v20, %v604_v54 }
 0x23b   : > { %998 = vst.msk [vmem:[%s2125_s16] sm:$0xff] %vm989_vm7, %v981_v27 }
 0x23c   : > { %v962_v56 = vpop.xlane.xlu0 %961  ;;  %v559_v36 = vpop.xlane.xlu1 %558 }
 0x23d   : > { %v982_v37 = vadd.f32 %v962_v56, %v607_v21  ;;  %v934_v30 = vadd.f32 %v914_v55, %v559_v36 }
 0x23f   : > { %999 = vst.msk [vmem:[%s2125_s16 + $0x8] sm:$0xff] %vm989_vm7, %v982_v37  ;;  %991 = vst.msk [vmem:[%s2118_s12 + $0x8] sm:$0xff] %vm989_vm7, %v934_v30 }
 0x240   : > { %v917_v31 = vpop.xlane.xlu1 %916  ;;  %v562_v57 = vpop.xlane.xlu0 %561 }
 0x241   : > { %v935_v22 = vadd.f32 %v917_v31, %v562_v57 }
 0x243   : > { %992 = vst.msk [vmem:[%s2118_s12 + $0x10] sm:$0xff] %vm989_vm7, %v935_v22 }
 0x244   : > { %v610_v17 = vpop.xlane.xlu1 %609  ;;  %v565_v34 = vpop.xlane.xlu0 %564 }
 0x248   : > { %v965_v23 = vpop.xlane.xlu1 %964  ;;  %v920_v51 = vpop.xlane.xlu0 %919 }
 0x249   : > { %v983_v60 = vadd.f32 %v965_v23, %v610_v17  ;;  %v936_v11 = vadd.f32 %v920_v51, %v565_v34 }
 0x24b   : > { %1000 = vst.msk [vmem:[%s2125_s16 + $0x10] sm:$0xff] %vm989_vm7, %v983_v60  ;;  %993 = vst.msk [vmem:[%s2118_s12 + $0x18] sm:$0xff] %vm989_vm7, %v936_v11 }
 0x24c   : > { %v613_v26 = vpop.xlane.xlu0 %612  ;;  %v568_v29 = vpop.xlane.xlu1 %567 }
 0x250   : > { %v968_v38 = vpop.xlane.xlu0 %967  ;;  %v923_v39 = vpop.xlane.xlu1 %922 }
 0x251   : > { %v984_v32 = vadd.f32 %v968_v38, %v613_v26  ;;  %v937_v33 = vadd.f32 %v923_v39, %v568_v29 }
 0x253   : > { %1001 = vst.msk [vmem:[%s2125_s16 + $0x18] sm:$0xff] %vm989_vm7, %v984_v32  ;;  %994 = vst.msk [vmem:[%s2118_s12 + $0x20] sm:$0xff] %vm989_vm7, %v937_v33 }
 0x254   : > { %v616_v7 = vpop.xlane.xlu1 %615  ;;  %v571_v28 = vpop.xlane.xlu0 %570 }
 0x258   : > { %v971_v61 = vpop.xlane.xlu1 %970  ;;  %v926_v43 = vpop.xlane.xlu0 %925 }
 0x259   : > { %v985_v44 = vadd.f32 %v971_v61, %v616_v7  ;;  %v938_v40 = vadd.f32 %v926_v43, %v571_v28 }
 0x25b   : > { %1002 = vst.msk [vmem:[%s2125_s16 + $0x20] sm:$0xff] %vm989_vm7, %v985_v44  ;;  %995 = vst.msk [vmem:[%s2118_s12 + $0x28] sm:$0xff] %vm989_vm7, %v938_v40 }
 0x25c   : > { %v619_v48 = vpop.xlane.xlu0 %618  ;;  %v574_v59 = vpop.xlane.xlu1 %573 }
 0x260   : > { %v974_v35 = vpop.xlane.xlu0 %973  ;;  %v929_v58 = vpop.xlane.xlu1 %928 }
 0x261   : > { %v986_v63 = vadd.f32 %v974_v35, %v619_v48  ;;  %v939_v62 = vadd.f32 %v929_v58, %v574_v59 }
 0x263   : > { %1003 = vst.msk [vmem:[%s2125_s16 + $0x28] sm:$0xff] %vm989_vm7, %v986_v63  ;;  %996 = vst.msk [vmem:[%s2118_s12 + $0x30] sm:$0xff] %vm989_vm7, %v939_v62 }
 0x264   : > { %v622_v42 = vpop.xlane.xlu1 %621  ;;  %v577_v3 = vpop.xlane.xlu0 %576 }
 0x268   : > { %v977_v10 = vpop.xlane.xlu1 %976  ;;  %v932_v8 = vpop.xlane.xlu0 %931 }
 0x269   : > { %v987_v9 = vadd.f32 %v977_v10, %v622_v42  ;;  %v940_v41 = vadd.f32 %v932_v8, %v577_v3 }
 0x26b   : > { %1004 = vst.msk [vmem:[%s2125_s16 + $0x30] sm:$0xff] %vm989_vm7, %v987_v9  ;;  %997 = vst.msk [vmem:[%s2118_s12 + $0x38] sm:$0xff] %vm989_vm7, %v940_v41 }
 0x26c   : > { %v625_v46 = vpop.xlane.xlu0 %624 }
 0x270   : > { %v980_v47 = vpop.xlane.xlu0 %979 }
 0x271   : > { %v988_v16 = vadd.f32 %v980_v47, %v625_v46 }
 0x273   : > { %1005 = vst.msk [vmem:[%s2125_s16 + $0x38] sm:$0xff] %vm989_vm7, %v988_v16 }
 0x274 PF: > { %s15_s15 = sadd.s32 1, %s1519_s15  }
 0x275   : > { %p12_p5 = scmp.ge.s32.totalorder %s15_s15, 4  }
 0x277   :  { %14 = sbr.rel (!%p12_p5) target bundleno = 1 (0x1), region = 84 }

// kernel: dncnn_forward.7
= control target key start
LH: loop header
LB: loop body
LE: loop exit
PB: predicated region body
PF: predicated region fallthrough
CT: control target
= control target key end

     0   :  { %s2040_s27 = smov 0   ;;  %s2879_s0 = inlined_call_operand.vmem [shape: f32[4,64,256], index: 0, kind: input, shape index: {}]   ;;  %s2880_s1 = inlined_call_operand.vmem [shape: f32[2,64,1], index: 1, kind: input, shape index: {}]   ;;  %s2881_s2 = inlined_call_operand.vmem [shape: f32[2,64,1], index: 2, kind: input, shape index: {}]   ;;  %s2882_s3 = inlined_call_operand.vmem [shape: f32[64,1], index: 3, kind: input, shape index: {}]   ;;  %s2883_s4 = inlined_call_operand.vmem [shape: f32[64,1], index: 4, kind: input, shape index: {}]   ;;  %s2884_s5 = inlined_call_operand.vmem [shape: f32[64,192], index: 5, kind: input, shape index: {}]   ;;  %s2885_s6 = inlined_call_operand.vmem [shape: f32[4,64,256], index: 6, kind: output, shape index: {0}]   ;;  %s2886_s7 = inlined_call_operand.vmem [shape: f32[2,64,1], index: 7, kind: output, shape index: {1}]   ;;  %s2887_s8 = inlined_call_operand.vmem [shape: f32[2,64,1], index: 8, kind: output, shape index: {2}]  }
   0x1 LB: > { %s2046_s28 = sadd.s32 4294967295, %s1990_s27   ;;  %p1586_p0 = scmp.ge.s32.totalorder %s1990_s27, 1  ;;  %s1990_s27 = sphi %s2040_s27, %s19_s27  }
   0x2   : > { %p269_p1 = scmp.lt.s32.totalorder %s1990_s27, 3 }
   0x4   : > { %p270_p2 = pnand %p1586_p0, %p269_p1 }
   0x5   : > { %v365_v0 = vld [vmem:[%s2880_s1 + $0x18] sm:$0xff] (!%p270_p2)  ;;  %vm378_vm0 = vcmask (!%p270_p2), 7168   ;;  %v1992_v3 = vmov (!%p270_p2), 0   ;;  %v362_v8 = vld [vmem:[%s2880_s1] sm:$0xff] (!%p270_p2)  ;;  %v367_v19 = vld [vmem:[%s2880_s1 + $0x28] sm:$0xff] (!%p270_p2)  ;;  %s1587_s23 = sshll.u32 (!%p270_p2), %s2046_s28, 1 }
   0x6   : > { %273 = sbr.rel (%p270_p2) target bundleno = 791 (0x317), region = 44  ;;  %v373_v1 = vld [vmem:[%s2880_s1 + $0x58] sm:$0xff] (!%p270_p2)  ;;  %1807 = vset.pattern.permute.xlu1 (!%p270_p2), %v1992_v3  ;;  %1806 = vset.pattern.permute.xlu0 (!%p270_p2), %v1992_v3  ;;  %v388_v4 = vsel (!%p270_p2), %vm378_vm0, %v365_v0, 0.0  ;;  %v370_v11 = vld [vmem:[%s2880_s1 + $0x40] sm:$0xff] (!%p270_p2)  ;;  %v379_v12 = vsel (!%p270_p2), %vm378_vm0, %v362_v8, 0.0  ;;  %v375_v20 = vld [vmem:[%s2880_s1 + $0x68] sm:$0xff] (!%p270_p2) }
   0x7   : > { %v406_v2 = vld [vmem:[%s2881_s2 + $0x18] sm:$0xff] (!%p270_p2)  ;;  %v389_v5 = vsel (!%p270_p2), %vm378_vm0, %v373_v1, 0.0  ;;  %v403_v13 = vld [vmem:[%s2881_s2] sm:$0xff] (!%p270_p2)  ;;  %v380_v16 = vsel (!%p270_p2), %vm378_vm0, %v370_v11, 0.0  ;;  %v394_v24 = vsel (!%p270_p2), %vm378_vm0, %v367_v19, 0.0  ;;  %v408_v25 = vld [vmem:[%s2881_s2 + $0x28] sm:$0xff] (!%p270_p2) }
   0x8   : > { %v414_v6 = vld [vmem:[%s2881_s2 + $0x58] sm:$0xff] (!%p270_p2)  ;;  %v428_v7 = vsel (!%p270_p2), %vm378_vm0, %v406_v2, 0.0  ;;  %v390_v9 = vadd.f32 (!%p270_p2), %v389_v5, %v388_v4  ;;  %v411_v14 = vld [vmem:[%s2881_s2 + $0x40] sm:$0xff] (!%p270_p2)  ;;  %v419_v17 = vsel (!%p270_p2), %vm378_vm0, %v403_v13, 0.0  ;;  %v381_v22 = vadd.f32 (!%p270_p2), %v380_v16, %v379_v12  ;;  %v416_v26 = vld [vmem:[%s2881_s2 + $0x68] sm:$0xff] (!%p270_p2)  ;;  %p316_p3 = scmp.lt.s32.totalorder (!%p270_p2), %s1587_s23, 3 }
   0x9   : > { %v429_v10 = vsel (!%p270_p2), %vm378_vm0, %v414_v6, 0.0  ;;  %v420_v18 = vsel (!%p270_p2), %vm378_vm0, %v411_v14, 0.0  ;;  %v395_v28 = vsel (!%p270_p2), %vm378_vm0, %v375_v20, 0.0  ;;  %v434_v29 = vsel (!%p270_p2), %vm378_vm0, %v408_v25, 0.0  ;;  %v363_v31 = vld [vmem:[%s2880_s1 + $0x8] sm:$0xff] (!%p270_p2)  ;;  %v369_v43 = vld [vmem:[%s2880_s1 + $0x38] sm:$0xff] (!%p270_p2) }
   0xa   : > { %v430_v15 = vadd.f32 (!%p270_p2), %v429_v10, %v428_v7  ;;  %v2088_v21 = vmul.f32 (!%p270_p2), 0.0009765625, %v390_v9  ;;  %v421_v23 = vadd.f32 (!%p270_p2), %v420_v18, %v419_v17  ;;  %v435_v30 = vsel (!%p270_p2), %vm378_vm0, %v416_v26, 0.0  ;;  %v371_v32 = vld [vmem:[%s2880_s1 + $0x48] sm:$0xff] (!%p270_p2)  ;;  %v377_v44 = vld [vmem:[%s2880_s1 + $0x78] sm:$0xff] (!%p270_p2)  ;;  %v364_v59 = vld [vmem:[%s2880_s1 + $0x10] sm:$0xff] (!%p270_p2)  ;;  %s1993_s30 = smov (!%p270_p2), 1  }
   0xb   : > { %v2108_v34 = vmul.f32 (!%p270_p2), 0.0009765625, %v381_v22  ;;  %v396_v36 = vadd.f32 (!%p270_p2), %v395_v28, %v394_v24  ;;  %v404_v37 = vld [vmem:[%s2881_s2 + $0x8] sm:$0xff] (!%p270_p2)  ;;  %v436_v39 = vadd.f32 (!%p270_p2), %v435_v30, %v434_v29  ;;  %v382_v40 = vsel (!%p270_p2), %vm378_vm0, %v363_v31, 0.0  ;;  %v410_v49 = vld [vmem:[%s2881_s2 + $0x38] sm:$0xff] (!%p270_p2)  ;;  %v372_v0 = vld [vmem:[%s2880_s1 + $0x50] sm:$0xff] (!%p270_p2)  ;;  %s1994_s9 = smov (!%p270_p2), 127  }
   0xc   : > { %v454_v27 = vmul.f32 (!%p270_p2), 0.0009765625, %v430_v15  ;;  %v462_v33 = vmul.f32 (!%p270_p2), %v2088_v21, %v2088_v21  ;;  %v451_v35 = vmul.f32 (!%p270_p2), 0.0009765625, %v421_v23  ;;  %v412_v38 = vld [vmem:[%s2881_s2 + $0x48] sm:$0xff] (!%p270_p2)  ;;  %v383_v41 = vsel (!%p270_p2), %vm378_vm0, %v371_v32, 0.0  ;;  %v418_v50 = vld [vmem:[%s2881_s2 + $0x78] sm:$0xff] (!%p270_p2)  ;;  %v405_v1 = vld [vmem:[%s2881_s2 + $0x10] sm:$0xff] (!%p270_p2) }
   0xd   : > { %v422_v42 = vsel %vm378_vm0, %v404_v37, 0.0  ;;  %v459_v46 = vmul.f32 %v2108_v34, %v2108_v34  ;;  %v2127_v47 = vmul.f32 0.0009765625, %v396_v36  ;;  %v384_v48 = vadd.f32 %v383_v41, %v382_v40  ;;  %v413_v9 = vld [vmem:[%s2881_s2 + $0x50] sm:$0xff]  ;;  %v366_v10 = vld [vmem:[%s2880_s1 + $0x20] sm:$0xff]  ;;  %v494_v41 = vld [vmem:[%s2882_s3 + $0x18] sm:$0xff]  ;;  %s2893_s23 = smov (!%p316_p3, %s1587_s23), 3 }
   0xe   : > { %v470_v45 = vsub.f32 %v454_v27, %v462_v33  ;;  %v456_v51 = vmul.f32 0.0009765625, %v436_v39  ;;  %v423_v52 = vsel %vm378_vm0, %v412_v38, 0.0  ;;  %v400_v53 = vsel %vm378_vm0, %v369_v43, 0.0  ;;  %v374_v11 = vld [vmem:[%s2880_s1 + $0x60] sm:$0xff]  ;;  %v368_v22 = vld [vmem:[%s2880_s1 + $0x30] sm:$0xff]  ;;  %s1679_s24 = sshll.u32 %s2893_s23, 7 }
   0xf   : > { %v401_v54 = vsel %vm378_vm0, %v377_v44, 0.0  ;;  %v467_v56 = vsub.f32 %v451_v35, %v459_v46  ;;  %v464_v57 = vmul.f32 %v2127_v47, %v2127_v47  ;;  %v424_v58 = vadd.f32 %v423_v52, %v422_v42  ;;  %v407_v19 = vld [vmem:[%s2881_s2 + $0x20] sm:$0xff]  ;;  %v376_v30 = vld [vmem:[%s2880_s1 + $0x70] sm:$0xff]  ;;  %s2275_s29 = scalar_lea.vmem %s2879_s0, %s1679_s24  ;;  %p329_p4 = scmp.lt.s32.totalorder %s2046_s28, 1 }
  0x10   : > { %v478_v55 = vadd.f32 0.0001, %v470_v45  ;;  %v2143_v60 = vmul.f32 0.0009765625, %v384_v48  ;;  %v402_v61 = vadd.f32 %v401_v54, %v400_v53  ;;  %v440_v62 = vsel %vm378_vm0, %v410_v49, 0.0  ;;  %v415_v20 = vld [vmem:[%s2881_s2 + $0x60] sm:$0xff]  ;;  %v409_v31 = vld [vmem:[%s2881_s2 + $0x30] sm:$0xff] }
  0x11   : > { %v441_v63 = vsel %vm378_vm0, %v418_v50, 0.0  ;;  %v475_v2 = vadd.f32 0.0001, %v467_v56  ;;  %v472_v3 = vsub.f32 %v456_v51, %v464_v57  ;;  %v452_v4 = vmul.f32 0.0009765625, %v424_v58  ;;  %v417_v37 = vld [vmem:[%s2881_s2 + $0x70] sm:$0xff]  ;;  %v491_v51 = vld [vmem:[%s2882_s3] sm:$0xff] }
  0x12   : > { %1968 = vrsqrt.f32 %v478_v55  ;;  %v460_v5 = vmul.f32 %v2143_v60, %v2143_v60  ;;  %v442_v6 = vadd.f32 %v441_v63, %v440_v62  ;;  %v2155_v7 = vmul.f32 0.0009765625, %v402_v61  ;;  %s2895_s28 = smov (!%p329_p4, %s2046_s28), 1 }
  0x13   : > { %v385_v8 = vsel %vm378_vm0, %v364_v59, 0.0  ;;  %1970 = vrsqrt.f32 %v475_v2  ;;  %v480_v12 = vadd.f32 0.0001, %v472_v3  ;;  %v386_v13 = vsel %vm378_vm0, %v372_v0, 0.0  ;;  %v496_v59 = vld [vmem:[%s2882_s3 + $0x28] sm:$0xff]  ;;  %s1681_s23 = sshll.u32 %s2895_s28, 6 }
  0x14   : > { %v425_v14 = vsel %vm378_vm0, %v405_v1, 0.0  ;;  %v468_v15 = vsub.f32 %v452_v4, %v460_v5  ;;  %v458_v16 = vmul.f32 0.0009765625, %v442_v6  ;;  %v466_v17 = vmul.f32 %v2155_v7, %v2155_v7  ;;  %v492_v4 = vld [vmem:[%s2882_s3 + $0x8] sm:$0xff]  ;;  %s2837_s10 = scalar_lea.vmem %s2886_s7, %s1681_s23  ;;  %s2844_s13 = scalar_lea.vmem %s2887_s8, %s1681_s23 }
  0x15   : > { %v387_v18 = vadd.f32 %v386_v13, %v385_v8  ;;  %1972 = vrsqrt.f32 %v480_v12  ;;  %v426_v23 = vsel %vm378_vm0, %v413_v9, 0.0  ;;  %v391_v24 = vsel %vm378_vm0, %v366_v10, 0.0  ;;  %v498_v8 = vld [vmem:[%s2882_s3 + $0x38] sm:$0xff]  ;;  %v507_v13 = vld [vmem:[%s2883_s4] sm:$0xff] }
  0x16   : > { %v392_v25 = vsel %vm378_vm0, %v374_v11, 0.0  ;;  %v476_v26 = vadd.f32 0.0001, %v468_v15  ;;  %v474_v27 = vsub.f32 %v458_v16, %v466_v17  ;;  %v427_v28 = vadd.f32 %v426_v23, %v425_v14  ;;  %v493_v15 = vld [vmem:[%s2882_s3 + $0x10] sm:$0xff] }
  0x17   : > { %v2183_v29 = vmul.f32 0.0009765625, %v387_v18  ;;  %v393_v32 = vadd.f32 %v392_v25, %v391_v24  ;;  %v431_v33 = vsel %vm378_vm0, %v407_v19, 0.0  ;;  %v432_v35 = vsel %vm378_vm0, %v415_v20, 0.0  ;;  %v495_v20 = vld [vmem:[%s2882_s3 + $0x20] sm:$0xff] }
  0x18   : > { %v397_v36 = vsel %vm378_vm0, %v368_v22, 0.0  ;;  %1974 = vrsqrt.f32 %v476_v26  ;;  %v482_v38 = vadd.f32 0.0001, %v474_v27  ;;  %v453_v39 = vmul.f32 0.0009765625, %v427_v28  ;;  %v510_v26 = vld [vmem:[%s2883_s4 + $0x18] sm:$0xff] }
  0x19   : > { %v461_v40 = vmul.f32 %v2183_v29, %v2183_v29  ;;  %v433_v42 = vadd.f32 %v432_v35, %v431_v33  ;;  %v2202_v43 = vmul.f32 0.0009765625, %v393_v32  ;;  %v398_v44 = vsel %vm378_vm0, %v376_v30, 0.0  ;;  %v512_v32 = vld [vmem:[%s2883_s4 + $0x28] sm:$0xff]  ;;  %v509_v33 = vld [vmem:[%s2883_s4 + $0x10] sm:$0xff] }
  0x1a   : > { %v437_v45 = vsel %vm378_vm0, %v409_v31, 0.0  ;;  %1976 = vrsqrt.f32 %v482_v38  ;;  %v399_v48 = vadd.f32 %v398_v44, %v397_v36  ;;  %v438_v49 = vsel %vm378_vm0, %v417_v37, 0.0  ;;  %v514_v38 = vld [vmem:[%s2883_s4 + $0x38] sm:$0xff] }
  0x1b   : > { %v469_v46 = vsub.f32 %v453_v39, %v461_v40  ;;  %v455_v52 = vmul.f32 0.0009765625, %v433_v42  ;;  %v463_v53 = vmul.f32 %v2202_v43, %v2202_v43  ;;  %v439_v54 = vadd.f32 %v438_v49, %v437_v45  ;;  %v513_v42 = vld [vmem:[%s2883_s4 + $0x30] sm:$0xff] }
  0x1c   : > { %v1969_v50 = vpop.eup %1968  ;;  %v2212_v57 = vmul.f32 0.0009765625, %v399_v48  ;;  %v537_v49 = vld [vmem:[%s2275_s29 + $0x30] sm:$0xff]  ;;  %vm805_vm1 = vcmask 523264  }
  0x1d   : > { %v502_v55 = vmul.f32 %v1969_v50, %v494_v41  ;;  %v477_v56 = vadd.f32 0.0001, %v469_v46  ;;  %v1971_v58 = vpop.eup %1970  ;;  %v471_v61 = vsub.f32 %v455_v52, %v463_v53  ;;  %v457_v62 = vmul.f32 0.0009765625, %v439_v54  ;;  %v538_v50 = vld [vmem:[%s2275_s29 + $0x38] sm:$0xff]  ;;  %v531_v52 = vld [vmem:[%s2275_s29] sm:$0xff]  ;;  %v532_v53 = vld [vmem:[%s2275_s29 + $0x8] sm:$0xff] }
  0x1e   : > { %v499_v63 = vmul.f32 %v1971_v58, %v491_v51  ;;  %v465_v0 = vmul.f32 %v2212_v57, %v2212_v57  ;;  %v1627_v51 = vld [vmem:[%s2275_s29 + $0xb0] sm:$0xff]  ;;  %v534_v58 = vld [vmem:[%s2275_s29 + $0x18] sm:$0xff] }
  0x1f   : > { %564 = vperm.xlu1 %1807, %v502_v55   ;;  %1978 = vrsqrt.f32 %v477_v56  ;;  %v1973_v1 = vpop.eup %1972  ;;  %v479_v2 = vadd.f32 0.0001, %v471_v61  ;;  %v518_v23 = vmul.f32 %v502_v55, %v2088_v21  ;;  %v1628_v56 = vld [vmem:[%s2275_s29 + $0xb8] sm:$0xff] }
  0x20   : > { %549 = vperm.xlu0 %1806, %v499_v63   ;;  %v504_v3 = vmul.f32 %v1973_v1, %v496_v59  ;;  %v473_v5 = vsub.f32 %v457_v62, %v465_v0  ;;  %v515_v10 = vmul.f32 %v499_v63, %v2108_v34  ;;  %v508_v34 = vld [vmem:[%s2883_s4 + $0x8] sm:$0xff]  ;;  %v1621_v59 = vld [vmem:[%s2275_s29 + $0x80] sm:$0xff]  ;;  %v1624_v61 = vld [vmem:[%s2275_s29 + $0x98] sm:$0xff] }
  0x21   : > { %1980 = vrsqrt.f32 %v479_v2  ;;  %v526_v31 = vsub.f32 %v510_v26, %v518_v23  ;;  %v1622_v2 = vld [vmem:[%s2275_s29 + $0x88] sm:$0xff]  ;;  %v546_v26 = vld [vmem:[%s2275_s29 + $0x78] sm:$0xff] }
  0x22   : > { %v1975_v6 = vpop.eup %1974  ;;  %v481_v9 = vadd.f32 0.0001, %v473_v5  ;;  %v523_v16 = vsub.f32 %v507_v13, %v515_v10  ;;  %v520_v28 = vmul.f32 %v504_v3, %v2127_v47 }
  0x23   : > { %574 = vperm.xlu1 %1807, %v504_v3   ;;  %v500_v11 = vmul.f32 %v1975_v6, %v492_v4  ;;  %v1623_v3 = vld [vmem:[%s2275_s29 + $0x90] sm:$0xff] }
  0x24   : > { %v1977_v12 = vpop.eup %1976  ;;  %1982 = vrsqrt.f32 %v481_v9  ;;  %v528_v35 = vsub.f32 %v512_v32, %v520_v28  ;;  %v541_v6 = vld [vmem:[%s2275_s29 + $0x50] sm:$0xff]  ;;  %v1636_v28 = vld [vmem:[%s2275_s29 + $0xf8] sm:$0xff] }
  0x25   : > { %554 = vperm.xlu0 %1806, %v500_v11   ;;  %v506_v14 = vmul.f32 %v1977_v12, %v498_v8  ;;  %v516_v17 = vmul.f32 %v500_v11, %v2143_v60  ;;  %v497_v60 = vld [vmem:[%s2882_s3 + $0x30] sm:$0xff]  ;;  %v542_v8 = vld [vmem:[%s2275_s29 + $0x58] sm:$0xff] }
  0x26   : > { %v1631_v9 = vld [vmem:[%s2275_s29 + $0xd0] sm:$0xff] }
  0x27   : > { %584 = vperm.xlu1 %1807, %v506_v14   ;;  %v524_v24 = vsub.f32 %v508_v34, %v516_v17  ;;  %v522_v37 = vmul.f32 %v506_v14, %v2155_v7 }
  0x29   : > { %v1979_v18 = vpop.eup %1978  ;;  %v530_v41 = vsub.f32 %v514_v38, %v522_v37  ;;  %v536_v37 = vld [vmem:[%s2275_s29 + $0x28] sm:$0xff] }
  0x2a   : > { %v501_v19 = vmul.f32 %v1979_v18, %v493_v15  ;;  %v1632_v15 = vld [vmem:[%s2275_s29 + $0xd8] sm:$0xff]  ;;  %v1626_v38 = vld [vmem:[%s2275_s29 + $0xa8] sm:$0xff] }
  0x2b   : > { %v1981_v22 = vpop.eup %1980  ;;  %605 = vperm.xlu1 %1807, %v523_v16  }
  0x2c   : > { %559 = vperm.xlu0 %1806, %v501_v19   ;;  %v503_v25 = vmul.f32 %v1981_v22, %v495_v20  ;;  %v517_v21 = vmul.f32 %v501_v19, %v2183_v29  ;;  %v511_v29 = vld [vmem:[%s2883_s4 + $0x20] sm:$0xff]  ;;  %v545_v20 = vld [vmem:[%s2275_s29 + $0x70] sm:$0xff] }
  0x2e   : > { %v1983_v27 = vpop.eup %1982  ;;  %v525_v36 = vsub.f32 %v509_v33, %v517_v21  ;;  %v519_v47 = vmul.f32 %v503_v25, %v2202_v43 }
  0x2f   : > { %v505_v30 = vmul.f32 %v1983_v27, %v497_v60  ;;  %610 = vperm.xlu1 %1807, %v524_v24   ;;  %v1635_v27 = vld [vmem:[%s2275_s29 + $0xf0] sm:$0xff] }
  0x30   : > { %569 = vperm.xlu0 %1806, %v503_v25   ;;  %v527_v39 = vsub.f32 %v511_v29, %v519_v47  ;;  %v1625_v29 = vld [vmem:[%s2275_s29 + $0xa0] sm:$0xff] }
  0x31   : > { %v521_v40 = vmul.f32 %v505_v30, %v2212_v57  ;;  %v533_v57 = vld [vmem:[%s2275_s29 + $0x10] sm:$0xff] }
  0x33   : > { %620 = vperm.xlu1 %1807, %v526_v31   ;;  %v529_v7 = vsub.f32 %v513_v42, %v521_v40  ;;  %v535_v31 = vld [vmem:[%s2275_s29 + $0x20] sm:$0xff] }
  0x34   : > { %579 = vperm.xlu0 %1806, %v505_v30  }
  0x37   : > { %630 = vperm.xlu1 %1807, %v528_v35  }
  0x38   : > { %615 = vperm.xlu0 %1806, %v525_v36  }
  0x3b   : > { %640 = vperm.xlu1 %1807, %v530_v41  }
  0x3c   : > { %625 = vperm.xlu0 %1806, %v527_v39  }
  0x40   : > { %635 = vperm.xlu0 %1806, %v529_v7  }
  0x9e   : > { %v565_v43 = vpop.permute.xlu1 %564 }
  0x9f   : > { %v550_v44 = vpop.permute.xlu0 %549  ;;  %v2289_v62 = vmul.f32 %v565_v43, %v537_v49  ;;  %v2291_v63 = vmul.f32 %v565_v43, %v538_v50  ;;  %v2295_v4 = vmul.f32 %v1627_v51, %v565_v43  ;;  %v2297_v5 = vmul.f32 %v1628_v56, %v565_v43  ;;  %v540_v49 = vld [vmem:[%s2275_s29 + $0x48] sm:$0xff] }
  0xa0   : > { %v587_v0 = vmul.f32 %v550_v44, %v531_v52  ;;  %v588_v1 = vmul.f32 %v550_v44, %v532_v53  ;;  %v1056_v14 = vmul.f32 %v1621_v59, %v550_v44  ;;  %v1057_v34 = vmul.f32 %v1622_v2, %v550_v44  ;;  %v543_v59 = vld [vmem:[%s2275_s29 + $0x60] sm:$0xff] }
  0xa2   : > { %v575_v45 = vpop.permute.xlu1 %574 }
  0xa3   : > { %v2314_v24 = vmul.f32 %v575_v45, %v541_v6  ;;  %v2316_v25 = vmul.f32 %v575_v45, %v542_v8  ;;  %v2318_v60 = vmul.f32 %v1631_v9, %v575_v45  ;;  %v2325_v21 = vmul.f32 %v1632_v15, %v575_v45 }
  0xa4   : > { %v555_v46 = vpop.permute.xlu0 %554 }
  0xa5   : > { %v589_v10 = vmul.f32 %v555_v46, %v533_v57  ;;  %v590_v11 = vmul.f32 %v555_v46, %v534_v58  ;;  %v1059_v16 = vmul.f32 %v1624_v61, %v555_v46  ;;  %v1058_v19 = vmul.f32 %v1623_v3, %v555_v46  ;;  %v539_v46 = vld [vmem:[%s2275_s29 + $0x40] sm:$0xff]  ;;  %v1630_v58 = vld [vmem:[%s2275_s29 + $0xc8] sm:$0xff] }
  0xa6   : > { %v585_v48 = vpop.permute.xlu1 %584  ;;  %v1629_v57 = vld [vmem:[%s2275_s29 + $0xc0] sm:$0xff] }
  0xa7   : > { %v2343_v7 = vmul.f32 %v585_v48, %v545_v20  ;;  %v2345_v43 = vmul.f32 %v585_v48, %v546_v26  ;;  %v2347_v44 = vmul.f32 %v1635_v27, %v585_v48  ;;  %v2349_v45 = vmul.f32 %v1636_v28, %v585_v48 }
  0xaa   : > { %v606_v55 = vpop.permute.xlu1 %605 }
  0xab   : > { %v2282_v54 = vpop.permute.xlu0 %559  ;;  %v2305_v17 = vadd.f32 %v606_v55, %v587_v0  ;;  %v2307_v18 = vadd.f32 %v606_v55, %v588_v1  ;;  %v2339_v41 = vadd.f32 %v1056_v14, %v606_v55  ;;  %v2341_v42 = vadd.f32 %v1057_v34, %v606_v55 }
  0xac   : > { %v591_v50 = vmul.f32 %v2282_v54, %v535_v31  ;;  %v592_v48 = vmul.f32 %v2282_v54, %v536_v37  ;;  %v1060_v55 = vmul.f32 %v1625_v29, %v2282_v54  ;;  %v1061_v56 = vmul.f32 %v1626_v38, %v2282_v54  ;;  %v544_v54 = vld [vmem:[%s2275_s29 + $0x68] sm:$0xff] }
  0xad   : > { %v659_v39 = vmax.f32 %v2305_v17, 0.0  ;;  %v660_v40 = vmax.f32 %v2307_v18, 0.0  ;;  %v1088_v3 = vmax.f32 %v2339_v41, 0.0  ;;  %v1089_v6 = vmax.f32 %v2341_v42, 0.0 }
  0xae   : > { %v611_v13 = vpop.permute.xlu1 %610 }
  0xaf   : > { %v2302_v12 = vpop.permute.xlu0 %569  ;;  %v2310_v22 = vadd.f32 %v611_v13, %v589_v10  ;;  %v2312_v23 = vadd.f32 %v611_v13, %v590_v11  ;;  %v2323_v30 = vadd.f32 %v1059_v16, %v611_v13  ;;  %v2332_v36 = vadd.f32 %v1058_v19, %v611_v13  ;;  %v1634_v19 = vld [vmem:[%s2275_s29 + $0xe8] sm:$0xff] }
  0xb0   : > { %v595_v1 = vmul.f32 %v2302_v12, %v539_v46  ;;  %v596_v2 = vmul.f32 %v2302_v12, %v540_v49  ;;  %v1064_v14 = vmul.f32 %v1629_v57, %v2302_v12  ;;  %v1065_v15 = vmul.f32 %v1630_v58, %v2302_v12 }
  0xb1   : > { %v661_v33 = vmax.f32 %v2310_v22, 0.0  ;;  %v662_v35 = vmax.f32 %v2312_v23, 0.0  ;;  %v1091_v51 = vmax.f32 %v2323_v30, 0.0  ;;  %v1090_v61 = vmax.f32 %v2332_v36, 0.0 }
  0xb2   : > { %v621_v47 = vpop.permute.xlu1 %620 }
  0xb3   : > { %v2328_v32 = vpop.permute.xlu0 %579  ;;  %v2359_v52 = vpack.i.bf16 %v662_v35, %v660_v40  ;;  %v2365_v53 = vpack.i.bf16 %v661_v33, %v659_v39  ;;  %v2386_v10 = vadd.f32 %v621_v47, %v2289_v62  ;;  %v2389_v11 = vadd.f32 %v621_v47, %v2291_v63  ;;  %v1633_v62 = vld [vmem:[%s2275_s29 + $0xe0] sm:$0xff] }
  0xb4   : > { %v599_v16 = vmul.f32 %v2328_v32, %v543_v59  ;;  %v2400_v34 = vpack.i.bf16 %v1091_v51, %v1089_v6  ;;  %v2407_v20 = vadd.f32 %v2295_v4, %v621_v47  ;;  %v2410_v26 = vadd.f32 %v2297_v5, %v621_v47 }
  0xb5   : > { %1814 = vrot.lane.b32.xlu1 %v2359_v52, %s1993_s30  ;;  %1809 = vrot.lane.b32.xlu0 %v2365_v53, %s1993_s30  ;;  %v2416_v12 = vpack.i.bf16 %v1090_v61, %v1088_v3  ;;  %v600_v28 = vmul.f32 %v2328_v32, %v544_v54  ;;  %v665_v29 = vmax.f32 %v2386_v10, 0.0  ;;  %v666_v38 = vmax.f32 %v2389_v11, 0.0 }
  0xb6   : > { %v631_v13 = vpop.permute.xlu1 %630  ;;  %v1069_v46 = vmul.f32 %v1634_v19, %v2328_v32  ;;  %v2490_v17 = vpack.c.bf16 %v1090_v61, %v1088_v3 }
  0xb7   : > { %v616_v0 = vpop.permute.xlu0 %615  ;;  %v2422_v37 = vadd.f32 %v631_v13, %v2314_v24  ;;  %v2425_v4 = vadd.f32 %v631_v13, %v2316_v25  ;;  %v1068_v24 = vmul.f32 %v1633_v62, %v2328_v32  ;;  %v2438_v25 = vadd.f32 %v2318_v60, %v631_v13 }
  0xb8   : > { %v2381_v8 = vadd.f32 %v616_v0, %v591_v50  ;;  %v2383_v9 = vadd.f32 %v616_v0, %v592_v48  ;;  %v2404_v63 = vadd.f32 %v1060_v55, %v616_v0  ;;  %v2419_v31 = vadd.f32 %v1061_v56, %v616_v0 }
  0xb9   : > { %1824 = vrot.lane.b32.xlu1 %v2400_v34, %s1993_s30  ;;  %1819 = vrot.lane.b32.xlu0 %v2416_v12, %s1993_s30  ;;  %v1083_v49 = vadd.f32 %v2325_v21, %v631_v13  ;;  %v1094_v48 = vmax.f32 %v2407_v20, 0.0  ;;  %v1095_v55 = vmax.f32 %v2410_v26, 0.0  ;;  %v669_v0 = vmax.f32 %v2422_v37, 0.0 }
  0xba   : > { %v663_v5 = vmax.f32 %v2381_v8, 0.0  ;;  %v664_v47 = vmax.f32 %v2383_v9, 0.0  ;;  %v1092_v50 = vmax.f32 %v2404_v63, 0.0  ;;  %v641_v57 = vpop.permute.xlu1 %640  ;;  %v1093_v58 = vmax.f32 %v2419_v31, 0.0 }
  0xbb   : > { %v626_v27 = vpop.permute.xlu0 %625  ;;  %v670_v32 = vmax.f32 %v2425_v4, 0.0  ;;  %v1098_v10 = vmax.f32 %v2438_v25, 0.0  ;;  %v1099_v11 = vmax.f32 %v1083_v49, 0.0  ;;  %v658_v13 = vadd.f32 %v641_v57, %v2345_v43 }
  0xbc   : > { %v651_v56 = vadd.f32 %v626_v27, %v595_v1  ;;  %v652_v59 = vadd.f32 %v626_v27, %v596_v2  ;;  %v1080_v60 = vadd.f32 %v1064_v14, %v626_v27  ;;  %v1081_v8 = vadd.f32 %v1065_v15, %v626_v27 }
  0xbd   : > { %v2447_v9 = vpack.i.bf16 %v666_v38, %v664_v47  ;;  %v2449_v21 = vpack.i.bf16 %v665_v29, %v663_v5  ;;  %v657_v1 = vadd.f32 %v641_v57, %v2343_v7  ;;  %v1086_v19 = vadd.f32 %v2347_v44, %v641_v57 }
  0xbe   : > { %v667_v62 = vmax.f32 %v651_v56, 0.0  ;;  %v1087_v63 = vadd.f32 %v2349_v45, %v641_v57  ;;  %v668_v14 = vmax.f32 %v652_v59, 0.0  ;;  %v1096_v27 = vmax.f32 %v1080_v60, 0.0 }
  0xbf   : > { %v636_v54 = vpop.permute.xlu0 %635  ;;  %1834 = vrot.lane.b32.xlu1 %v2447_v9, %s1993_s30  ;;  %1829 = vrot.lane.b32.xlu0 %v2449_v21, %s1993_s30  ;;  %v1097_v7 = vmax.f32 %v1081_v8, 0.0  ;;  %v1843_v31 = vpack.i.bf16 %v1095_v55, %v1093_v58  ;;  %v1838_v43 = vpack.i.bf16 %v1094_v48, %v1092_v50  ;;  %v673_v37 = vmax.f32 %v657_v1, 0.0 }
  0xc0   : > { %v655_v2 = vadd.f32 %v636_v54, %v599_v16  ;;  %v656_v15 = vadd.f32 %v636_v54, %v600_v28  ;;  %v1084_v20 = vadd.f32 %v1068_v24, %v636_v54  ;;  %v1085_v26 = vadd.f32 %v1069_v46, %v636_v54 }
  0xc1   : > { %v674_v4 = vmax.f32 %v658_v13, 0.0  ;;  %v1102_v44 = vmax.f32 %v1086_v19, 0.0  ;;  %v1103_v25 = vmax.f32 %v1087_v63, 0.0  ;;  %v1853_v57 = vpack.i.bf16 %v670_v32, %v668_v14 }
  0xc2   : > { %v671_v16 = vmax.f32 %v655_v2, 0.0  ;;  %v672_v45 = vmax.f32 %v656_v15, 0.0  ;;  %v1100_v49 = vmax.f32 %v1084_v20, 0.0  ;;  %v1101_v56 = vmax.f32 %v1085_v26, 0.0 }
  0xc3   : > { %1844 = vrot.lane.b32.xlu1 %v1843_v31, %s1993_s30  ;;  %1839 = vrot.lane.b32.xlu0 %v1838_v43, %s1993_s30  ;;  %v1848_v28 = vpack.i.bf16 %v669_v0, %v667_v62  ;;  %v1863_v24 = vpack.i.bf16 %v1099_v11, %v1097_v7  ;;  %v1858_v46 = vpack.i.bf16 %v1098_v10, %v1096_v27 }
  0xc4   : > { %v2466_v59 = vpack.c.bf16 %v662_v35, %v660_v40  ;;  %v2472_v54 = vpack.c.bf16 %v661_v33, %v659_v39  ;;  %v2474_v60 = vpack.c.bf16 %v666_v38, %v664_v47  ;;  %v2480_v8 = vpack.c.bf16 %v1091_v51, %v1089_v6 }
  0xc5   : > { %v2482_v1 = vpack.c.bf16 %v665_v29, %v663_v5  ;;  %v2492_v18 = vpack.c.bf16 %v670_v32, %v668_v14  ;;  %v2494_v22 = vpack.c.bf16 %v1095_v55, %v1093_v58  ;;  %v2496_v23 = vpack.c.bf16 %v669_v0, %v667_v62 }
  0xc6   : > { %v2498_v30 = vpack.c.bf16 %v1094_v48, %v1092_v50  ;;  %v2500_v33 = vpack.c.bf16 %v674_v4, %v672_v45  ;;  %v2502_v35 = vpack.c.bf16 %v1099_v11, %v1097_v7  ;;  %v2504_v39 = vpack.c.bf16 %v673_v37, %v671_v16 }
  0xc7   : > { %1854 = vrot.lane.b32.xlu1 %v1853_v57, %s1993_s30  ;;  %1849 = vrot.lane.b32.xlu0 %v1848_v28, %s1993_s30  ;;  %v2506_v40 = vpack.c.bf16 %v1098_v10, %v1096_v27  ;;  %v2508_v41 = vpack.c.bf16 %v1103_v25, %v1101_v56  ;;  %v2510_v36 = vpack.c.bf16 %v1102_v44, %v1100_v49 }
  0xc8   : > { %v1873_v42 = vpack.i.bf16 %v674_v4, %v672_v45  ;;  %v1868_v51 = vpack.i.bf16 %v673_v37, %v671_v16  ;;  %v1883_v61 = vpack.i.bf16 %v1103_v25, %v1101_v56  ;;  %v1878_v3 = vpack.i.bf16 %v1102_v44, %v1100_v49 }
  0xcb   : > { %1864 = vrot.lane.b32.xlu1 %v1863_v24, %s1993_s30  ;;  %1859 = vrot.lane.b32.xlu0 %v1858_v46, %s1993_s30 }
  0xcf   : > { %1874 = vrot.lane.b32.xlu1 %v1873_v42, %s1993_s30  ;;  %1869 = vrot.lane.b32.xlu0 %v1868_v51, %s1993_s30 }
  0xd3   : > { %1884 = vrot.lane.b32.xlu1 %v1883_v61, %s1993_s30  ;;  %1879 = vrot.lane.b32.xlu0 %v1878_v3, %s1993_s30  ;;  %s2783_s30 = scalar_lea.vmem %s2885_s6, %s1679_s24 }
  0xd7   : > { %1894 = vrot.lane.b32.xlu1 %v2359_v52, %s1994_s9  ;;  %1889 = vrot.lane.b32.xlu0 %v2365_v53, %s1994_s9  ;;  %v347_v52 = vld [vmem:[%s2884_s5 + $0x8] sm:$0xff]  ;;  %v339_v53 = vlaneseq }
  0xd8   : > { %1613 = vmatprep.mubr.msk.f32.mxu0 %vm805_vm1, %v347_v52  ;;  %1653 = vmatprep.mubr.msk.f32.mxu1 %vm805_vm1, %v347_v52 }
  0xd9   : > { %v2529_v6 = vand.u32 127, %v339_v53 }
  0xdb   : > { %1904 = vrot.lane.b32.xlu1 %v2400_v34, %s1994_s9  ;;  %1899 = vrot.lane.b32.xlu0 %v2416_v12, %s1994_s9  ;;  %vm707_vm2 = vcmp.lt.s32.totalorder %v2529_v6, 1  ;;  %vm342_vm3 = vcmp.gt.s32.totalorder %v2529_v6, 0  ;;  %vm772_vm5 = vcmp.lt.s32.totalorder %v2529_v6, 127 }
  0xdc   : > { %vm2541_vm4 = vmpackc.low %vm342_vm3, %vm342_vm3 }
  0xdf   : > { %1914 = vrot.lane.b32.xlu1 %v2447_v9, %s1994_s9  ;;  %1909 = vrot.lane.b32.xlu0 %v2449_v21, %s1994_s9 }
  0xe3   : > { %1924 = vrot.lane.b32.xlu1 %v1843_v31, %s1994_s9  ;;  %1919 = vrot.lane.b32.xlu0 %v1838_v43, %s1994_s9 }
  0xe7   : > { %1934 = vrot.lane.b32.xlu1 %v1853_v57, %s1994_s9  ;;  %1929 = vrot.lane.b32.xlu0 %v1848_v28, %s1994_s9 }
  0xeb   : > { %1944 = vrot.lane.b32.xlu1 %v1863_v24, %s1994_s9  ;;  %1939 = vrot.lane.b32.xlu0 %v1858_v46, %s1994_s9 }
  0xef   : > { %1954 = vrot.lane.b32.xlu1 %v1873_v42, %s1994_s9  ;;  %1949 = vrot.lane.b32.xlu0 %v1868_v51, %s1994_s9 }
  0xf3   : > { %1964 = vrot.lane.b32.xlu1 %v1883_v61, %s1994_s9  ;;  %1959 = vrot.lane.b32.xlu0 %v1878_v3, %s1994_s9 }
 0x127   : > { %v1815_v34 = vpop.permute.xlu1 %1814  ;;  %v1810_v47 = vpop.permute.xlu0 %1809 }
 0x128   : > { %v1817_v12 = vunpack.i.h.bf16 %v1815_v34  ;;  %v1816_v5 = vunpack.i.l.bf16 %v1815_v34  ;;  %v1812_v29 = vunpack.i.h.bf16 %v1810_v47  ;;  %v1811_v38 = vunpack.i.l.bf16 %v1810_v47 }
 0x12a   : > { %v708_v48 = vsel %vm707_vm2, %v1811_v38, %v1816_v5  ;;  %v709_v55 = vsel %vm707_vm2, %v1812_v29, %v1817_v12  ;;  %v716_v58 = vsel %vm707_vm2, %v1816_v5, %v1811_v38  ;;  %v717_v0 = vsel %vm707_vm2, %v1817_v12, %v1812_v29 }
 0x12b   : > { %v1825_v50 = vpop.permute.xlu1 %1824  ;;  %v1820_v21 = vpop.permute.xlu0 %1819  ;;  %v1683_v10 = vpack.c.bf16 %v709_v55, %v708_v48  ;;  %v1685_v11 = vpack.c.bf16 %v717_v0, %v716_v58 }
 0x12c   : > { %v1827_v32 = vunpack.i.h.bf16 %v1825_v50  ;;  %v1826_v9 = vunpack.i.l.bf16 %v1825_v50  ;;  %v1822_v62 = vunpack.i.h.bf16 %v1820_v21  ;;  %v1821_v2 = vunpack.i.l.bf16 %v1820_v21 }
 0x12d   : > { %1684 = vmatprep.subr.bf16.mxu0 %v1683_v10 }
 0x12e   : > { %1687 = vmatpush1.bf16.msk.msra.mxu0 %vm2541_vm4, %v1685_v11  ;;  %v1136_v19 = vsel %vm707_vm2, %v1821_v2, %v1826_v9  ;;  %v1137_v63 = vsel %vm707_vm2, %v1822_v62, %v1827_v32  ;;  %v1144_v14 = vsel %vm707_vm2, %v1826_v9, %v1821_v2  ;;  %v1145_v15 = vsel %vm707_vm2, %v1827_v32, %v1822_v62 }
 0x12f   : > { %v1739_v20 = vpack.c.bf16 %v1137_v63, %v1136_v19  ;;  %v1741_v26 = vpack.c.bf16 %v1145_v15, %v1144_v14 }
 0x131   : > { %v1835_v27 = vpop.permute.xlu1 %1834  ;;  %v1830_v7 = vpop.permute.xlu0 %1829  ;;  %1740 = vmatprep.subr.bf16.mxu1 %v1739_v20 }
 0x132   : > { %v1837_v31 = vunpack.i.h.bf16 %v1835_v27  ;;  %v1836_v43 = vunpack.i.l.bf16 %v1835_v27  ;;  %v1832_v37 = vunpack.i.h.bf16 %v1830_v7  ;;  %v1831_v16 = vunpack.i.l.bf16 %v1830_v7  ;;  %1743 = vmatpush1.bf16.msk.msra.mxu1 %vm2541_vm4, %v1741_v26 }
 0x134   : > { %v719_v4 = vsel %vm707_vm2, %v1837_v31, %v1832_v37  ;;  %v718_v44 = vsel %vm707_vm2, %v1836_v43, %v1831_v16  ;;  %v710_v25 = vsel %vm707_vm2, %v1831_v16, %v1836_v43  ;;  %v711_v45 = vsel %vm707_vm2, %v1832_v37, %v1837_v31 }
 0x135   : > { %v1690_v49 = vpack.c.bf16 %v719_v4, %v718_v44  ;;  %v1845_v56 = vpop.permute.xlu1 %1844  ;;  %v1840_v57 = vpop.permute.xlu0 %1839  ;;  %v1688_v28 = vpack.c.bf16 %v711_v45, %v710_v25 }
 0x136   : > { %v1847_v24 = vunpack.i.h.bf16 %v1845_v56  ;;  %v1846_v46 = vunpack.i.l.bf16 %v1845_v56  ;;  %v1842_v42 = vunpack.i.h.bf16 %v1840_v57  ;;  %v1841_v51 = vunpack.i.l.bf16 %v1840_v57 }
 0x137   : > { %1689 = vmatprep.subr.bf16.mxu0 %v1688_v28 }
 0x138   : > { %v1147_v61 = vsel %vm707_vm2, %v1847_v24, %v1842_v42  ;;  %v1146_v3 = vsel %vm707_vm2, %v1846_v46, %v1841_v51  ;;  %1692 = vmatpush1.bf16.msk.msra.mxu0 %vm2541_vm4, %v1690_v49  ;;  %v1138_v52 = vsel %vm707_vm2, %v1841_v51, %v1846_v46  ;;  %v1139_v53 = vsel %vm707_vm2, %v1842_v42, %v1847_v24 }
 0x139   : > { %v1746_v34 = vpack.c.bf16 %v1147_v61, %v1146_v3  ;;  %v1855_v12 = vpop.permute.xlu1 %1854  ;;  %v1850_v5 = vpop.permute.xlu0 %1849  ;;  %v1744_v47 = vpack.c.bf16 %v1139_v53, %v1138_v52 }
 0x13a   : > { %v1857_v29 = vunpack.i.h.bf16 %v1855_v12  ;;  %v1856_v38 = vunpack.i.l.bf16 %v1855_v12  ;;  %v1852_v50 = vunpack.i.h.bf16 %v1850_v5  ;;  %v1851_v48 = vunpack.i.l.bf16 %v1850_v5 }
 0x13b   : > { %1745 = vmatprep.subr.bf16.mxu1 %v1744_v47 }
 0x13c   : > { %v721_v55 = vsel %vm707_vm2, %v1857_v29, %v1852_v50  ;;  %v720_v58 = vsel %vm707_vm2, %v1856_v38, %v1851_v48  ;;  %1748 = vmatpush1.bf16.msk.msra.mxu1 %vm2541_vm4, %v1746_v34  ;;  %v712_v0 = vsel %vm707_vm2, %v1851_v48, %v1856_v38  ;;  %v713_v32 = vsel %vm707_vm2, %v1852_v50, %v1857_v29 }
 0x13d   : > { %v1695_v9 = vpack.c.bf16 %v721_v55, %v720_v58  ;;  %v1865_v21 = vpop.permute.xlu1 %1864  ;;  %v1860_v10 = vpop.permute.xlu0 %1859  ;;  %v1693_v11 = vpack.c.bf16 %v713_v32, %v712_v0 }
 0x13e   : > { %v1867_v62 = vunpack.i.h.bf16 %v1865_v21  ;;  %v1866_v2 = vunpack.i.l.bf16 %v1865_v21  ;;  %v1862_v19 = vunpack.i.h.bf16 %v1860_v10  ;;  %v1861_v63 = vunpack.i.l.bf16 %v1860_v10 }
 0x13f   : > { %1694 = vmatprep.subr.bf16.mxu0 %v1693_v11 }
 0x140   : > { %v1149_v14 = vsel %vm707_vm2, %v1867_v62, %v1862_v19  ;;  %v1148_v15 = vsel %vm707_vm2, %v1866_v2, %v1861_v63  ;;  %1697 = vmatpush1.bf16.msk.msra.mxu0 %vm2541_vm4, %v1695_v9  ;;  %v1140_v20 = vsel %vm707_vm2, %v1861_v63, %v1866_v2  ;;  %v1141_v26 = vsel %vm707_vm2, %v1862_v19, %v1867_v62 }
 0x141   : > { %v1751_v27 = vpack.c.bf16 %v1149_v14, %v1148_v15  ;;  %v1875_v7 = vpop.permute.xlu1 %1874  ;;  %v1870_v31 = vpop.permute.xlu0 %1869  ;;  %v1749_v43 = vpack.c.bf16 %v1141_v26, %v1140_v20  ;;  %v350_v20 = vld [vmem:[%s2884_s5 + $0x20] sm:$0xff] }
 0x142   : > { %v1877_v37 = vunpack.i.h.bf16 %v1875_v7  ;;  %v1876_v16 = vunpack.i.l.bf16 %v1875_v7  ;;  %v1872_v4 = vunpack.i.h.bf16 %v1870_v31  ;;  %v1871_v44 = vunpack.i.l.bf16 %v1870_v31 }
 0x143   : > { %1750 = vmatprep.subr.bf16.mxu1 %v1749_v43 }
 0x144   : > { %v723_v25 = vsel %vm707_vm2, %v1877_v37, %v1872_v4  ;;  %v722_v45 = vsel %vm707_vm2, %v1876_v16, %v1871_v44  ;;  %1753 = vmatpush1.bf16.msk.msra.mxu1 %vm2541_vm4, %v1751_v27  ;;  %v714_v49 = vsel %vm707_vm2, %v1871_v44, %v1876_v16  ;;  %v715_v56 = vsel %vm707_vm2, %v1872_v4, %v1877_v37 }
 0x145   : > { %v1700_v57 = vpack.c.bf16 %v723_v25, %v722_v45  ;;  %v1885_v28 = vpop.permute.xlu1 %1884  ;;  %v1880_v24 = vpop.permute.xlu0 %1879  ;;  %v1698_v46 = vpack.c.bf16 %v715_v56, %v714_v49 }
 0x146   : > { %v1887_v42 = vunpack.i.h.bf16 %v1885_v28  ;;  %v1886_v51 = vunpack.i.l.bf16 %v1885_v28  ;;  %v1882_v61 = vunpack.i.h.bf16 %v1880_v24  ;;  %v1881_v3 = vunpack.i.l.bf16 %v1880_v24 }
 0x147   : > { %1699 = vmatprep.subr.bf16.mxu0 %v1698_v46 }
 0x148   : > { %v1151_v52 = vsel %vm707_vm2, %v1887_v42, %v1882_v61  ;;  %v1150_v53 = vsel %vm707_vm2, %v1886_v51, %v1881_v3  ;;  %1702 = vmatpush1.bf16.msk.msra.mxu0 %vm2541_vm4, %v1700_v57  ;;  %v1142_v34 = vsel %vm707_vm2, %v1881_v3, %v1886_v51  ;;  %v1143_v12 = vsel %vm707_vm2, %v1882_v61, %v1887_v42 }
 0x149   : > { %v1756_v5 = vpack.c.bf16 %v1151_v52, %v1150_v53  ;;  %v1895_v47 = vpop.permute.xlu1 %1894  ;;  %v1890_v29 = vpop.permute.xlu0 %1889  ;;  %1704 = vmatprep.subr.bf16.mxu0 %v2466_v59  ;;  %v1754_v38 = vpack.c.bf16 %v1143_v12, %v1142_v34  ;;  %v341_v59 = vadd.s32 128, %v2529_v6  ;;  %v348_v6 = vld [vmem:[%s2884_s5 + $0x10] sm:$0xff] }
 0x14a   : > { %v1897_v50 = vunpack.i.h.bf16 %v1895_v47  ;;  %v1896_v48 = vunpack.i.l.bf16 %v1895_v47  ;;  %v1892_v55 = vunpack.i.h.bf16 %v1890_v29  ;;  %v1891_v58 = vunpack.i.l.bf16 %v1890_v29 }
 0x14b   : > { %1755 = vmatprep.subr.bf16.mxu1 %v1754_v38  ;;  %vm345_vm6 = vcmp.lt.s32.totalorder %v341_v59, 255 }
 0x14c   : > { %1706 = vmatpush1.bf16.msra.mxu0 %v2472_v54  ;;  %1758 = vmatpush1.bf16.msk.msra.mxu1 %vm2541_vm4, %v1756_v5  ;;  %v782_v54 = vsel %vm772_vm5, %v1897_v50, %v1892_v55  ;;  %v781_v13 = vsel %vm772_vm5, %v1896_v48, %v1891_v58  ;;  %v773_v19 = vsel %vm772_vm5, %v1891_v58, %v1896_v48  ;;  %vm2645_vm7 = vmpackc.low %vm345_vm6, %vm345_vm6 }
 0x14d   : > { %v1905_v0 = vpop.permute.xlu1 %1904  ;;  %v1900_v32 = vpop.permute.xlu0 %1899  ;;  %1708 = vmatprep.subr.bf16.mxu0 %v2474_v60  ;;  %1760 = vmatprep.subr.bf16.mxu1 %v2480_v8  ;;  %v1719_v63 = vpack.c.bf16 %v782_v54, %v781_v13  ;;  %v774_v15 = vsel %vm772_vm5, %v1892_v55, %v1897_v50 }
 0x14e   : > { %v1907_v9 = vunpack.i.h.bf16 %v1905_v0  ;;  %v1902_v21 = vunpack.i.h.bf16 %v1900_v32  ;;  %v1906_v8 = vunpack.i.l.bf16 %v1905_v0  ;;  %v1901_v11 = vunpack.i.l.bf16 %v1900_v32 }
 0x14f   : > { %v1722_v45 = vpack.c.bf16 %v774_v15, %v773_v19 }
 0x150   : > { %1710 = vmatpush1.bf16.msra.mxu0 %v2482_v1  ;;  %1762 = vmatpush1.bf16.msra.mxu1 %v2490_v17  ;;  %v1200_v26 = vsel %vm772_vm5, %v1901_v11, %v1906_v8 }
 0x151   : > { %v1915_v10 = vpop.permute.xlu1 %1914  ;;  %v1910_v60 = vpop.permute.xlu0 %1909  ;;  %1712 = vmatprep.subr.bf16.mxu0 %v2492_v18  ;;  %1764 = vmatprep.subr.bf16.mxu1 %v2494_v22  ;;  %v1209_v18 = vsel %vm772_vm5, %v1907_v9, %v1902_v21 }
 0x152   : > { %v1917_v62 = vunpack.i.h.bf16 %v1915_v10  ;;  %v1912_v1 = vunpack.i.h.bf16 %v1910_v60  ;;  %v1916_v17 = vunpack.i.l.bf16 %v1915_v10  ;;  %v1911_v2 = vunpack.i.l.bf16 %v1910_v60 }
 0x154   : > { %1714 = vmatpush1.bf16.msra.mxu0 %v2496_v23  ;;  %1766 = vmatpush1.bf16.msra.mxu1 %v2498_v30  ;;  %v1208_v23 = vsel %vm772_vm5, %v1906_v8, %v1901_v11  ;;  %v784_v30 = vsel %vm772_vm5, %v1917_v62, %v1912_v1  ;;  %v783_v43 = vsel %vm772_vm5, %v1916_v17, %v1911_v2 }
 0x155   : > { %v1925_v14 = vpop.permute.xlu1 %1924  ;;  %v1920_v22 = vpop.permute.xlu0 %1919  ;;  %1716 = vmatprep.subr.bf16.mxu0 %v2500_v33  ;;  %1768 = vmatprep.subr.bf16.mxu1 %v2502_v35  ;;  %v1201_v33 = vsel %vm772_vm5, %v1902_v21, %v1907_v9  ;;  %v775_v37 = vsel %vm772_vm5, %v1911_v2, %v1916_v17  ;;  %v776_v16 = vsel %vm772_vm5, %v1912_v1, %v1917_v62 }
 0x156   : > { %v1927_v35 = vunpack.i.h.bf16 %v1925_v14  ;;  %v1926_v27 = vunpack.i.l.bf16 %v1925_v14  ;;  %v1922_v7 = vunpack.i.h.bf16 %v1920_v22  ;;  %v1921_v31 = vunpack.i.l.bf16 %v1920_v22 }
 0x157   : > { %v1775_v4 = vpack.c.bf16 %v1209_v18, %v1208_v23  ;;  %v1778_v49 = vpack.c.bf16 %v1201_v33, %v1200_v26  ;;  %v1724_v28 = vpack.c.bf16 %v784_v30, %v783_v43  ;;  %v1727_v42 = vpack.c.bf16 %v776_v16, %v775_v37  ;;  %v346_v43 = vld [vmem:[%s2884_s5] sm:$0xff]  ;;  %v349_v37 = vld [vmem:[%s2884_s5 + $0x18] sm:$0xff]  ;;  %v351_v16 = vld [vmem:[%s2884_s5 + $0x28] sm:$0xff] }
 0x158   : > { %1718 = vmatpush1.bf16.msra.mxu0 %v2504_v39  ;;  %1770 = vmatpush1.bf16.msra.mxu1 %v2506_v40  ;;  %v1211_v24 = vsel %vm772_vm5, %v1927_v35, %v1922_v7  ;;  %v1210_v46 = vsel %vm772_vm5, %v1926_v27, %v1921_v31  ;;  %v1202_v61 = vsel %vm772_vm5, %v1921_v31, %v1926_v27 }
 0x159   : > { %v1935_v44 = vpop.permute.xlu1 %1934  ;;  %v1930_v25 = vpop.permute.xlu0 %1929  ;;  %1721 = vmatprep.subr.msk.bf16.mxu0 %vm2645_vm7, %v1719_v63  ;;  %1772 = vmatprep.subr.bf16.mxu1 %v2508_v41  ;;  %v1780_v38 = vpack.c.bf16 %v1211_v24, %v1210_v46 }
 0x15a   : > { %v1937_v56 = vunpack.i.h.bf16 %v1935_v44  ;;  %v1936_v39 = vunpack.i.l.bf16 %v1935_v44  ;;  %v1932_v57 = vunpack.i.h.bf16 %v1930_v25  ;;  %v1931_v40 = vunpack.i.l.bf16 %v1930_v25  ;;  %v352_v44 = vld [vmem:[%s2884_s5 + $0x30] sm:$0xff]  ;;  %v355_v25 = vld [vmem:[%s2884_s5 + $0x48] sm:$0xff] }
 0x15c   : > { %v786_v51 = vsel %vm772_vm5, %v1937_v56, %v1932_v57  ;;  %v785_v41 = vsel %vm772_vm5, %v1936_v39, %v1931_v40  ;;  %1723 = vmatpush1.bf16.msra.mxu0 %v1722_v45  ;;  %1774 = vmatpush1.bf16.msra.mxu1 %v2510_v36  ;;  %v777_v53 = vsel %vm772_vm5, %v1931_v40, %v1936_v39  ;;  %v354_v45 = vld [vmem:[%s2884_s5 + $0x40] sm:$0xff]  ;;  %v359_v39 = vld [vmem:[%s2884_s5 + $0x68] sm:$0xff]  ;;  %v361_v40 = vld [vmem:[%s2884_s5 + $0x78] sm:$0xff] }
 0x15d   : > { %v1945_v3 = vpop.permute.xlu1 %1944  ;;  %v1940_v52 = vpop.permute.xlu0 %1939  ;;  %1726 = vmatprep.subr.msk.bf16.mxu0 %vm2645_vm7, %v1724_v28  ;;  %1777 = vmatprep.subr.msk.bf16.mxu1 %vm2645_vm7, %v1775_v4  ;;  %v778_v34 = vsel %vm772_vm5, %v1932_v57, %v1937_v56  ;;  %v1203_v36 = vsel %vm772_vm5, %v1922_v7, %v1927_v35  ;;  %v1729_v50 = vpack.c.bf16 %v786_v51, %v785_v41  ;;  %v353_v4 = vld [vmem:[%s2884_s5 + $0x38] sm:$0xff]  ;;  %v356_v56 = vld [vmem:[%s2884_s5 + $0x50] sm:$0xff]  ;;  %v358_v57 = vld [vmem:[%s2884_s5 + $0x60] sm:$0xff] }
 0x15e   : > { %v1947_v12 = vunpack.i.h.bf16 %v1945_v3  ;;  %v1946_v5 = vunpack.i.l.bf16 %v1945_v3  ;;  %v1942_v47 = vunpack.i.h.bf16 %v1940_v52  ;;  %v1941_v29 = vunpack.i.l.bf16 %v1940_v52  ;;  %v360_v28 = vld [vmem:[%s2884_s5 + $0x70] sm:$0xff] }
 0x15f   : > { %v1783_v58 = vpack.c.bf16 %v1203_v36, %v1202_v61  ;;  %v1732_v59 = vpack.c.bf16 %v778_v34, %v777_v53 }
 0x160   : > { %v1213_v48 = vsel %vm772_vm5, %v1947_v12, %v1942_v47  ;;  %v1212_v55 = vsel %vm772_vm5, %v1946_v5, %v1941_v29  ;;  %1728 = vmatpush1.bf16.msra.mxu0 %v1727_v42  ;;  %1779 = vmatpush1.bf16.msra.mxu1 %v1778_v49  ;;  %v1204_v54 = vsel %vm772_vm5, %v1941_v29, %v1946_v5  ;;  %v357_v49 = vld [vmem:[%s2884_s5 + $0x58] sm:$0xff] }
 0x161   : > { %v1955_v0 = vpop.permute.xlu1 %1954  ;;  %v1950_v32 = vpop.permute.xlu0 %1949  ;;  %1731 = vmatprep.subr.msk.bf16.mxu0 %vm2645_vm7, %v1729_v50  ;;  %1782 = vmatprep.subr.msk.bf16.mxu1 %vm2645_vm7, %v1780_v38  ;;  %v1205_v13 = vsel %vm772_vm5, %v1942_v47, %v1947_v12  ;;  %v1785_v8 = vpack.c.bf16 %v1213_v48, %v1212_v55 }
 0x162   : > { %v1957_v9 = vunpack.i.h.bf16 %v1955_v0  ;;  %v1956_v21 = vunpack.i.l.bf16 %v1955_v0  ;;  %v1952_v10 = vunpack.i.h.bf16 %v1950_v32  ;;  %v1951_v60 = vunpack.i.l.bf16 %v1950_v32 }
 0x163   : > { %v1788_v18 = vpack.c.bf16 %v1205_v13, %v1204_v54 }
 0x164   : > { %v788_v11 = vsel %vm772_vm5, %v1957_v9, %v1952_v10  ;;  %v787_v62 = vsel %vm772_vm5, %v1956_v21, %v1951_v60  ;;  %1733 = vmatpush1.bf16.msra.mxu0 %v1732_v59  ;;  %1784 = vmatpush1.bf16.msra.mxu1 %v1783_v58  ;;  %v779_v1 = vsel %vm772_vm5, %v1951_v60, %v1956_v21 }
 0x165   : > { %v1734_v17 = vpack.c.bf16 %v788_v11, %v787_v62  ;;  %v1965_v2 = vpop.permute.xlu1 %1964  ;;  %v1960_v19 = vpop.permute.xlu0 %1959  ;;  %1787 = vmatprep.subr.msk.bf16.mxu1 %vm2645_vm7, %v1785_v8  ;;  %v780_v63 = vsel %vm772_vm5, %v1952_v10, %v1957_v9 }
 0x166   : > { %v1967_v14 = vunpack.i.h.bf16 %v1965_v2  ;;  %v1966_v22 = vunpack.i.l.bf16 %v1965_v2  ;;  %v1962_v15 = vunpack.i.h.bf16 %v1960_v19  ;;  %v1961_v23 = vunpack.i.l.bf16 %v1960_v19 }
 0x167   : > { %1736 = vmatprep.subr.msk.bf16.mxu0 %vm2645_vm7, %v1734_v17  ;;  %v1737_v30 = vpack.c.bf16 %v780_v63, %v779_v1 }
 0x168   : > { %v1215_v26 = vsel %vm772_vm5, %v1967_v14, %v1962_v15  ;;  %v1214_v33 = vsel %vm772_vm5, %v1966_v22, %v1961_v23  ;;  %1789 = vmatpush1.bf16.msra.mxu1 %v1788_v18  ;;  %v1206_v35 = vsel %vm772_vm5, %v1961_v23, %v1966_v22  ;;  %v1207_v27 = vsel %vm772_vm5, %v1962_v15, %v1967_v14 }
 0x169   : > { %v1790_v7 = vpack.c.bf16 %v1215_v26, %v1214_v33  ;;  %1738 = vmatpush1.bf16.msra.mxu0 %v1737_v30  ;;  %v1793_v31 = vpack.c.bf16 %v1207_v27, %v1206_v35 }
 0x16b   : > { %1792 = vmatprep.subr.msk.bf16.mxu1 %vm2645_vm7, %v1790_v7 }
 0x16c   : > { %1794 = vmatpush1.bf16.msra.mxu1 %v1793_v31  ;;  %895 = vmatmul.mubr.f32.vlgmr.msra.gmra.mrb[0].mxu0 %v346_v43 }
 0x16d   : > { %1614 = vmatprep.mubr.msk.f32.mxu0 %vm805_vm1, %v349_v37 }
 0x16f   : > { %1297 = vmatmul.mubr.f32.vlgmr.msra.gmra.mrb[0].mxu1 %v346_v43 }
 0x170   : > { %901 = vmatmul.mubr.f32.gmra.mrb[2].mxu0 %v348_v6  ;;  %1654 = vmatprep.mubr.msk.f32.mxu1 %vm805_vm1, %v349_v37 }
 0x171   : > { %1615 = vmatprep.mubr.msk.f32.mxu0 %vm805_vm1, %v351_v16 }
 0x173   : > { %1303 = vmatmul.mubr.f32.gmra.mrb[2].mxu1 %v348_v6 }
 0x174   : > { %907 = vmatmul.mubr.f32.gmra.mrb[4].mxu0 %v350_v20  ;;  %1655 = vmatprep.mubr.msk.f32.mxu1 %vm805_vm1, %v351_v16 }
 0x175   : > { %1616 = vmatprep.mubr.msk.f32.mxu0 %vm805_vm1, %v353_v4 }
 0x177   : > { %1309 = vmatmul.mubr.f32.gmra.mrb[4].mxu1 %v350_v20 }
 0x178   : > { %913 = vmatmul.mubr.f32.gmra.mrb[6].mxu0 %v352_v44  ;;  %1656 = vmatprep.mubr.msk.f32.mxu1 %vm805_vm1, %v353_v4 }
 0x179   : > { %1617 = vmatprep.mubr.msk.f32.mxu0 %vm805_vm1, %v355_v25 }
 0x17b   : > { %1315 = vmatmul.mubr.f32.gmra.mrb[6].mxu1 %v352_v44 }
 0x17c   : > { %919 = vmatmul.mubr.f32.gmra.mrb[8].mxu0 %v354_v45  ;;  %1657 = vmatprep.mubr.msk.f32.mxu1 %vm805_vm1, %v355_v25 }
 0x17d   : > { %1618 = vmatprep.mubr.msk.f32.mxu0 %vm805_vm1, %v357_v49 }
 0x17f   : > { %1321 = vmatmul.mubr.f32.gmra.mrb[8].mxu1 %v354_v45 }
 0x180   : > { %925 = vmatmul.mubr.f32.gmra.mrb[10].mxu0 %v356_v56  ;;  %1658 = vmatprep.mubr.msk.f32.mxu1 %vm805_vm1, %v357_v49 }
 0x181   : > { %1619 = vmatprep.mubr.msk.f32.mxu0 %vm805_vm1, %v359_v39 }
 0x183   : > { %1327 = vmatmul.mubr.f32.gmra.mrb[10].mxu1 %v356_v56 }
 0x184   : > { %931 = vmatmul.mubr.f32.gmra.mrb[12].mxu0 %v358_v57  ;;  %1659 = vmatprep.mubr.msk.f32.mxu1 %vm805_vm1, %v359_v39 }
 0x185   : > { %1620 = vmatprep.mubr.msk.f32.mxu0 %vm805_vm1, %v361_v40 }
 0x187   : > { %1333 = vmatmul.mubr.f32.gmra.mrb[12].mxu1 %v358_v57 }
 0x188   : > { %937 = vmatmul.mubr.f32.gmra.mrb[14].mxu0 %v360_v28  ;;  %1660 = vmatprep.mubr.msk.f32.mxu1 %vm805_vm1, %v361_v40 }
 0x18b   : > { %1339 = vmatmul.mubr.f32.gmra.mrb[14].mxu1 %v360_v28 }
 0x23f   : > { %v896_v24 = vpop.f32.mrb[0].mxu0 }
 0x240   : > { %943 = vst [vmem:[%s2783_s30] sm:$0xff] %v896_v24  ;;  %v898_v46 = vpop.f32.mrb[1].mxu0  ;;  %v991_v42 = vmul.f32 %v896_v24, %v896_v24 }
 0x241   : > { %944 = vst [vmem:[%s2783_s30 + $0x8] sm:$0xff] %v898_v46  ;;  %v959_v51 = vadd.f32 %v898_v46, %v896_v24  ;;  %v992_v41 = vmul.f32 %v898_v46, %v898_v46 }
 0x242   : > { %v1298_v61 = vpop.f32.mrb[0].mxu1 }
 0x243   : > { %1661 = vst [vmem:[%s2783_s30 + $0x80] sm:$0xff] %v1298_v61  ;;  %v1300_v3 = vpop.f32.mrb[1].mxu1  ;;  %960 = vadd.xlane.f32.xlu0 %v959_v51  ;;  %v902_v52 = vpop.f32.mrb[2].mxu0  ;;  %v1007_v53 = vadd.f32 %v992_v41, %v991_v42  ;;  %v1394_v34 = vmul.f32 %v1298_v61, %v1298_v61 }
 0x244   : > { %1662 = vst [vmem:[%s2783_s30 + $0x88] sm:$0xff] %v1300_v3  ;;  %945 = vst [vmem:[%s2783_s30 + $0x10] sm:$0xff] %v902_v52  ;;  %v1362_v36 = vadd.f32 %v1300_v3, %v1298_v61  ;;  %v904_v12 = vpop.f32.mrb[3].mxu0  ;;  %v1395_v5 = vmul.f32 %v1300_v3, %v1300_v3  ;;  %v993_v47 = vmul.f32 %v902_v52, %v902_v52 }
 0x245   : > { %946 = vst [vmem:[%s2783_s30 + $0x18] sm:$0xff] %v904_v12  ;;  %v994_v29 = vmul.f32 %v904_v12, %v904_v12  ;;  %v962_v38 = vadd.f32 %v904_v12, %v902_v52 }
 0x246   : > { %1363 = vadd.xlane.f32.xlu1 %v1362_v36  ;;  %v1304_v50 = vpop.f32.mrb[2].mxu1  ;;  %v1410_v48 = vadd.f32 %v1395_v5, %v1394_v34 }
 0x247   : > { %1663 = vst [vmem:[%s2783_s30 + $0x90] sm:$0xff] %v1304_v50  ;;  %v1306_v55 = vpop.f32.mrb[3].mxu1  ;;  %v1010_v58 = vadd.f32 %v994_v29, %v993_v47  ;;  %v908_v0 = vpop.f32.mrb[4].mxu0  ;;  %v1396_v32 = vmul.f32 %v1304_v50, %v1304_v50 }
 0x248   : > { %1664 = vst [vmem:[%s2783_s30 + $0x98] sm:$0xff] %v1306_v55  ;;  %v1365_v59 = vadd.f32 %v1306_v55, %v1304_v50  ;;  %947 = vst [vmem:[%s2783_s30 + $0x20] sm:$0xff] %v908_v0  ;;  %v1397_v54 = vmul.f32 %v1306_v55, %v1306_v55  ;;  %v910_v13 = vpop.f32.mrb[5].mxu0  ;;  %v995_v9 = vmul.f32 %v908_v0, %v908_v0 }
 0x249   : > { %948 = vst [vmem:[%s2783_s30 + $0x28] sm:$0xff] %v910_v13  ;;  %v965_v21 = vadd.f32 %v910_v13, %v908_v0  ;;  %v996_v10 = vmul.f32 %v910_v13, %v910_v13 }
 0x24a   : > { %1008 = vadd.xlane.f32.xlu1 %v1007_v53  ;;  %1366 = vadd.xlane.f32.xlu0 %v1365_v59  ;;  %v1310_v60 = vpop.f32.mrb[4].mxu1  ;;  %v1413_v8 = vadd.f32 %v1397_v54, %v1396_v32 }
 0x24b   : > { %1665 = vst [vmem:[%s2783_s30 + $0xa0] sm:$0xff] %v1310_v60  ;;  %v1312_v11 = vpop.f32.mrb[5].mxu1  ;;  %v914_v62 = vpop.f32.mrb[6].mxu0  ;;  %v2796_v1 = vadd.f32 %v996_v10, %v995_v9  ;;  %v1398_v17 = vmul.f32 %v1310_v60, %v1310_v60 }
 0x24c   : > { %1666 = vst [vmem:[%s2783_s30 + $0xa8] sm:$0xff] %v1312_v11  ;;  %949 = vst [vmem:[%s2783_s30 + $0x30] sm:$0xff] %v914_v62  ;;  %v1368_v2 = vadd.f32 %v1312_v11, %v1310_v60  ;;  %v916_v19 = vpop.f32.mrb[7].mxu0  ;;  %v1399_v63 = vmul.f32 %v1312_v11, %v1312_v11  ;;  %v997_v18 = vmul.f32 %v914_v62, %v914_v62 }
 0x24d   : > { %950 = vst [vmem:[%s2783_s30 + $0x38] sm:$0xff] %v916_v19  ;;  %v968_v14 = vadd.f32 %v916_v19, %v914_v62  ;;  %v998_v22 = vmul.f32 %v916_v19, %v916_v19 }
 0x24e   : > { %1411 = vadd.xlane.f32.xlu1 %v1410_v48  ;;  %1011 = vadd.xlane.f32.xlu0 %v1010_v58  ;;  %v1316_v15 = vpop.f32.mrb[6].mxu1  ;;  %v2801_v23 = vadd.f32 %v1399_v63, %v1398_v17 }
 0x24f   : > { %1667 = vst [vmem:[%s2783_s30 + $0xb0] sm:$0xff] %v1316_v15  ;;  %v1318_v30 = vpop.f32.mrb[7].mxu1  ;;  %v920_v26 = vpop.f32.mrb[8].mxu0  ;;  %v2804_v33 = vadd.f32 %v998_v22, %v997_v18  ;;  %v1400_v35 = vmul.f32 %v1316_v15, %v1316_v15 }
 0x250   : > { %1668 = vst [vmem:[%s2783_s30 + $0xb8] sm:$0xff] %v1318_v30  ;;  %v1371_v27 = vadd.f32 %v1318_v30, %v1316_v15  ;;  %951 = vst [vmem:[%s2783_s30 + $0x40] sm:$0xff] %v920_v26  ;;  %v922_v7 = vpop.f32.mrb[9].mxu0  ;;  %v1401_v31 = vmul.f32 %v1318_v30, %v1318_v30  ;;  %v999_v43 = vmul.f32 %v920_v26, %v920_v26 }
 0x251   : > { %952 = vst [vmem:[%s2783_s30 + $0x48] sm:$0xff] %v922_v7  ;;  %v2809_v37 = vadd.f32 %v922_v7, %v920_v26  ;;  %v1000_v6 = vmul.f32 %v922_v7, %v922_v7 }
 0x252   : > { %1414 = vadd.xlane.f32.xlu0 %v1413_v8  ;;  %963 = vadd.xlane.f32.xlu1 %v962_v38  ;;  %v1322_v16 = vpop.f32.mrb[8].mxu1  ;;  %v2811_v20 = vadd.f32 %v1401_v31, %v1400_v35 }
 0x253   : > { %1669 = vst [vmem:[%s2783_s30 + $0xc0] sm:$0xff] %v1322_v16  ;;  %v1324_v4 = vpop.f32.mrb[9].mxu1  ;;  %v926_v44 = vpop.f32.mrb[10].mxu0  ;;  %v1019_v25 = vadd.f32 %v1000_v6, %v999_v43  ;;  %v1402_v45 = vmul.f32 %v1322_v16, %v1322_v16 }
 0x254   : > { %1670 = vst [vmem:[%s2783_s30 + $0xc8] sm:$0xff] %v1324_v4  ;;  %953 = vst [vmem:[%s2783_s30 + $0x50] sm:$0xff] %v926_v44  ;;  %v1374_v49 = vadd.f32 %v1324_v4, %v1322_v16  ;;  %v928_v56 = vpop.f32.mrb[11].mxu0  ;;  %v1403_v39 = vmul.f32 %v1324_v4, %v1324_v4  ;;  %v1001_v57 = vmul.f32 %v926_v44, %v926_v44 }
 0x255   : > { %954 = vst [vmem:[%s2783_s30 + $0x58] sm:$0xff] %v928_v56  ;;  %v974_v40 = vadd.f32 %v928_v56, %v926_v44  ;;  %v1002_v28 = vmul.f32 %v928_v56, %v928_v56 }
 0x256   : > { %1369 = vadd.xlane.f32.xlu1 %v1368_v2  ;;  %966 = vadd.xlane.f32.xlu0 %v965_v21  ;;  %v1328_v24 = vpop.f32.mrb[10].mxu1  ;;  %v1422_v46 = vadd.f32 %v1403_v39, %v1402_v45 }
 0x257   : > { %1671 = vst [vmem:[%s2783_s30 + $0xd0] sm:$0xff] %v1328_v24  ;;  %v1330_v42 = vpop.f32.mrb[11].mxu1  ;;  %v932_v51 = vpop.f32.mrb[12].mxu0  ;;  %v1022_v41 = vadd.f32 %v1002_v28, %v1001_v57  ;;  %v1404_v61 = vmul.f32 %v1328_v24, %v1328_v24 }
 0x258   : > { %1672 = vst [vmem:[%s2783_s30 + $0xd8] sm:$0xff] %v1330_v42  ;;  %v1377_v3 = vadd.f32 %v1330_v42, %v1328_v24  ;;  %955 = vst [vmem:[%s2783_s30 + $0x60] sm:$0xff] %v932_v51  ;;  %v934_v52 = vpop.f32.mrb[13].mxu0  ;;  %v1405_v53 = vmul.f32 %v1330_v42, %v1330_v42  ;;  %v1003_v34 = vmul.f32 %v932_v51, %v932_v51 }
 0x259   : > { %956 = vst [vmem:[%s2783_s30 + $0x68] sm:$0xff] %v934_v52  ;;  %v977_v36 = vadd.f32 %v934_v52, %v932_v51  ;;  %v1004_v12 = vmul.f32 %v934_v52, %v934_v52 }
 0x25a   : > { %1014 = vadd.xlane.f32.xlu1 %v2796_v1  ;;  %969 = vadd.xlane.f32.xlu0 %v968_v14  ;;  %v1334_v5 = vpop.f32.mrb[12].mxu1  ;;  %v1425_v47 = vadd.f32 %v1405_v53, %v1404_v61 }
 0x25b   : > { %1673 = vst [vmem:[%s2783_s30 + $0xe0] sm:$0xff] %v1334_v5  ;;  %v1336_v29 = vpop.f32.mrb[13].mxu1  ;;  %v938_v38 = vpop.f32.mrb[14].mxu0  ;;  %v1025_v50 = vadd.f32 %v1004_v12, %v1003_v34  ;;  %v1406_v48 = vmul.f32 %v1334_v5, %v1334_v5 }
 0x25c   : > { %1674 = vst [vmem:[%s2783_s30 + $0xe8] sm:$0xff] %v1336_v29  ;;  %957 = vst [vmem:[%s2783_s30 + $0x70] sm:$0xff] %v938_v38  ;;  %v1380_v55 = vadd.f32 %v1336_v29, %v1334_v5  ;;  %v940_v58 = vpop.f32.mrb[15].mxu0  ;;  %v1407_v0 = vmul.f32 %v1336_v29, %v1336_v29  ;;  %v1005_v32 = vmul.f32 %v938_v38, %v938_v38 }
 0x25d   : > { %958 = vst [vmem:[%s2783_s30 + $0x78] sm:$0xff] %v940_v58  ;;  %v1006_v59 = vmul.f32 %v940_v58, %v940_v58  ;;  %v980_v54 = vadd.f32 %v940_v58, %v938_v38 }
 0x25e   : > { %1417 = vadd.xlane.f32.xlu1 %v2801_v23  ;;  %1372 = vadd.xlane.f32.xlu0 %v1371_v27  ;;  %v1340_v13 = vpop.f32.mrb[14].mxu1  ;;  %v1428_v9 = vadd.f32 %v1407_v0, %v1406_v48 }
 0x25f   : > { %1675 = vst [vmem:[%s2783_s30 + $0xf0] sm:$0xff] %v1340_v13  ;;  %v1342_v21 = vpop.f32.mrb[15].mxu1  ;;  %v1028_v10 = vadd.f32 %v1006_v59, %v1005_v32  ;;  %v1408_v60 = vmul.f32 %v1340_v13, %v1340_v13 }
 0x260   : > { %1676 = vst [vmem:[%s2783_s30 + $0xf8] sm:$0xff] %v1342_v21  ;;  %v1409_v8 = vmul.f32 %v1342_v21, %v1342_v21  ;;  %v1383_v11 = vadd.f32 %v1342_v21, %v1340_v13 }
 0x262   : > { %1017 = vadd.xlane.f32.xlu0 %v2804_v33  ;;  %972 = vadd.xlane.f32.xlu1 %v2809_v37  ;;  %v1431_v62 = vadd.f32 %v1409_v8, %v1408_v60 }
 0x266   : > { %1420 = vadd.xlane.f32.xlu0 %v2811_v20  ;;  %1375 = vadd.xlane.f32.xlu1 %v1374_v49 }
 0x26a   : > { %1020 = vadd.xlane.f32.xlu1 %v1019_v25  ;;  %975 = vadd.xlane.f32.xlu0 %v974_v40 }
 0x26e   : > { %1423 = vadd.xlane.f32.xlu1 %v1422_v46  ;;  %1378 = vadd.xlane.f32.xlu0 %v1377_v3 }
 0x272   : > { %1023 = vadd.xlane.f32.xlu0 %v1022_v41  ;;  %978 = vadd.xlane.f32.xlu1 %v977_v36 }
 0x276   : > { %1426 = vadd.xlane.f32.xlu0 %v1425_v47  ;;  %1381 = vadd.xlane.f32.xlu1 %v1380_v55 }
 0x27a   : > { %1026 = vadd.xlane.f32.xlu1 %v1025_v50  ;;  %981 = vadd.xlane.f32.xlu0 %v980_v54 }
 0x27e   : > { %1429 = vadd.xlane.f32.xlu1 %v1428_v9  ;;  %1384 = vadd.xlane.f32.xlu0 %v1383_v11 }
 0x282   : > { %1029 = vadd.xlane.f32.xlu0 %v1028_v10 }
 0x286   : > { %1432 = vadd.xlane.f32.xlu0 %v1431_v62 }
 0x2d0   : > { %v961_v1 = vpop.xlane.xlu0 %960 }
 0x2d3   : > { %v1364_v17 = vpop.xlane.xlu1 %1363 }
 0x2d4   : > { %v1386_v2 = vadd.f32 %v1364_v17, %v961_v1 }
 0x2d6   : > { %1442 = vst.msk [vmem:[%s2837_s10] sm:$0xff] %vm378_vm0, %v1386_v2 }
 0x2d7   : > { %v1009_v19 = vpop.xlane.xlu1 %1008  ;;  %v1367_v63 = vpop.xlane.xlu0 %1366 }
 0x2db   : > { %v1412_v18 = vpop.xlane.xlu1 %1411  ;;  %v1012_v14 = vpop.xlane.xlu0 %1011 }
 0x2dc   : > { %v1434_v22 = vadd.f32 %v1412_v18, %v1009_v19 }
 0x2de   : > { %1450 = vst.msk [vmem:[%s2844_s13] sm:$0xff] %vm378_vm0, %v1434_v22 }
 0x2df   : > { %v1415_v15 = vpop.xlane.xlu0 %1414  ;;  %v964_v23 = vpop.xlane.xlu1 %963 }
 0x2e0   : > { %v1435_v30 = vadd.f32 %v1415_v15, %v1012_v14  ;;  %v1387_v26 = vadd.f32 %v1367_v63, %v964_v23 }
 0x2e2   : > { %1451 = vst.msk [vmem:[%s2844_s13 + $0x8] sm:$0xff] %vm378_vm0, %v1435_v30  ;;  %1443 = vst.msk [vmem:[%s2837_s10 + $0x8] sm:$0xff] %vm378_vm0, %v1387_v26 }
 0x2e3   : > { %v1370_v33 = vpop.xlane.xlu1 %1369  ;;  %v967_v35 = vpop.xlane.xlu0 %966 }
 0x2e4   : > { %v1388_v27 = vadd.f32 %v1370_v33, %v967_v35 }
 0x2e6   : > { %1444 = vst.msk [vmem:[%s2837_s10 + $0x10] sm:$0xff] %vm378_vm0, %v1388_v27 }
 0x2e7   : > { %v1015_v7 = vpop.xlane.xlu1 %1014  ;;  %v970_v31 = vpop.xlane.xlu0 %969 }
 0x2eb   : > { %v1418_v43 = vpop.xlane.xlu1 %1417  ;;  %v1373_v37 = vpop.xlane.xlu0 %1372 }
 0x2ec   : > { %v1436_v6 = vadd.f32 %v1418_v43, %v1015_v7  ;;  %v1389_v16 = vadd.f32 %v1373_v37, %v970_v31 }
 0x2ee   : > { %1452 = vst.msk [vmem:[%s2844_s13 + $0x10] sm:$0xff] %vm378_vm0, %v1436_v6  ;;  %1445 = vst.msk [vmem:[%s2837_s10 + $0x18] sm:$0xff] %vm378_vm0, %v1389_v16 }
 0x2ef   : > { %v1018_v20 = vpop.xlane.xlu0 %1017  ;;  %v973_v4 = vpop.xlane.xlu1 %972 }
 0x2f3   : > { %v1421_v44 = vpop.xlane.xlu0 %1420  ;;  %v1376_v25 = vpop.xlane.xlu1 %1375 }
 0x2f4   : > { %v1437_v45 = vadd.f32 %v1421_v44, %v1018_v20  ;;  %v1390_v49 = vadd.f32 %v1376_v25, %v973_v4 }
 0x2f6   : > { %1453 = vst.msk [vmem:[%s2844_s13 + $0x18] sm:$0xff] %vm378_vm0, %v1437_v45  ;;  %1446 = vst.msk [vmem:[%s2837_s10 + $0x20] sm:$0xff] %vm378_vm0, %v1390_v49 }
 0x2f7   : > { %v1021_v56 = vpop.xlane.xlu1 %1020  ;;  %v976_v39 = vpop.xlane.xlu0 %975 }
 0x2fb   : > { %v1424_v57 = vpop.xlane.xlu1 %1423  ;;  %v1379_v40 = vpop.xlane.xlu0 %1378 }
 0x2fc   : > { %v1438_v28 = vadd.f32 %v1424_v57, %v1021_v56  ;;  %v1391_v24 = vadd.f32 %v1379_v40, %v976_v39 }
 0x2fe   : > { %1454 = vst.msk [vmem:[%s2844_s13 + $0x20] sm:$0xff] %vm378_vm0, %v1438_v28  ;;  %1447 = vst.msk [vmem:[%s2837_s10 + $0x28] sm:$0xff] %vm378_vm0, %v1391_v24 }
 0x2ff   : > { %v1024_v46 = vpop.xlane.xlu0 %1023  ;;  %v979_v42 = vpop.xlane.xlu1 %978 }
 0x303   : > { %v1427_v51 = vpop.xlane.xlu0 %1426  ;;  %v1382_v41 = vpop.xlane.xlu1 %1381 }
 0x304   : > { %v1439_v61 = vadd.f32 %v1427_v51, %v1024_v46  ;;  %v1392_v3 = vadd.f32 %v1382_v41, %v979_v42 }
 0x306   : > { %1455 = vst.msk [vmem:[%s2844_s13 + $0x28] sm:$0xff] %vm378_vm0, %v1439_v61  ;;  %1448 = vst.msk [vmem:[%s2837_s10 + $0x30] sm:$0xff] %vm378_vm0, %v1392_v3 }
 0x307   : > { %v1027_v52 = vpop.xlane.xlu1 %1026  ;;  %v982_v53 = vpop.xlane.xlu0 %981 }
 0x30b   : > { %v1430_v34 = vpop.xlane.xlu1 %1429  ;;  %v1385_v36 = vpop.xlane.xlu0 %1384 }
 0x30c   : > { %v1440_v12 = vadd.f32 %v1430_v34, %v1027_v52  ;;  %v1393_v5 = vadd.f32 %v1385_v36, %v982_v53 }
 0x30e   : > { %1456 = vst.msk [vmem:[%s2844_s13 + $0x30] sm:$0xff] %vm378_vm0, %v1440_v12  ;;  %1449 = vst.msk [vmem:[%s2837_s10 + $0x38] sm:$0xff] %vm378_vm0, %v1393_v5 }
 0x30f   : > { %v1030_v47 = vpop.xlane.xlu0 %1029 }
 0x313   : > { %v1433_v29 = vpop.xlane.xlu0 %1432 }
 0x314   : > { %v1441_v38 = vadd.f32 %v1433_v29, %v1030_v47 }
 0x316   : > { %1457 = vst.msk [vmem:[%s2844_s13 + $0x38] sm:$0xff] %vm378_vm0, %v1441_v38 }
 0x317 PF: > { %s19_s27 = sadd.s32 1, %s1990_s27  }
 0x318   : > { %p16_p5 = scmp.ge.s32.totalorder %s19_s27, 4  }
 0x31a   :  { %18 = sbr.rel (!%p16_p5) target bundleno = 1 (0x1), region = 100 }

// kernel: dncnn_forward.9
= control target key start
LH: loop header
LB: loop body
LE: loop exit
PB: predicated region body
PF: predicated region fallthrough
CT: control target
= control target key end

     0   :  { %11 = vsyncpa [#allocation3], 0  ;;  %s2748_s0 = inlined_call_operand.vmem [shape: f32[4,64,256], index: 0, kind: input, shape index: {}]   ;;  %s2749_s1 = inlined_call_operand.vmem [shape: f32[2,64,1], index: 1, kind: input, shape index: {}]   ;;  %s2750_s2 = inlined_call_operand.vmem [shape: f32[2,64,1], index: 2, kind: input, shape index: {}]   ;;  %s2751_s3 = inlined_call_operand.vmem [shape: f32[64,1], index: 3, kind: input, shape index: {}]   ;;  %s2752_s4 = inlined_call_operand.vmem [shape: f32[64,1], index: 4, kind: input, shape index: {}]   ;;  %s2753_s5 = inlined_call_operand.vmem [shape: f32[64,3], index: 5, kind: input, shape index: {}]   ;;  %s2754_s6 = inlined_call_operand.hbm [shape: f32[4,1,256], index: 6, kind: output, shape index: {}]  }
   0x1   :  { %13 = vsyncpa [#allocation3 + $0x1], 0  ;;  %s1556_s21 = smov 0   ;;  %s1558_s22 = smov 0  }
   0x2   :  { %s1560_s23 = smov 0   ;;  %s1562_s24 = smov 0  }
   0x3 LB: > { %s1577_s25 = sadd.s32 4294967295, %s1510_s24   ;;  %s1343_s26 = sadd.s32 4294967294, %s1510_s24   ;;  %s1510_s24 = sphi %s1562_s24, %s2797_s24   ;;  %s1506_s23 = sphi %s1560_s23, %s2796_s23   ;;  %s1502_s22 = sphi %s1558_s22, %s2795_s22   ;;  %s1498_s21 = sphi %s1556_s21, %s2794_s21  }
   0x4   : > { %s1581_s27 = sadd.s32 1, %s1510_s24   ;;  %s157_s28 = sadd.s32 1, %s1506_s23 }
   0x5   : > { %s154_s29 = ssub.s32 %s1510_s24, %s1581_s27  ;;  %p167_p0 = scmp.ne.s32.totalorder %s1506_s23, %s1502_s22 }
   0x6   : > { %p155_p1 = scmp.eq.s32.totalorder %s154_s29, 0  ;;  %p168_p2 = scmp.eq.s32.totalorder %s1577_s25, 1 }
   0x7   : > { %p173_p3 = scmp.ne.s32.totalorder %s1502_s22, %s1498_s21  ;;  %p174_p4 = scmp.eq.s32.totalorder %s1343_s26, 1 }
   0x8   : > { %s1592_s30 = scalar_select %p155_p1, %s1506_s23, %s157_s28  }
   0x9   : > { %p1594_p5 = por %p168_p2, %p167_p0  ;;  %p1598_p6 = por %p174_p4, %p173_p3 }
   0xa   : > { %p1346_p7 = scmp.ge.s32.totalorder %s1510_s24, 1  ;;  %p217_p8 = scmp.lt.s32.totalorder %s1510_s24, 3 }
   0xc   : > { %p218_p9 = pnand %p1346_p7, %p217_p8 }
   0xe   : > { %221 = sbr.rel (%p218_p9) target bundleno = 502 (0x1f6), region = 44 }
  0x15   : > { %v273_v0 = vld [vmem:[%s2749_s1 + $0x10] sm:$0xff]  ;;  %vm287_vm0 = vcmask 7168   ;;  %v1512_v3 = vmov 0   ;;  %v271_v8 = vld [vmem:[%s2749_s1] sm:$0xff]  ;;  %v274_v19 = vld [vmem:[%s2749_s1 + $0x18] sm:$0xff]  ;;  %s1348_s16 = sshll.u32 %s1577_s25, 1 }
  0x16   : > { %v281_v1 = vld [vmem:[%s2749_s1 + $0x50] sm:$0xff]  ;;  %1425 = vset.pattern.permute.xlu1 %v1512_v3  ;;  %1424 = vset.pattern.permute.xlu0 %v1512_v3  ;;  %v294_v4 = vsel %vm287_vm0, %v273_v0, 0.0  ;;  %v279_v11 = vld [vmem:[%s2749_s1 + $0x40] sm:$0xff]  ;;  %v288_v12 = vsel %vm287_vm0, %v271_v8, 0.0  ;;  %v282_v20 = vld [vmem:[%s2749_s1 + $0x58] sm:$0xff]  ;;  %v297_v24 = vsel %vm287_vm0, %v274_v19, 0.0 }
  0x17   : > { %v314_v2 = vld [vmem:[%s2750_s2 + $0x10] sm:$0xff]  ;;  %v295_v5 = vsel %vm287_vm0, %v281_v1, 0.0  ;;  %v312_v13 = vld [vmem:[%s2750_s2] sm:$0xff]  ;;  %v289_v16 = vsel %vm287_vm0, %v279_v11, 0.0  ;;  %v315_v25 = vld [vmem:[%s2750_s2 + $0x18] sm:$0xff]  ;;  %v298_v28 = vsel %vm287_vm0, %v282_v20, 0.0 }
  0x18   : > { %v322_v6 = vld [vmem:[%s2750_s2 + $0x50] sm:$0xff]  ;;  %v334_v7 = vsel %vm287_vm0, %v314_v2, 0.0  ;;  %v296_v9 = vadd.f32 %v295_v5, %v294_v4  ;;  %v320_v14 = vld [vmem:[%s2750_s2 + $0x40] sm:$0xff]  ;;  %v328_v17 = vsel %vm287_vm0, %v312_v13, 0.0  ;;  %v290_v22 = vadd.f32 %v289_v16, %v288_v12  ;;  %v323_v26 = vld [vmem:[%s2750_s2 + $0x58] sm:$0xff]  ;;  %p249_p10 = scmp.lt.s32.totalorder %s1348_s16, 3 }
  0x19   : > { %v335_v10 = vsel %vm287_vm0, %v322_v6, 0.0  ;;  %v329_v18 = vsel %vm287_vm0, %v320_v14, 0.0  ;;  %v337_v29 = vsel %vm287_vm0, %v315_v25, 0.0  ;;  %v338_v30 = vsel %vm287_vm0, %v323_v26, 0.0  ;;  %v272_v31 = vld [vmem:[%s2749_s1 + $0x8] sm:$0xff]  ;;  %v275_v59 = vld [vmem:[%s2749_s1 + $0x20] sm:$0xff] }
  0x1a   : > { %v336_v15 = vadd.f32 %v335_v10, %v334_v7  ;;  %v1642_v21 = vmul.f32 0.0009765625, %v296_v9  ;;  %v330_v23 = vadd.f32 %v329_v18, %v328_v17  ;;  %v280_v32 = vld [vmem:[%s2749_s1 + $0x48] sm:$0xff]  ;;  %v1662_v34 = vmul.f32 0.0009765625, %v290_v22  ;;  %v283_v0 = vld [vmem:[%s2749_s1 + $0x60] sm:$0xff]  ;;  %v278_v10 = vld [vmem:[%s2749_s1 + $0x38] sm:$0xff]  ;;  %s2799_s16 = smov (!%p249_p10, %s1348_s16), 3 }
  0x1b   : > { %v299_v36 = vadd.f32 %v298_v28, %v297_v24  ;;  %v313_v37 = vld [vmem:[%s2750_s2 + $0x8] sm:$0xff]  ;;  %v339_v39 = vadd.f32 %v338_v30, %v337_v29  ;;  %v291_v40 = vsel %vm287_vm0, %v272_v31, 0.0  ;;  %v292_v41 = vsel %vm287_vm0, %v280_v32, 0.0  ;;  %v316_v1 = vld [vmem:[%s2750_s2 + $0x20] sm:$0xff]  ;;  %v286_v11 = vld [vmem:[%s2749_s1 + $0x78] sm:$0xff]  ;;  %s1374_s17 = sshll.u32 %s2799_s16, 7 }
  0x1c   : > { %v362_v27 = vmul.f32 0.0009765625, %v336_v15  ;;  %v370_v33 = vmul.f32 %v1642_v21, %v1642_v21  ;;  %v360_v35 = vmul.f32 0.0009765625, %v330_v23  ;;  %v321_v38 = vld [vmem:[%s2750_s2 + $0x48] sm:$0xff]  ;;  %v331_v42 = vsel %vm287_vm0, %v313_v37, 0.0  ;;  %v324_v9 = vld [vmem:[%s2750_s2 + $0x60] sm:$0xff]  ;;  %v319_v19 = vld [vmem:[%s2750_s2 + $0x38] sm:$0xff]  ;;  %s1866_s20 = scalar_lea.vmem %s2748_s0, %s1374_s17 }
  0x1d   : > { %v276_v43 = vld [vmem:[%s2749_s1 + $0x28] sm:$0xff]  ;;  %v368_v46 = vmul.f32 %v1662_v34, %v1662_v34  ;;  %v1681_v47 = vmul.f32 0.0009765625, %v299_v36  ;;  %v293_v48 = vadd.f32 %v292_v41, %v291_v40  ;;  %v363_v51 = vmul.f32 0.0009765625, %v339_v39  ;;  %v327_v20 = vld [vmem:[%s2750_s2 + $0x78] sm:$0xff]  ;;  %v277_v22 = vld [vmem:[%s2749_s1 + $0x30] sm:$0xff]  ;;  %s1515_s26 = smov 1  }
  0x1e   : > { %v284_v44 = vld [vmem:[%s2749_s1 + $0x68] sm:$0xff]  ;;  %v378_v45 = vsub.f32 %v362_v27, %v370_v33  ;;  %v332_v52 = vsel %vm287_vm0, %v321_v38, 0.0  ;;  %v303_v53 = vsel %vm287_vm0, %v276_v43, 0.0  ;;  %v300_v8 = vsel %vm287_vm0, %v275_v59, 0.0  ;;  %v285_v30 = vld [vmem:[%s2749_s1 + $0x70] sm:$0xff]  ;;  %v403_v59 = vld [vmem:[%s2751_s3 + $0x18] sm:$0xff] }
  0x1f   : > { %v317_v49 = vld [vmem:[%s2750_s2 + $0x28] sm:$0xff]  ;;  %v304_v54 = vsel %vm287_vm0, %v284_v44, 0.0  ;;  %v376_v56 = vsub.f32 %v360_v35, %v368_v46  ;;  %v371_v57 = vmul.f32 %v1681_v47, %v1681_v47  ;;  %v333_v58 = vadd.f32 %v332_v52, %v331_v42  ;;  %v318_v31 = vld [vmem:[%s2750_s2 + $0x30] sm:$0xff]  ;;  %s1516_s28 = smov 127   ;;  %s245_s29 = sand.u32 1, %s1502_s22  }
  0x20   : > { %v325_v50 = vld [vmem:[%s2750_s2 + $0x68] sm:$0xff]  ;;  %v386_v55 = vadd.f32 0.0001, %v378_v45  ;;  %v1697_v60 = vmul.f32 0.0009765625, %v293_v48  ;;  %v305_v61 = vadd.f32 %v304_v54, %v303_v53  ;;  %v343_v62 = vsel %vm287_vm0, %v317_v49, 0.0  ;;  %v326_v37 = vld [vmem:[%s2750_s2 + $0x70] sm:$0xff] }
  0x21   : > { %v344_v63 = vsel %vm287_vm0, %v325_v50, 0.0  ;;  %v384_v2 = vadd.f32 0.0001, %v376_v56  ;;  %v379_v3 = vsub.f32 %v363_v51, %v371_v57  ;;  %v361_v4 = vmul.f32 0.0009765625, %v333_v58  ;;  %v402_v41 = vld [vmem:[%s2751_s3 + $0x10] sm:$0xff]  ;;  %v400_v51 = vld [vmem:[%s2751_s3] sm:$0xff] }
  0x22   : > { %1432 = vrsqrt.f32 %v386_v55  ;;  %v369_v5 = vmul.f32 %v1697_v60, %v1697_v60  ;;  %v345_v6 = vadd.f32 %v344_v63, %v343_v62  ;;  %v1709_v7 = vmul.f32 0.0009765625, %v305_v61  ;;  %s1347_s9 = sshll.u32 %s245_s29, 2  ;;  %s1376_s11 = sshll.u32 %s1577_s25, 6 }
  0x23   : > { %1434 = vrsqrt.f32 %v384_v2  ;;  %v387_v12 = vadd.f32 0.0001, %v379_v3  ;;  %v301_v13 = vsel %vm287_vm0, %v283_v0, 0.0  ;;  %v340_v14 = vsel %vm287_vm0, %v316_v1, 0.0  ;;  %s247_s10 = scalar_lea.vmem [#allocation2], %s1347_s9  ;;  %s2698_s15 = scalar_lea.hbm %s2754_s6, %s1376_s11 }
  0x24   : > { %v377_v15 = vsub.f32 %v361_v4, %v369_v5  ;;  %v365_v16 = vmul.f32 0.0009765625, %v345_v6  ;;  %v373_v17 = vmul.f32 %v1709_v7, %v1709_v7  ;;  %v302_v18 = vadd.f32 %v301_v13, %v300_v8  ;;  %v401_v4 = vld [vmem:[%s2751_s3 + $0x8] sm:$0xff]  ;;  %v404_v13 = vld [vmem:[%s2751_s3 + $0x20] sm:$0xff]  ;;  %s1281_s12 = sshll.u32 %s247_s10, 4  ;;  %s2707_s25 = scalar_lea.sflag [#allocation3], %s245_s29  ;;  %s2700_s12 = int_to_ptr.vmem [resolvable:$true] %s1281_s12 }
  0x25   : > { %1436 = vrsqrt.f32 %v387_v12  ;;  %v341_v23 = vsel %vm287_vm0, %v324_v9, 0.0  ;;  %v309_v24 = vsel %vm287_vm0, %v278_v10, 0.0  ;;  %v310_v25 = vsel %vm287_vm0, %v286_v11, 0.0  ;;  %v405_v8 = vld [vmem:[%s2751_s3 + $0x28] sm:$0xff]  ;;  %s1448_s16 = scalar_lea.vmem %s2700_s12, 64  ;;  %s1518_s17 = smov [#allocation2]  }
  0x26   : > { %v385_v26 = vadd.f32 0.0001, %v377_v15  ;;  %v381_v27 = vsub.f32 %v365_v16, %v373_v17  ;;  %v342_v28 = vadd.f32 %v341_v23, %v340_v14  ;;  %v1737_v29 = vmul.f32 0.0009765625, %v302_v18  ;;  %v407_v16 = vld [vmem:[%s2751_s3 + $0x38] sm:$0xff]  ;;  %p1449_p11 = scmp.ne.s32.totalorder %s2700_s12, %s1448_s16  ;;  %s1452_s18 = sshll.u32 %s1518_s17, 4  ;;  %s1453_s18 = int_to_ptr.vmem [resolvable:$false] %s1452_s18 }
  0x27   : > { %v311_v32 = vadd.f32 %v310_v25, %v309_v24  ;;  %v349_v33 = vsel %vm287_vm0, %v319_v19, 0.0  ;;  %v350_v35 = vsel %vm287_vm0, %v327_v20, 0.0  ;;  %v306_v36 = vsel %vm287_vm0, %v277_v22, 0.0  ;;  %v417_v19 = vld [vmem:[%s2752_s4 + $0x8] sm:$0xff]  ;;  %v406_v22 = vld [vmem:[%s2751_s3 + $0x30] sm:$0xff]  ;;  %s1454_s19 = scalar_lea.vmem %s1453_s18, 128  ;;  %p1455_p0 = scmp.lt.s32.totalorder %s2700_s12, %s1453_s18 }
  0x28   : > { %1438 = vrsqrt.f32 %v385_v26  ;;  %v389_v38 = vadd.f32 0.0001, %v381_v27  ;;  %v364_v39 = vmul.f32 0.0009765625, %v342_v28  ;;  %v372_v40 = vmul.f32 %v1737_v29, %v1737_v29  ;;  %v419_v28 = vld [vmem:[%s2752_s4 + $0x18] sm:$0xff]  ;;  %p1450_p12 = pnand %p1449_p11, %p1594_p5  ;;  %p1456_p1 = scmp.lt.s32.totalorder %s1454_s19, %s1448_s16 }
  0x29   : > { %v351_v42 = vadd.f32 %v350_v35, %v349_v33  ;;  %v1756_v43 = vmul.f32 0.0009765625, %v311_v32  ;;  %v307_v44 = vsel %vm287_vm0, %v285_v30, 0.0  ;;  %v346_v45 = vsel %vm287_vm0, %v318_v31, 0.0  ;;  %v418_v32 = vld [vmem:[%s2752_s4 + $0x10] sm:$0xff] }
  0x2a   : > { %1440 = vrsqrt.f32 %v389_v38  ;;  %v380_v46 = vsub.f32 %v364_v39, %v372_v40  ;;  %v308_v48 = vadd.f32 %v307_v44, %v306_v36  ;;  %v347_v49 = vsel %vm287_vm0, %v326_v37, 0.0  ;;  %v420_v37 = vld [vmem:[%s2752_s4 + $0x20] sm:$0xff]  ;;  %p1451_p13 = pneg %p1450_p12  ;;  %p1457_p2 = por %p1456_p1, %p1455_p0 }
  0x2b   : > { %v367_v52 = vmul.f32 0.0009765625, %v351_v42  ;;  %v375_v53 = vmul.f32 %v1756_v43, %v1756_v43  ;;  %v348_v54 = vadd.f32 %v347_v49, %v346_v45  ;;  %v263_v44 = vld [vmem:[%s2753_s5] sm:$0xff]  ;;  %v266_v45 = vld [vmem:[%s2753_s5 + $0x18] sm:$0xff] }
  0x2c   : > { %v1433_v50 = vpop.eup %1432  ;;  %v388_v56 = vadd.f32 0.0001, %v380_v46  ;;  %v358_v57 = vmul.f32 0.0009765625, %v308_v48  ;;  %v265_v46 = vld [vmem:[%s2753_s5 + $0x10] sm:$0xff]  ;;  %v1830_v48 = vld [vmem:[%s2753_s5 + $0x28] sm:$0xff]  ;;  %v267_v49 = vld [vmem:[%s2753_s5 + $0x20] sm:$0xff]  ;;  %p1458_p3 = pnand %p1457_p2, %p1451_p13 }
  0x2d   : > { %v410_v55 = vmul.f32 %v1433_v50, %v402_v41  ;;  %v1435_v58 = vpop.eup %1434  ;;  %v383_v61 = vsub.f32 %v367_v52, %v375_v53  ;;  %v366_v62 = vmul.f32 0.0009765625, %v348_v54  ;;  %v1839_v50 = vld [vmem:[%s2753_s5 + $0x38] sm:$0xff]  ;;  %v1513_v52 = vmov 1  }
  0x2e   : > { %v408_v63 = vmul.f32 %v1435_v58, %v400_v51  ;;  %1442 = vrsqrt.f32 %v388_v56  ;;  %v374_v0 = vmul.f32 %v358_v57, %v358_v57  ;;  %v1845_v51 = vld [vmem:[%s2753_s5 + $0x30] sm:$0xff]  ;;  %v2755_v53 = vmov 2  }
  0x2f   : > { %468 = vperm.xlu1 %1425, %v410_v55   ;;  %v1437_v1 = vpop.eup %1436  ;;  %v391_v2 = vadd.f32 0.0001, %v383_v61  ;;  %v426_v30 = vmul.f32 %v410_v55, %v1642_v21  ;;  %v1360_v61 = vld [vmem:[%s1866_s20 + $0xc8] sm:$0xff] }
  0x30   : > { %458 = vperm.xlu0 %1424, %v408_v63   ;;  %v411_v3 = vmul.f32 %v1437_v1, %v403_v59  ;;  %v382_v5 = vsub.f32 %v366_v62, %v374_v0  ;;  %v424_v23 = vmul.f32 %v408_v63, %v1662_v34  ;;  %v1359_v59 = vld [vmem:[%s1866_s20 + $0xc0] sm:$0xff] }
  0x31   : > { %1444 = vrsqrt.f32 %v391_v2  ;;  %v434_v35 = vsub.f32 %v418_v32, %v426_v30  ;;  %v442_v2 = vld [vmem:[%s1866_s20 + $0x10] sm:$0xff]  ;;  %v1356_v32 = vld [vmem:[%s1866_s20 + $0xa8] sm:$0xff] }
  0x32   : > { %v1439_v6 = vpop.eup %1438  ;;  %v390_v9 = vadd.f32 0.0001, %v382_v5  ;;  %v427_v26 = vmul.f32 %v411_v3, %v1681_v47  ;;  %v421_v47 = vld [vmem:[%s2752_s4 + $0x28] sm:$0xff]  ;;  %v1363_v5 = vld [vmem:[%s1866_s20 + $0xe0] sm:$0xff] }
  0x33   : > { %473 = vperm.xlu1 %1425, %v411_v3   ;;  %v409_v10 = vmul.f32 %v1439_v6, %v401_v4  ;;  %v1353_v3 = vld [vmem:[%s1866_s20 + $0x90] sm:$0xff]  ;;  %v1354_v4 = vld [vmem:[%s1866_s20 + $0x98] sm:$0xff]  ;;  %v1364_v6 = vld [vmem:[%s1866_s20 + $0xe8] sm:$0xff] }
  0x34   : > { %v1441_v11 = vpop.eup %1440  ;;  %1446 = vrsqrt.f32 %v390_v9  ;;  %v435_v34 = vsub.f32 %v419_v28, %v427_v26 }
  0x35   : > { %463 = vperm.xlu0 %1424, %v409_v10   ;;  %v413_v12 = vmul.f32 %v1441_v11, %v405_v8  ;;  %v425_v17 = vmul.f32 %v409_v10, %v1697_v60  ;;  %v416_v60 = vld [vmem:[%s2752_s4] sm:$0xff] }
  0x36   : > { %v432_v31 = vsub.f32 %v416_v60, %v424_v23  ;;  %v440_v10 = vld [vmem:[%s1866_s20] sm:$0xff] }
  0x37   : > { %483 = vperm.xlu1 %1425, %v413_v12   ;;  %v433_v25 = vsub.f32 %v417_v19, %v425_v17  ;;  %v429_v33 = vmul.f32 %v413_v12, %v1709_v7  ;;  %v423_v7 = vld [vmem:[%s2752_s4 + $0x38] sm:$0xff]  ;;  %v1351_v12 = vld [vmem:[%s1866_s20 + $0x80] sm:$0xff] }
  0x38   : > { %v1443_v14 = vpop.eup %1442  ;;  %v1358_v19 = vld [vmem:[%s1866_s20 + $0xb8] sm:$0xff] }
  0x39   : > { %v412_v15 = vmul.f32 %v1443_v14, %v404_v13  ;;  %v437_v21 = vsub.f32 %v421_v47, %v429_v33  ;;  %v1352_v14 = vld [vmem:[%s1866_s20 + $0x88] sm:$0xff] }
  0x3b   : > { %v1445_v18 = vpop.eup %1444  ;;  %478 = vperm.xlu0 %1424, %v412_v15   ;;  %v428_v36 = vmul.f32 %v412_v15, %v1737_v29  ;;  %v422_v29 = vld [vmem:[%s2752_s4 + $0x30] sm:$0xff] }
  0x3c   : > { %v415_v20 = vmul.f32 %v1445_v18, %v407_v16  ;;  %v446_v18 = vld [vmem:[%s1866_s20 + $0x30] sm:$0xff] }
  0x3d   : > { %v436_v39 = vsub.f32 %v420_v37, %v428_v36 }
  0x3e   : > { %v1447_v24 = vpop.eup %1446  ;;  %493 = vperm.xlu1 %1425, %v415_v20   ;;  %v431_v38 = vmul.f32 %v415_v20, %v1756_v43  ;;  %v264_v43 = vld [vmem:[%s2753_s5 + $0x8] sm:$0xff]  ;;  %v1357_v20 = vld [vmem:[%s1866_s20 + $0xb0] sm:$0xff] }
  0x3f   : > { %v414_v27 = vmul.f32 %v1447_v24, %v406_v22 }
  0x40   : > { %v439_v41 = vsub.f32 %v423_v7, %v431_v38  ;;  %v1361_v7 = vld [vmem:[%s1866_s20 + $0xd0] sm:$0xff] }
  0x41   : > { %488 = vperm.xlu0 %1424, %v414_v27   ;;  %v430_v40 = vmul.f32 %v414_v27, %v358_v57 }
  0x42   : > { %519 = vperm.xlu1 %1425, %v433_v25  }
  0x43   : > { %v438_v42 = vsub.f32 %v422_v29, %v430_v40 }
  0x45   : > { %514 = vperm.xlu0 %1424, %v432_v31   ;;  %v444_v31 = vld [vmem:[%s1866_s20 + $0x20] sm:$0xff] }
  0x46   : > { %529 = vperm.xlu1 %1425, %v435_v34   ;;  %v1355_v34 = vld [vmem:[%s1866_s20 + $0xa0] sm:$0xff] }
  0x49   : > { %524 = vperm.xlu0 %1424, %v434_v35  }
  0x4a   : > { %539 = vperm.xlu1 %1425, %v437_v21   ;;  %v450_v21 = vld [vmem:[%s1866_s20 + $0x50] sm:$0xff] }
  0x4d   : > { %534 = vperm.xlu0 %1424, %v436_v39   ;;  %v1362_v39 = vld [vmem:[%s1866_s20 + $0xd8] sm:$0xff] }
  0x4e   : > { %549 = vperm.xlu1 %1425, %v439_v41  }
  0x51   : > { %544 = vperm.xlu0 %1424, %v438_v42  }
  0x52   : > { %721 = vperm.xlu1 %1425, %v264_v43  }
  0x55   : > { %716 = vperm.xlu0 %1424, %v263_v44  }
  0x56   : > { %731 = vperm.xlu1 %1425, %v266_v45  }
  0x59   : > { %726 = vperm.xlu0 %1424, %v265_v46  }
  0x5a   : > { %741 = vperm.xlu1 %1425, %v1830_v48  }
  0x5d   : > { %736 = vperm.xlu0 %1424, %v267_v49  }
  0x5e   : > { %751 = vperm.xlu1 %1425, %v1839_v50  }
  0x61   : > { %746 = vperm.xlu0 %1424, %v1845_v51  }
  0x62   : > { %1427 = vset.pattern.permute.xlu1 %v1513_v52 }
  0x63   : > { %775 = vperm.xlu1 %1427, %v264_v43  }
  0x65   : > { %1426 = vset.pattern.permute.xlu0 %v1513_v52 }
  0x66   : > { %771 = vperm.xlu0 %1426, %v263_v44  }
  0x67   : > { %779 = vperm.xlu1 %1427, %v265_v46  }
  0x6a   : > { %783 = vperm.xlu0 %1426, %v266_v45  }
  0x6b   : > { %787 = vperm.xlu1 %1427, %v267_v49  }
  0x6e   : > { %791 = vperm.xlu0 %1426, %v1830_v48  }
  0x6f   : > { %795 = vperm.xlu1 %1427, %v1845_v51  }
  0x72   : > { %1428 = vset.pattern.permute.xlu0 %v2755_v53 }
  0x73   : > { %1429 = vset.pattern.permute.xlu1 %v2755_v53  ;;  %835 = vperm.xlu0 %1428, %v263_v44  }
  0x74   : > { %839 = vperm.xlu1 %1429, %v264_v43  }
  0x77   : > { %847 = vperm.xlu0 %1428, %v266_v45  }
  0x78   : > { %843 = vperm.xlu1 %1429, %v265_v46   ;;  %v448_v46 = vld [vmem:[%s1866_s20 + $0x40] sm:$0xff] }
  0x7c   : > { %851 = vperm.xlu1 %1429, %v267_v49  }
  0x80   : > { %1430 = vset.pattern.permute.xlu1 %v1513_v52 }
  0xae   : > { %v1853_v54 = vpop.permute.xlu1 %468 }
  0xaf   : > { %v1855_v55 = vpop.permute.xlu0 %458  ;;  %v500_v43 = vmul.f32 %v1853_v54, %v444_v31  ;;  %v968_v44 = vmul.f32 %v1355_v34, %v1853_v54  ;;  %v969_v45 = vmul.f32 %v1356_v32, %v1853_v54 }
  0xb0   : > { %v496_v25 = vmul.f32 %v1855_v55, %v440_v10  ;;  %v964_v60 = vmul.f32 %v1351_v12, %v1855_v55  ;;  %v965_v26 = vmul.f32 %v1352_v14, %v1855_v55 }
  0xb2   : > { %v1857_v56 = vpop.permute.xlu1 %473 }
  0xb3   : > { %v502_v30 = vmul.f32 %v1857_v56, %v446_v18  ;;  %v971_v33 = vmul.f32 %v1358_v19, %v1857_v56  ;;  %v970_v47 = vmul.f32 %v1357_v20, %v1857_v56  ;;  %v443_v20 = vld [vmem:[%s1866_s20 + $0x18] sm:$0xff] }
  0xb4   : > { %v1859_v57 = vpop.permute.xlu0 %463 }
  0xb5   : > { %v498_v9 = vmul.f32 %v1859_v57, %v442_v2  ;;  %v966_v11 = vmul.f32 %v1353_v3, %v1859_v57  ;;  %v967_v13 = vmul.f32 %v1354_v4, %v1859_v57 }
  0xb6   : > { %v1861_v58 = vpop.permute.xlu1 %483 }
  0xb7   : > { %v975_v2 = vmul.f32 %v1362_v39, %v1861_v58  ;;  %v441_v39 = vld [vmem:[%s1866_s20 + $0x8] sm:$0xff] }
  0xba   : > { %v1870_v62 = vpop.permute.xlu0 %478 }
  0xbb   : > { %v1873_v63 = vmul.f32 %v1359_v59, %v1870_v62  ;;  %v1876_v0 = vmul.f32 %v1360_v61, %v1870_v62  ;;  %v506_v59 = vmul.f32 %v1861_v58, %v450_v21  ;;  %v974_v61 = vmul.f32 %v1361_v7, %v1861_v58 }
  0xbc   : > { %v504_v18 = vmul.f32 %v1870_v62, %v448_v46  ;;  %v499_v7 = vmul.f32 %v1859_v57, %v443_v20  ;;  %v449_v20 = vld [vmem:[%s1866_s20 + $0x48] sm:$0xff] }
  0xbd   : > { %v1878_v1 = vpop.permute.xlu1 %493 }
  0xc0   : > { %v1885_v8 = vpop.permute.xlu0 %488 }
  0xc1   : > { %v1894_v15 = vmul.f32 %v1363_v5, %v1885_v8  ;;  %v1897_v16 = vmul.f32 %v1364_v6, %v1885_v8  ;;  %v1899_v17 = vpop.permute.xlu1 %519  ;;  %v1366_v5 = vld [vmem:[%s1866_s20 + $0xf8] sm:$0xff]  ;;  %v454_v6 = vld [vmem:[%s1866_s20 + $0x70] sm:$0xff] }
  0xc2   : > { %v554_v22 = vadd.f32 %v1899_v17, %v498_v9  ;;  %v1906_v23 = vadd.f32 %v966_v11, %v1899_v17  ;;  %v1909_v24 = vadd.f32 %v967_v13, %v1899_v17  ;;  %v1365_v11 = vld [vmem:[%s1866_s20 + $0xf0] sm:$0xff]  ;;  %v555_v46 = vadd.f32 %v1899_v17, %v499_v7 }
  0xc3   : > { %v978_v31 = vmul.f32 %v1365_v11, %v1878_v1 }
  0xc4   : > { %v1914_v27 = vpop.permute.xlu0 %514  ;;  %v1916_v28 = vmax.f32 %v554_v22, 0.0  ;;  %v452_v22 = vld [vmem:[%s1866_s20 + $0x60] sm:$0xff] }
  0xc5   : > { %v1924_v35 = vpop.permute.xlu1 %529  ;;  %v552_v36 = vadd.f32 %v1914_v27, %v496_v25  ;;  %v1929_v37 = vadd.f32 %v964_v60, %v1914_v27  ;;  %v1932_v38 = vadd.f32 %v965_v26, %v1914_v27  ;;  %v979_v60 = vmul.f32 %v1366_v5, %v1878_v1  ;;  %v445_v5 = vld [vmem:[%s1866_s20 + $0x28] sm:$0xff] }
  0xc6   : > { %586 = vrot.lane.b32.xlu1 %v1916_v28, %s1515_s26  ;;  %v558_v40 = vadd.f32 %v1924_v35, %v502_v30  ;;  %v1940_v41 = vadd.f32 %v971_v33, %v1924_v35  ;;  %v1943_v29 = vadd.f32 %v970_v47, %v1924_v35  ;;  %v510_v30 = vmul.f32 %v1878_v1, %v454_v6 }
  0xc7   : > { %v1945_v42 = vmax.f32 %v552_v36, 0.0 }
  0xc8   : > { %v1951_v49 = vpop.permute.xlu0 %524  ;;  %v1953_v52 = vmax.f32 %v558_v40, 0.0 }
  0xc9   : > { %584 = vrot.lane.b32.xlu0 %v1945_v42, %s1515_s26  ;;  %v1960_v3 = vpop.permute.xlu1 %539  ;;  %v556_v4 = vadd.f32 %v1951_v49, %v500_v43  ;;  %v1966_v9 = vadd.f32 %v968_v44, %v1951_v49  ;;  %v1969_v10 = vadd.f32 %v969_v45, %v1951_v49  ;;  %v508_v43 = vmul.f32 %v1885_v8, %v452_v22 }
  0xca   : > { %590 = vrot.lane.b32.xlu1 %v1953_v52, %s1515_s26  ;;  %v562_v12 = vadd.f32 %v1960_v3, %v506_v59  ;;  %v1976_v13 = vadd.f32 %v974_v61, %v1960_v3  ;;  %v1979_v14 = vadd.f32 %v975_v2, %v1960_v3  ;;  %v497_v61 = vmul.f32 %v1855_v55, %v441_v39 }
  0xcb   : > { %v1982_v19 = vmax.f32 %v556_v4, 0.0  ;;  %v2035_v55 = vmax.f32 %v555_v46, 0.0 }
  0xcc   : > { %v535_v25 = vpop.permute.xlu0 %534  ;;  %v1987_v26 = vmax.f32 %v562_v12, 0.0  ;;  %v553_v11 = vadd.f32 %v1914_v27, %v497_v61  ;;  %v451_v12 = vld [vmem:[%s1866_s20 + $0x58] sm:$0xff] }
  0xcd   : > { %588 = vrot.lane.b32.xlu0 %v1982_v19, %s1515_s26  ;;  %v550_v34 = vpop.permute.xlu1 %549  ;;  %v560_v32 = vadd.f32 %v535_v25, %v504_v18  ;;  %v1994_v33 = vadd.f32 %v1873_v63, %v535_v25  ;;  %v1997_v47 = vadd.f32 %v1876_v0, %v535_v25  ;;  %v447_v63 = vld [vmem:[%s1866_s20 + $0x38] sm:$0xff]  ;;  %v507_v27 = vmul.f32 %v1861_v58, %v451_v12 }
  0xce   : > { %v1999_v36 = vadd.f32 %v979_v60, %v550_v34  ;;  %594 = vrot.lane.b32.xlu1 %v1987_v26, %s1515_s26  ;;  %v566_v21 = vadd.f32 %v550_v34, %v510_v30  ;;  %v2005_v40 = vadd.f32 %v978_v31, %v550_v34  ;;  %v503_v17 = vmul.f32 %v1857_v56, %v447_v63  ;;  %v455_v30 = vld [vmem:[%s1866_s20 + $0x78] sm:$0xff] }
  0xcf   : > { %v2008_v44 = vmax.f32 %v560_v32, 0.0  ;;  %v501_v56 = vmul.f32 %v1853_v54, %v445_v5  ;;  %v2047_v22 = vmax.f32 %v553_v11, 0.0  ;;  %v563_v32 = vadd.f32 %v1960_v3, %v507_v27  ;;  %v453_v54 = vld [vmem:[%s1866_s20 + $0x68] sm:$0xff] }
  0xd0   : > { %v545_v0 = vpop.permute.xlu0 %544  ;;  %v2011_v45 = vmax.f32 %v566_v21, 0.0  ;;  %v505_v21 = vmul.f32 %v1870_v62, %v449_v20  ;;  %v511_v58 = vmul.f32 %v1878_v1, %v455_v30  ;;  %v1000_v20 = vmax.f32 %v1966_v9, 0.0 }
  0xd1   : > { %592 = vrot.lane.b32.xlu0 %v2008_v44, %s1515_s26  ;;  %v2016_v59 = vpop.permute.xlu1 %721  ;;  %v564_v57 = vadd.f32 %v545_v0, %v508_v43  ;;  %v2020_v2 = vadd.f32 %v1897_v16, %v545_v0  ;;  %v2023_v4 = vadd.f32 %v1894_v15, %v545_v0  ;;  %v559_v15 = vadd.f32 %v1924_v35, %v503_v17 }
  0xd2   : > { %598 = vrot.lane.b32.xlu1 %v2011_v45, %s1515_s26  ;;  %v557_v60 = vadd.f32 %v1951_v49, %v501_v56  ;;  %v561_v39 = vadd.f32 %v535_v25, %v505_v21  ;;  %v509_v43 = vmul.f32 %v1885_v8, %v453_v54  ;;  %v579_v3 = vmax.f32 %v563_v32, 0.0 }
  0xd3   : > { %v2029_v6 = vmax.f32 %v564_v57, 0.0  ;;  %v2053_v35 = vmax.f32 %v559_v15, 0.0  ;;  %v567_v62 = vadd.f32 %v550_v34, %v511_v58  ;;  %v998_v8 = vmax.f32 %v1906_v23, 0.0 }
  0xd4   : > { %v2033_v18 = vpop.permute.xlu0 %716  ;;  %v2065_v49 = vmax.f32 %v557_v60, 0.0  ;;  %v565_v57 = vadd.f32 %v545_v0, %v509_v43  ;;  %v577_v61 = vmax.f32 %v561_v39, 0.0  ;;  %v2082_v25 = vmax.f32 %v1909_v24, 0.0 }
  0xd5   : > { %596 = vrot.lane.b32.xlu0 %v2029_v6, %s1515_s26  ;;  %v2040_v16 = vpop.permute.xlu1 %731  ;;  %v2077_v1 = vmax.f32 %v567_v62, 0.0  ;;  %v996_v23 = vmax.f32 %v1929_v37, 0.0  ;;  %v997_v24 = vmax.f32 %v1932_v38, 0.0  ;;  %v1001_v27 = vmax.f32 %v1969_v10, 0.0 }
  0xd6   : > { %602 = vrot.lane.b32.xlu1 %v2035_v55, %s1515_s26  ;;  %v581_v5 = vmax.f32 %v565_v57, 0.0  ;;  %v1002_v54 = vmax.f32 %v1943_v29, 0.0 }
  0xd8   : > { %v2051_v31 = vpop.permute.xlu0 %726 }
  0xd9   : > { %600 = vrot.lane.b32.xlu0 %v2047_v22, %s1515_s26  ;;  %v2060_v7 = vpop.permute.xlu1 %741 }
  0xda   : > { %606 = vrot.lane.b32.xlu1 %v2053_v35, %s1515_s26 }
  0xdc   : > { %v2068_v63 = vpop.permute.xlu0 %736 }
  0xdd   : > { %604 = vrot.lane.b32.xlu0 %v2065_v49, %s1515_s26  ;;  %v2072_v46 = vpop.permute.xlu1 %751 }
  0xde   : > { %610 = vrot.lane.b32.xlu1 %v579_v3, %s1515_s26 }
  0xe0   : > { %v2075_v17 = vpop.permute.xlu0 %746 }
  0xe1   : > { %2772 = vst [vmem:[#allocation5_spill] sm:$0xff] %v2075_v17  ;;  %608 = vrot.lane.b32.xlu0 %v577_v61, %s1515_s26 }
  0xe2   : > { %v776_v34 = vpop.permute.xlu1 %775  ;;  %614 = vrot.lane.b32.xlu1 %v2077_v1, %s1515_s26 }
  0xe3   : > { %v2087_v11 = vmul.f32 %v776_v34, %v1916_v28  ;;  %v2090_v0 = vmul.f32 %v776_v34, %v2035_v55  ;;  %v2092_v12 = vmul.f32 %v998_v8, %v776_v34  ;;  %v2095_v15 = vmul.f32 %v2082_v25, %v776_v34 }
  0xe5   : > { %v772_v56 = vpop.permute.xlu0 %771  ;;  %612 = vrot.lane.b32.xlu0 %v581_v5, %s1515_s26 }
  0xe6   : > { %v2103_v60 = vmul.f32 %v772_v56, %v1945_v42  ;;  %v2106_v30 = vmul.f32 %v772_v56, %v2047_v22  ;;  %v780_v32 = vpop.permute.xlu1 %779  ;;  %651 = vrot.lane.b32.xlu1 %v1916_v28, %s1516_s28  ;;  %v2110_v37 = vmul.f32 %v996_v23, %v772_v56  ;;  %v2112_v38 = vmul.f32 %v997_v24, %v772_v56 }
  0xe7   : > { %v2115_v21 = vmul.f32 %v780_v32, %v1982_v19  ;;  %v2118_v9 = vmul.f32 %v780_v32, %v2065_v49  ;;  %v2120_v10 = vmul.f32 %v1000_v20, %v780_v32  ;;  %v2123_v58 = vmul.f32 %v1001_v27, %v780_v32 }
  0xe9   : > { %v2125_v39 = vpop.permute.xlu0 %783  ;;  %649 = vrot.lane.b32.xlu0 %v1945_v42, %s1516_s28 }
  0xea   : > { %v2131_v28 = vmul.f32 %v2125_v39, %v1953_v52  ;;  %v2135_v43 = vmul.f32 %v2125_v39, %v2053_v35  ;;  %v2137_v62 = vpop.permute.xlu1 %787  ;;  %655 = vrot.lane.b32.xlu1 %v1953_v52, %s1516_s28  ;;  %v2142_v29 = vmul.f32 %v1002_v54, %v2125_v39 }
  0xeb   : > { %2773 = vst [vmem:[#allocation6_spill] sm:$0xff] %v2137_v62  ;;  %v2146_v57 = vmul.f32 %v2137_v62, %v2008_v44  ;;  %v2149_v42 = vmul.f32 %v2137_v62, %v577_v61 }
  0xed   : > { %v2151_v34 = vpop.permute.xlu0 %791  ;;  %653 = vrot.lane.b32.xlu0 %v1982_v19, %s1516_s28  ;;  %v2203_v19 = vmax.f32 %v1940_v41, 0.0 }
  0xee   : > { %v2157_v56 = vmul.f32 %v2151_v34, %v1987_v26  ;;  %v2160_v52 = vmul.f32 %v2151_v34, %v579_v3  ;;  %v2162_v32 = vpop.permute.xlu1 %795  ;;  %659 = vrot.lane.b32.xlu1 %v1987_v26, %s1516_s28  ;;  %v2212_v26 = vmax.f32 %v1994_v33, 0.0  ;;  %v2228_v33 = vmax.f32 %v1976_v13, 0.0 }
  0xef   : > { %2774 = vst [vmem:[#allocation7_spill] sm:$0xff] %v2162_v32  ;;  %v2168_v53 = vmul.f32 %v2162_v32, %v2029_v6  ;;  %v2171_v62 = vmul.f32 %v2162_v32, %v581_v5  ;;  %v2245_v13 = vmax.f32 %v1979_v14, 0.0  ;;  %v2260_v14 = vmax.f32 %v2023_v4, 0.0 }
  0xf0   : > { %2775 = vst [vmem:[#allocation8_spill] sm:$0xff] %v2228_v33 }
  0xf1   : > { %657 = vrot.lane.b32.xlu0 %v2008_v44, %s1516_s28  ;;  %v2222_v44 = vmax.f32 %v1997_v47, 0.0  ;;  %v2776_v47 = vmov 2   ;;  %2777 = vst [vmem:[#allocation9_spill] sm:$0xff] %v2245_v13  ;;  %2779 = vst [vmem:[#allocation11_spill] sm:$0xff] %v2260_v14 }
  0xf2   : > { %663 = vrot.lane.b32.xlu1 %v2011_v45, %s1516_s28 }
  0xf3   : > { %v2219_v41 = vpop.permute.xlu1 %839 }
  0xf5   : > { %661 = vrot.lane.b32.xlu0 %v2029_v6, %s1516_s28 }
  0xf6   : > { %667 = vrot.lane.b32.xlu1 %v2035_v55, %s1516_s28 }
  0xf7   : > { %v2230_v6 = vpop.permute.xlu1 %843 }
  0xf9   : > { %665 = vrot.lane.b32.xlu0 %v2047_v22, %s1516_s28 }
  0xfa   : > { %671 = vrot.lane.b32.xlu1 %v2053_v35, %s1516_s28 }
  0xfb   : > { %v2242_v55 = vpop.permute.xlu1 %851 }
  0xfd   : > { %669 = vrot.lane.b32.xlu0 %v2065_v49, %s1516_s28  ;;  %v2253_v49 = vmax.f32 %v2020_v2, 0.0 }
  0xfe   : > { %675 = vrot.lane.b32.xlu1 %v579_v3, %s1516_s28 }
  0xff   : > { %2778 = vst [vmem:[#allocation10_spill] sm:$0xff] %v2253_v49 }
 0x101   : > { %673 = vrot.lane.b32.xlu0 %v577_v61, %s1516_s28  ;;  %v2267_v61 = vmax.f32 %v1999_v36, 0.0 }
 0x102   : > { %679 = vrot.lane.b32.xlu1 %v2077_v1, %s1516_s28 }
 0x103   : > { %2780 = vst [vmem:[#allocation12_spill] sm:$0xff] %v2267_v61 }
 0x105   : > { %677 = vrot.lane.b32.xlu0 %v581_v5, %s1516_s28  ;;  %v2277_v5 = vmax.f32 %v2005_v40, 0.0 }
 0x106   : > { %1014 = vrot.lane.b32.xlu1 %v998_v8, %s1515_s26 }
 0x107   : > { %2781 = vst [vmem:[#allocation13_spill] sm:$0xff] %v2277_v5 }
 0x109   : > { %1012 = vrot.lane.b32.xlu0 %v996_v23, %s1515_s26 }
 0x10a   : > { %1030 = vrot.lane.b32.xlu1 %v2082_v25, %s1515_s26 }
 0x10d   : > { %1028 = vrot.lane.b32.xlu0 %v997_v24, %s1515_s26 }
 0x10e   : > { %1016 = vrot.lane.b32.xlu1 %v1000_v20, %s1515_s26 }
 0x111   : > { %1032 = vrot.lane.b32.xlu0 %v1001_v27, %s1515_s26 }
 0x112   : > { %1076 = vrot.lane.b32.xlu1 %v996_v23, %s1516_s28 }
 0x115   : > { %1078 = vrot.lane.b32.xlu0 %v998_v8, %s1516_s28 }
 0x116   : > { %1092 = vrot.lane.b32.xlu1 %v997_v24, %s1516_s28 }
 0x119   : > { %1094 = vrot.lane.b32.xlu0 %v2082_v25, %s1516_s28 }
 0x11a   : > { %1034 = vrot.lane.b32.xlu1 %v2203_v19, %s1515_s26 }
 0x11d   : > { %1018 = vrot.lane.b32.xlu0 %v1002_v54, %s1515_s26 }
 0x11e   : > { %1096 = vrot.lane.b32.xlu1 %v1001_v27, %s1516_s28 }
 0x121   : > { %1080 = vrot.lane.b32.xlu0 %v1000_v20, %s1516_s28 }
 0x122   : > { %1020 = vrot.lane.b32.xlu1 %v2212_v26, %s1515_s26 }
 0x125   : > { %855 = vperm.xlu0 %1428, %v1830_v48   ;;  %v2236_v48 = vpop.permute.xlu0 %835 }
 0x126   : > { %1082 = vrot.lane.b32.xlu1 %v1002_v54, %s1516_s28 }
 0x129   : > { %1036 = vrot.lane.b32.xlu0 %v2222_v44, %s1515_s26  ;;  %v2249_v22 = vpop.permute.xlu0 %847 }
 0x12a   : > { %799 = vperm.xlu1 %1430, %v1839_v50  }
 0x12d   : > { %1098 = vrot.lane.b32.xlu0 %v2203_v19, %s1516_s28 }
 0x12e   : > { %1022 = vrot.lane.b32.xlu1 %v2228_v33, %s1515_s26 }
 0x12f   : > { %1431 = vset.pattern.permute.xlu1 %v2776_v47 }
 0x131   : > { %859 = vperm.xlu0 %1428, %v1845_v51  }
 0x132   : > { %1084 = vrot.lane.b32.xlu1 %v2212_v26, %s1516_s28 }
 0x135   : > { %1038 = vrot.lane.b32.xlu0 %v2245_v13, %s1515_s26 }
 0x136   : > { %863 = vperm.xlu1 %1431, %v1839_v50   ;;  %v2758_v50 = vlaneseq }
 0x138   : > { %v587_v35 = vpop.permute.xlu1 %586  ;;  %v2274_v4 = vand.u32 127, %v2758_v50 }
 0x139   : > { %1100 = vrot.lane.b32.xlu0 %v2222_v44, %s1516_s28 }
 0x13a   : > { %1040 = vrot.lane.b32.xlu1 %v2253_v49, %s1515_s26  ;;  %vm616_vm1 = vcmp.lt.s32.totalorder %v2274_v4, 1  ;;  %vm259_vm2 = vcmp.gt.s32.totalorder %v2274_v4, 0  ;;  %vm681_vm3 = vcmp.lt.s32.totalorder %v2274_v4, 127 }
 0x13b   : > { %v585_v51 = vpop.permute.xlu0 %584 }
 0x13c   : > { %v591_v3 = vpop.permute.xlu1 %590 }
 0x13d   : > { %1024 = vrot.lane.b32.xlu0 %v2260_v14, %s1515_s26 }
 0x13e   : > { %1102 = vrot.lane.b32.xlu1 %v2245_v13, %s1516_s28 }
 0x13f   : > { %v589_v2 = vpop.permute.xlu0 %588 }
 0x140   : > { %v595_v8 = vpop.permute.xlu1 %594 }
 0x141   : > { %1086 = vrot.lane.b32.xlu0 %v2228_v33, %s1516_s28 }
 0x142   : > { %1042 = vrot.lane.b32.xlu1 %v2267_v61, %s1515_s26 }
 0x143   : > { %v593_v25 = vpop.permute.xlu0 %592 }
 0x144   : > { %v599_v23 = vpop.permute.xlu1 %598 }
 0x145   : > { %1026 = vrot.lane.b32.xlu0 %v2277_v5, %s1515_s26 }
 0x146   : > { %1104 = vrot.lane.b32.xlu1 %v2253_v49, %s1516_s28 }
 0x147   : > { %v597_v36 = vpop.permute.xlu0 %596 }
 0x148   : > { %v603_v24 = vpop.permute.xlu1 %602 }
 0x149   : > { %1088 = vrot.lane.b32.xlu0 %v2260_v14, %s1516_s28  ;;  %v618_v40 = vsel %vm616_vm1, %v587_v35, %v603_v24  ;;  %v626_v20 = vsel %vm616_vm1, %v603_v24, %v587_v35 }
 0x14a   : > { %v635_v27 = vsel %vm259_vm2, %v626_v20, 0.0  ;;  %v757_v54 = vmul.f32 %v2016_v59, %v618_v40  ;;  %1106 = vrot.lane.b32.xlu1 %v2267_v61, %s1516_s28 }
 0x14b   : > { %v756_v47 = vmul.f32 %v2016_v59, %v635_v27  ;;  %v601_v50 = vpop.permute.xlu0 %600 }
 0x14c   : > { %v2298_v49 = vadd.f32 %v2090_v0, %v757_v54  ;;  %v617_v14 = vsel %vm616_vm1, %v585_v51, %v601_v50  ;;  %v625_v35 = vsel %vm616_vm1, %v601_v50, %v585_v51  ;;  %v607_v24 = vpop.permute.xlu1 %606 }
 0x14d   : > { %v2305_v20 = vadd.f32 %v2087_v11, %v756_v47  ;;  %v633_v40 = vsel %vm259_vm2, %v625_v35, 0.0  ;;  %v755_v61 = vmul.f32 %v2033_v18, %v617_v14  ;;  %1090 = vrot.lane.b32.xlu0 %v2277_v5, %s1516_s28  ;;  %v620_v0 = vsel %vm616_vm1, %v591_v3, %v607_v24 }
 0x14e   : > { %v754_v27 = vmul.f32 %v2033_v18, %v633_v40  ;;  %v628_v51 = vsel %vm616_vm1, %v607_v24, %v591_v3  ;;  %v761_v50 = vmul.f32 %v2040_v16, %v620_v0 }
 0x14f   : > { %v2319_v11 = vadd.f32 %v2106_v30, %v755_v61  ;;  %v639_v54 = vsel %vm259_vm2, %v628_v51, 0.0  ;;  %v605_v14 = vpop.permute.xlu0 %604 }
 0x150   : > { %v2324_v47 = vadd.f32 %v2103_v60, %v754_v27  ;;  %v760_v35 = vmul.f32 %v2040_v16, %v639_v54  ;;  %v2328_v5 = vadd.f32 %v2135_v43, %v761_v50  ;;  %v619_v3 = vsel %vm616_vm1, %v589_v2, %v605_v14  ;;  %v611_v24 = vpop.permute.xlu1 %610 }
 0x151   : > { %v627_v30 = vsel %vm616_vm1, %v605_v14, %v589_v2  ;;  %v759_v61 = vmul.f32 %v2051_v31, %v619_v3  ;;  %v622_v40 = vsel %vm616_vm1, %v595_v8, %v611_v24  ;;  %v630_v60 = vsel %vm616_vm1, %v611_v24, %v595_v8 }
 0x152   : > { %v2340_v0 = vadd.f32 %v2131_v28, %v760_v35  ;;  %v637_v43 = vsel %vm259_vm2, %v627_v30, 0.0  ;;  %v643_v27 = vsel %vm259_vm2, %v630_v60, 0.0  ;;  %v765_v51 = vmul.f32 %v2060_v7, %v622_v40 }
 0x153   : > { %v758_v2 = vmul.f32 %v2051_v31, %v637_v43  ;;  %v2349_v50 = vadd.f32 %v2118_v9, %v759_v61  ;;  %v764_v54 = vmul.f32 %v2060_v7, %v643_v27  ;;  %v609_v14 = vpop.permute.xlu0 %608 }
 0x154   : > { %v2353_v8 = vadd.f32 %v2160_v52, %v765_v51  ;;  %v621_v28 = vsel %vm616_vm1, %v593_v25, %v609_v14  ;;  %v629_v35 = vsel %vm616_vm1, %v609_v14, %v593_v25  ;;  %v615_v3 = vpop.permute.xlu1 %614 }
 0x155   : > { %v822_v24 = vadd.f32 %v2115_v21, %v758_v2  ;;  %v2361_v30 = vadd.f32 %v2157_v56, %v764_v54  ;;  %v641_v9 = vsel %vm259_vm2, %v629_v35, 0.0  ;;  %v763_v61 = vmul.f32 %v2068_v63, %v621_v28 }
 0x156   : > { %v762_v52 = vmul.f32 %v2068_v63, %v641_v9  ;;  %v2369_v40 = vsel %vm616_vm1, %v599_v23, %v615_v3  ;;  %v2373_v25 = vsel %vm616_vm1, %v615_v3, %v599_v23  ;;  %v2398_v9 = vadd.s32 128, %v2274_v4 }
 0x157   : > { %v2376_v21 = vadd.f32 %v2149_v42, %v763_v61  ;;  %v613_v56 = vpop.permute.xlu0 %612 }
 0x158   : > { %v2379_v60 = vadd.f32 %v2146_v57, %v762_v52  ;;  %v623_v43 = vsel %vm616_vm1, %v597_v36, %v613_v56  ;;  %v631_v27 = vsel %vm616_vm1, %v613_v56, %v597_v36  ;;  %v652_v51 = vpop.permute.xlu1 %651  ;;  %vm262_vm4 = vcmp.lt.s32.totalorder %v2398_v9, 255 }
 0x159   : > { %v645_v2 = vsel %vm259_vm2, %v631_v27, 0.0  ;;  %v767_v23 = vmul.f32 %v2075_v17, %v623_v43 }
 0x15a   : > { %v766_v54 = vmul.f32 %v2075_v17, %v645_v2 }
 0x15b   : > { %v2390_v42 = vadd.f32 %v2171_v62, %v767_v23  ;;  %v650_v14 = vpop.permute.xlu0 %649 }
 0x15c   : > { %v2393_v57 = vadd.f32 %v2168_v53, %v766_v54  ;;  %v656_v28 = vpop.permute.xlu1 %655 }
 0x15f   : > { %v654_v35 = vpop.permute.xlu0 %653 }
 0x160   : > { %v2395_v3 = vpop.permute.xlu1 %659 }
 0x163   : > { %v658_v36 = vpop.permute.xlu0 %657 }
 0x164   : > { %v2400_v61 = vpop.permute.xlu1 %663 }
 0x167   : > { %v2403_v52 = vpop.permute.xlu0 %661 }
 0x168   : > { %v668_v62 = vpop.permute.xlu1 %667 }
 0x169   : > { %v683_v53 = vsel %vm681_vm3, %v652_v51, %v668_v62  ;;  %v691_v56 = vsel %vm681_vm3, %v668_v62, %v652_v51 }
 0x16a   : > { %v701_v43 = vsel %vm262_vm4, %v691_v56, 0.0  ;;  %v868_v27 = vmul.f32 %v2219_v41, %v683_v53 }
 0x16b   : > { %v869_v2 = vmul.f32 %v2219_v41, %v701_v43  ;;  %v666_v23 = vpop.permute.xlu0 %665 }
 0x16c   : > { %v884_v54 = vadd.f32 %v868_v27, %v2305_v20  ;;  %v682_v32 = vsel %vm681_vm3, %v650_v14, %v666_v23  ;;  %v690_v17 = vsel %vm681_vm3, %v666_v23, %v650_v14  ;;  %v672_v13 = vpop.permute.xlu1 %671 }
 0x16d   : > { %v885_v33 = vadd.f32 %v869_v2, %v2298_v49  ;;  %v699_v51 = vsel %vm262_vm4, %v690_v17, 0.0  ;;  %v866_v62 = vmul.f32 %v2236_v48, %v682_v32  ;;  %v685_v53 = vsel %vm681_vm3, %v656_v28, %v672_v13 }
 0x16e   : > { %v867_v56 = vmul.f32 %v2236_v48, %v699_v51  ;;  %v693_v20 = vsel %vm681_vm3, %v672_v13, %v656_v28  ;;  %v872_v43 = vmul.f32 %v2249_v22, %v685_v53 }
 0x16f   : > { %v882_v14 = vadd.f32 %v866_v62, %v2324_v47  ;;  %v705_v49 = vsel %vm262_vm4, %v693_v20, 0.0  ;;  %v670_v27 = vpop.permute.xlu0 %669 }
 0x170   : > { %v883_v17 = vadd.f32 %v867_v56, %v2319_v11  ;;  %v873_v32 = vmul.f32 %v2249_v22, %v705_v49  ;;  %v888_v2 = vadd.f32 %v872_v43, %v2340_v0  ;;  %v684_v23 = vsel %vm681_vm3, %v654_v35, %v670_v27  ;;  %v2437_v51 = vpop.permute.xlu1 %675 }
 0x171   : > { %v898_v13 = vadd.f32 %v884_v54, %v882_v14  ;;  %v692_v28 = vsel %vm681_vm3, %v670_v27, %v654_v35  ;;  %v870_v47 = vmul.f32 %v2230_v6, %v684_v23 }
 0x172   : > { %v911_v62 = vadd.f32 %v885_v33, %v883_v17  ;;  %v889_v53 = vadd.f32 %v873_v32, %v2328_v5  ;;  %v703_v11 = vsel %vm262_vm4, %v692_v28, 0.0 }
 0x173   : > { %v871_v56 = vmul.f32 %v2230_v6, %v703_v11  ;;  %v886_v0 = vadd.f32 %v870_v47, %v822_v24  ;;  %v674_v20 = vpop.permute.xlu0 %673 }
 0x174   : > { %v686_v43 = vsel %vm681_vm3, %v658_v36, %v674_v20  ;;  %v694_v54 = vsel %vm681_vm3, %v674_v20, %v658_v36  ;;  %v2450_v14 = vpop.permute.xlu1 %679 }
 0x175   : > { %v887_v35 = vadd.f32 %v871_v56, %v2349_v50  ;;  %v899_v33 = vadd.f32 %v898_v13, %v886_v0  ;;  %v707_v5 = vsel %vm262_vm4, %v694_v54, 0.0  ;;  %v874_v49 = vmul.f32 %v2242_v55, %v686_v43 }
 0x176   : > { %v875_v27 = vmul.f32 %v2242_v55, %v707_v5 }
 0x177   : > { %v912_v24 = vadd.f32 %v911_v62, %v887_v35  ;;  %v890_v17 = vadd.f32 %v874_v49, %v2379_v60  ;;  %v900_v32 = vadd.f32 %v899_v33, %v888_v2  ;;  %v2458_v23 = vpop.permute.xlu0 %677 }
 0x178   : > { %v891_v36 = vadd.f32 %v875_v27, %v2376_v21  ;;  %v1015_v28 = vpop.permute.xlu1 %1014 }
 0x179   : > { %v913_v47 = vadd.f32 %v912_v24, %v889_v53  ;;  %v2461_v11 = vadd.f32 %v900_v32, %v890_v17 }
 0x17b   : > { %v2463_v50 = vadd.f32 %v913_v47, %v891_v36  ;;  %v1013_v13 = vpop.permute.xlu0 %1012 }
 0x17c   : > { %v1031_v56 = vpop.permute.xlu1 %1030 }
 0x17d   : > { %v1053_v60 = vsel %vm616_vm1, %v1031_v56, %v1015_v28  ;;  %v1045_v35 = vsel %vm616_vm1, %v1015_v28, %v1031_v56 }
 0x17e   : > { %v1062_v54 = vsel %vm259_vm2, %v1053_v60, 0.0  ;;  %v1143_v36 = vmul.f32 %v1045_v35, %v2016_v59 }
 0x17f   : > { %v1029_v0 = vpop.permute.xlu0 %1028  ;;  %v1142_v24 = vmul.f32 %v1062_v54, %v2016_v59 }
 0x180   : > { %v1017_v20 = vpop.permute.xlu1 %1016  ;;  %v1052_v62 = vsel %vm616_vm1, %v1029_v0, %v1013_v13  ;;  %v1044_v53 = vsel %vm616_vm1, %v1013_v13, %v1029_v0 }
 0x181   : > { %v1060_v21 = vsel %vm259_vm2, %v1052_v62, 0.0  ;;  %v1141_v49 = vmul.f32 %v1044_v53, %v2033_v18 }
 0x182   : > { %v1140_v33 = vmul.f32 %v1060_v21, %v2033_v18 }
 0x183   : > { %v1033_v2 = vpop.permute.xlu0 %1032  ;;  %v1173_v62 = vadd.f32 %v2112_v38, %v1141_v49 }
 0x184   : > { %v1077_v43 = vpop.permute.xlu1 %1076  ;;  %v1172_v13 = vadd.f32 %v2110_v37, %v1140_v33  ;;  %v1054_v18 = vsel %vm616_vm1, %v1033_v2, %v1017_v20 }
 0x185   : > { %v1064_v38 = vsel %vm259_vm2, %v1054_v18, 0.0 }
 0x187   : > { %v1079_v5 = vpop.permute.xlu0 %1078 }
 0x188   : > { %v1093_v27 = vpop.permute.xlu1 %1092 }
 0x189   : > { %v1108_v17 = vsel %vm681_vm3, %v1077_v43, %v1093_v27  ;;  %v1116_v32 = vsel %vm681_vm3, %v1093_v27, %v1077_v43  ;;  %v1174_v43 = vadd.f32 %v2092_v12, %v1142_v24  ;;  %v1144_v24 = vmul.f32 %v1064_v38, %v2051_v31 }
 0x18a   : > { %v1125_v47 = vsel %vm262_vm4, %v1116_v32, 0.0  ;;  %v1188_v28 = vmul.f32 %v1108_v17, %v2236_v48 }
 0x18b   : > { %v1189_v56 = vmul.f32 %v1125_v47, %v2236_v48  ;;  %v1095_v0 = vpop.permute.xlu0 %1094  ;;  %v1175_v48 = vadd.f32 %v2095_v15, %v1143_v36 }
 0x18c   : > { %v1109_v60 = vsel %vm681_vm3, %v1079_v5, %v1095_v0  ;;  %v1117_v59 = vsel %vm681_vm3, %v1095_v0, %v1079_v5  ;;  %v1035_v21 = vpop.permute.xlu1 %1034  ;;  %v1204_v53 = vadd.f32 %v1188_v28, %v1172_v13  ;;  %v1046_v5 = vsel %vm616_vm1, %v1017_v20, %v1033_v2 }
 0x18d   : > { %v1127_v37 = vsel %vm262_vm4, %v1117_v59, 0.0  ;;  %v1190_v54 = vmul.f32 %v1109_v60, %v2219_v41  ;;  %v1205_v35 = vadd.f32 %v1189_v56, %v1173_v62  ;;  %v1145_v47 = vmul.f32 %v1046_v5, %v2051_v31 }
 0x18e   : > { %v1191_v33 = vmul.f32 %v1127_v37, %v2219_v41  ;;  %v1176_v13 = vadd.f32 %v2120_v10, %v1144_v24  ;;  %v687_v10 = vsel %vm681_vm3, %v2395_v3, %v2437_v51 }
 0x18f   : > { %v1206_v49 = vadd.f32 %v1190_v54, %v1174_v43  ;;  %v1019_v27 = vpop.permute.xlu0 %1018  ;;  %v1177_v18 = vadd.f32 %v2123_v58, %v1145_v47  ;;  %v695_v43 = vsel %vm681_vm3, %v2437_v51, %v2395_v3 }
 0x190   : > { %v1207_v12 = vadd.f32 %v1191_v33, %v1175_v48  ;;  %v1097_v32 = vpop.permute.xlu1 %1096  ;;  %v709_v58 = vsel %vm262_vm4, %v695_v43, 0.0  ;;  %v1047_v51 = vsel %vm616_vm1, %v1019_v27, %v1035_v21 }
 0x191   : > { %v1220_v17 = vadd.f32 %v1206_v49, %v1204_v53 }
 0x192   : > { %v1233_v28 = vadd.f32 %v1207_v12, %v1205_v35 }
 0x193   : > { %v1081_v15 = vpop.permute.xlu0 %1080 }
 0x194   : > { %v1110_v36 = vsel %vm681_vm3, %v1081_v15, %v1097_v32  ;;  %v1118_v41 = vsel %vm681_vm3, %v1097_v32, %v1081_v15  ;;  %v1021_v59 = vpop.permute.xlu1 %1020 }
 0x195   : > { %v1129_v20 = vsel %vm262_vm4, %v1118_v41, 0.0  ;;  %v1192_v2 = vmul.f32 %v1110_v36, %v2230_v6  ;;  %v688_v36 = vsel %vm681_vm3, %v2403_v52, %v2458_v23 }
 0x196   : > { %v1193_v56 = vmul.f32 %v1129_v20, %v2230_v6  ;;  %v1055_v6 = vsel %vm616_vm1, %v1035_v21, %v1019_v27 }
 0x197   : > { %v1208_v31 = vadd.f32 %v1192_v2, %v1176_v13  ;;  %v1066_v38 = vsel %vm259_vm2, %v1055_v6, 0.0  ;;  %v689_v6 = vsel %vm681_vm3, %v2400_v61, %v2450_v14 }
 0x198   : > { %v1209_v0 = vadd.f32 %v1193_v56, %v1177_v18  ;;  %v1083_v37 = vpop.permute.xlu1 %1082  ;;  %v1146_v24 = vmul.f32 %v1066_v38, %v2040_v16 }
 0x199   : > { %v1221_v62 = vadd.f32 %v1220_v17, %v1208_v31  ;;  %v1147_v17 = vmul.f32 %v1047_v51, %v2040_v16 }
 0x19a   : > { %v1234_v60 = vadd.f32 %v1233_v28, %v1209_v0  ;;  %v1178_v27 = vadd.f32 %v2142_v29, %v1146_v24  ;;  %v647_v28 = vsel %vm259_vm2, %v2373_v25, 0.0  ;;  %v697_v29 = vsel %vm681_vm3, %v2450_v14, %v2400_v61 }
 0x19b   : > { %v768_v0 = vmul.f32 %v2072_v46, %v647_v28 }
 0x1a4   : > { %v2531_v53 = vpop.permute.xlu0 %855 }
 0x1a5   : > { %v876_v54 = vmul.f32 %v2531_v53, %v687_v10  ;;  %v877_v48 = vmul.f32 %v2531_v53, %v709_v58  ;;  %v769_v58 = vmul.f32 %v2072_v46, %v2369_v40 }
 0x1a7   : > { %v892_v35 = vadd.f32 %v876_v54, %v2361_v30  ;;  %v893_v3 = vadd.f32 %v877_v48, %v2353_v8  ;;  %v696_v8 = vsel %vm681_vm3, %v2458_v23, %v2403_v52  ;;  %v1163_v30 = vmul.f32 %v2203_v19, %v2125_v39 }
 0x1a8   : > { %v1037_v33 = vpop.permute.xlu0 %1036  ;;  %v711_v41 = vsel %vm262_vm4, %v696_v8, 0.0 }
 0x1a9   : > { %v902_v5 = vadd.f32 %v2461_v11, %v892_v35  ;;  %v915_v49 = vadd.f32 %v2463_v50, %v893_v3  ;;  %v2543_v12 = vpop.permute.xlu1 %799  ;;  %v1179_v15 = vadd.f32 %v1163_v30, %v1147_v17  ;;  %v1056_v39 = vsel %vm616_vm1, %v1037_v33, %v1021_v59  ;;  %v2782_v35 = vld [vmem:[#allocation6_spill] sm:$0xff] }
 0x1aa   : > { %v816_v20 = vmul.f32 %v2543_v12, %v2011_v45  ;;  %v1068_v31 = vsel %vm259_vm2, %v1056_v39, 0.0  ;;  %v817_v52 = vmul.f32 %v2543_v12, %v2077_v1  ;;  %v1048_v1 = vsel %vm616_vm1, %v1021_v59, %v1037_v33 }
 0x1ab   : > { %v1164_v3 = vmul.f32 %v2212_v26, %v2782_v35  ;;  %v1149_v59 = vmul.f32 %v1048_v1, %v2068_v63  ;;  %v1165_v51 = vmul.f32 %v2222_v44, %v2782_v35 }
 0x1ac   : > { %v1099_v32 = vpop.permute.xlu0 %1098  ;;  %v833_v40 = vadd.f32 %v817_v52, %v769_v58 }
 0x1ad   : > { %v1111_v11 = vsel %vm681_vm3, %v1083_v37, %v1099_v32  ;;  %v1119_v50 = vsel %vm681_vm3, %v1099_v32, %v1083_v37  ;;  %v1023_v21 = vpop.permute.xlu1 %1022  ;;  %v713_v37 = vsel %vm262_vm4, %v697_v29, 0.0 }
 0x1ae   : > { %v1131_v16 = vsel %vm262_vm4, %v1119_v50, 0.0  ;;  %v1194_v47 = vmul.f32 %v1111_v11, %v2249_v22  ;;  %v1181_v50 = vadd.f32 %v1165_v51, %v1149_v59  ;;  %v2786_v51 = vld [vmem:[#allocation5_spill] sm:$0xff] }
 0x1af   : > { %v1195_v19 = vmul.f32 %v1131_v16, %v2249_v22  ;;  %v1517_v16 = vmov 1966171168  }
 0x1b0   : > { %v1210_v25 = vadd.f32 %v1194_v47, %v1178_v27  ;;  %v2577_v13 = vpop.permute.xlu0 %859  ;;  %v928_v47 = vunpack.c.l.s4 %v1517_v16 }
 0x1b1   : > { %v1211_v22 = vadd.f32 %v1195_v19, %v1179_v15  ;;  %v878_v2 = vmul.f32 %v2577_v13, %v688_v36  ;;  %v879_v18 = vmul.f32 %v2577_v13, %v711_v41  ;;  %v1085_v56 = vpop.permute.xlu1 %1084 }
 0x1b2   : > { %v1222_v23 = vadd.f32 %v1221_v62, %v1210_v25 }
 0x1b3   : > { %v1235_v43 = vadd.f32 %v1234_v60, %v1211_v22  ;;  %v894_v10 = vadd.f32 %v878_v2, %v2393_v57  ;;  %v895_v45 = vadd.f32 %v879_v18, %v2390_v42  ;;  %v1148_v60 = vmul.f32 %v1068_v31, %v2068_v63  ;;  %v2784_v31 = vld [vmem:[#allocation9_spill] sm:$0xff] }
 0x1b4   : > { %v1039_v62 = vpop.permute.xlu0 %1038  ;;  %v832_v57 = vadd.f32 %v816_v20, %v768_v0 }
 0x1b5   : > { %v903_v54 = vadd.f32 %v902_v5, %v894_v10  ;;  %v916_v42 = vadd.f32 %v915_v49, %v895_v45  ;;  %v2601_v48 = vpop.permute.xlu1 %863  ;;  %v1057_v38 = vsel %vm616_vm1, %v1039_v62, %v1023_v21  ;;  %v1180_v24 = vadd.f32 %v1164_v3, %v1148_v60 }
 0x1b6   : > { %v880_v61 = vmul.f32 %v2601_v48, %v689_v6  ;;  %v881_v14 = vmul.f32 %v2601_v48, %v713_v37  ;;  %v1070_v17 = vsel %vm259_vm2, %v1057_v38, 0.0  ;;  %v1049_v28 = vsel %vm616_vm1, %v1023_v21, %v1039_v62 }
 0x1b7   : > { %v1150_v36 = vmul.f32 %v1070_v17, %v2060_v7  ;;  %v1167_v21 = vmul.f32 %v2784_v31, %v2151_v34  ;;  %v1151_v52 = vmul.f32 %v1049_v28, %v2060_v7  ;;  %v929_v6 = vunpack.c.0.s8 %v928_v47  ;;  %v2789_v28 = vld [vmem:[#allocation10_spill] sm:$0xff]  ;;  %v2792_v31 = vld [vmem:[#allocation13_spill] sm:$0xff] }
 0x1b8   : > { %v896_v33 = vadd.f32 %v880_v61, %v832_v57  ;;  %v897_v5 = vadd.f32 %v881_v14, %v833_v40  ;;  %v1101_v49 = vpop.permute.xlu0 %1100  ;;  %v2785_v37 = vlaneseq }
 0x1b9   : > { %v1112_v32 = vsel %vm681_vm3, %v1085_v56, %v1101_v49  ;;  %v1120_v8 = vsel %vm681_vm3, %v1101_v49, %v1085_v56  ;;  %v1041_v30 = vpop.permute.xlu1 %1040  ;;  %v1183_v40 = vadd.f32 %v1167_v21, %v1151_v52  ;;  %v1170_v21 = vmul.f32 %v2792_v31, %v2543_v12 }
 0x1ba   : > { %v904_v26 = vadd.f32 %v903_v54, %v896_v33  ;;  %v917_v11 = vadd.f32 %v916_v42, %v897_v5  ;;  %v1133_v63 = vsel %vm262_vm4, %v1120_v8, 0.0  ;;  %v1196_v44 = vmul.f32 %v1112_v32, %v2242_v55 }
 0x1bb   : > { %v1197_v27 = vmul.f32 %v1133_v63, %v2242_v55  ;;  %v2783_v55 = vld [vmem:[#allocation8_spill] sm:$0xff]  ;;  %v931_v1 = vshrl.u32 %v2785_v37, 7  ;;  %vm2674_vm5 = vcmp.lt.s32.totalorder %v2785_v37, 256 }
 0x1bc   : > { %v905_v15 = vrot.slane %v904_v26, 4  ;;  %v918_v39 = vrot.slane %v917_v11, 4  ;;  %v1212_v19 = vadd.f32 %v1196_v44, %v1180_v24  ;;  %v1025_v29 = vpop.permute.xlu0 %1024  ;;  %v1166_v56 = vmul.f32 %v2783_v55, %v2151_v34 }
 0x1bd   : > { %v1213_v41 = vadd.f32 %v1197_v27, %v1181_v50  ;;  %v1103_v25 = vpop.permute.xlu1 %1102  ;;  %v1058_v18 = vsel %vm616_vm1, %v1041_v30, %v1025_v29  ;;  %v1050_v35 = vsel %vm616_vm1, %v1025_v29, %v1041_v30 }
 0x1be   : > { %v906_v20 = vadd.f32 %v905_v15, %v904_v26  ;;  %v919_v22 = vadd.f32 %v918_v39, %v917_v11  ;;  %v1223_v2 = vadd.f32 %v1222_v23, %v1212_v19  ;;  %v1182_v62 = vadd.f32 %v1166_v56, %v1150_v36  ;;  %v2787_v26 = vld [vmem:[#allocation7_spill] sm:$0xff] }
 0x1bf   : > { %v1236_v0 = vadd.f32 %v1235_v43, %v1213_v41  ;;  %v1072_v23 = vsel %vm259_vm2, %v1058_v18, 0.0  ;;  %v2788_v11 = vld [vmem:[#allocation11_spill] sm:$0xff]  ;;  %v1153_v30 = vmul.f32 %v1050_v35, %v2786_v51  ;;  %v1169_v15 = vmul.f32 %v2789_v28, %v2787_v26 }
 0x1c0   : > { %v907_v10 = vrot.slane %v906_v20, 2  ;;  %v920_v45 = vrot.slane %v919_v22, 2  ;;  %v1087_v58 = vpop.permute.xlu0 %1086  ;;  %v1152_v33 = vmul.f32 %v1072_v23, %v2786_v51  ;;  %v1168_v63 = vmul.f32 %v2788_v11, %v2787_v26 }
 0x1c1   : > { %v1113_v60 = vsel %vm681_vm3, %v1087_v58, %v1103_v25  ;;  %v1121_v57 = vsel %vm681_vm3, %v1103_v25, %v1087_v58  ;;  %v1043_v34 = vpop.permute.xlu1 %1042 }
 0x1c2   : > { %v908_v7 = vadd.f32 %v907_v10, %v906_v20  ;;  %v921_v43 = vadd.f32 %v920_v45, %v919_v22  ;;  %v1135_v54 = vsel %vm262_vm4, %v1121_v57, 0.0  ;;  %v1198_v42 = vmul.f32 %v1113_v60, %v2531_v53  ;;  %v2793_v45 = vld [vmem:[#allocation12_spill] sm:$0xff] }
 0x1c3   : > { %v1199_v38 = vmul.f32 %v1135_v54, %v2531_v53  ;;  %v2649_v53 = vsub.s32 %v929_v6, %v931_v1  ;;  %v1184_v39 = vadd.f32 %v1168_v63, %v1152_v33  ;;  %v1171_v58 = vmul.f32 %v2793_v45, %v2543_v12 }
 0x1c4   : > { %v909_v61 = vrot.slane %v908_v7, 1  ;;  %v922_v14 = vrot.slane %v921_v43, 1  ;;  %v1214_v3 = vadd.f32 %v1198_v42, %v1182_v62  ;;  %v1027_v59 = vpop.permute.xlu0 %1026 }
 0x1c5   : > { %v1215_v5 = vadd.f32 %v1199_v38, %v1183_v40  ;;  %v1059_v49 = vsel %vm616_vm1, %v1043_v34, %v1027_v59  ;;  %v1105_v24 = vpop.permute.xlu1 %1104  ;;  %v1051_v16 = vsel %vm616_vm1, %v1027_v59, %v1043_v34 }
 0x1c6   : > { %v910_v17 = vadd.f32 %v909_v61, %v908_v7  ;;  %v923_v32 = vadd.f32 %v922_v14, %v921_v43  ;;  %v1224_v8 = vadd.f32 %v1223_v2, %v1214_v3  ;;  %v1074_v50 = vsel %vm259_vm2, %v1059_v49, 0.0 }
 0x1c7   : > { %v1237_v44 = vadd.f32 %v1236_v0, %v1215_v5  ;;  %v1154_v36 = vmul.f32 %v1074_v50, %v2072_v46  ;;  %v1185_v2 = vadd.f32 %v1169_v15, %v1153_v30  ;;  %v1155_v18 = vmul.f32 %v1051_v16, %v2072_v46 }
 0x1c8   : > { %v926_v27 = vcombine.low %v910_v17, %v923_v32  ;;  %v1089_v47 = vpop.permute.xlu0 %1088 }
 0x1c9   : > { %v1114_v19 = vsel %vm681_vm3, %v1089_v47, %v1105_v24  ;;  %v1122_v29 = vsel %vm681_vm3, %v1105_v24, %v1089_v47  ;;  %v1107_v20 = vpop.permute.xlu1 %1106  ;;  %v1186_v37 = vadd.f32 %v1170_v21, %v1154_v36  ;;  %v1187_v60 = vadd.f32 %v1171_v58, %v1155_v18 }
 0x1ca   : > { %v1137_v41 = vsel %vm262_vm4, %v1122_v29, 0.0  ;;  %v1200_v25 = vmul.f32 %v1114_v19, %v2577_v13  ;;  %v933_v22 = vrot.slane %v926_v27, %v2649_v53 }
 0x1cb   : > { %v1201_v55 = vmul.f32 %v1137_v41, %v2577_v13 }
 0x1cc   : > { %v1216_v52 = vadd.f32 %v1200_v25, %v1184_v39  ;;  %v1091_v0 = vpop.permute.xlu0 %1090  ;;  %v940_v10 = vrot.slane %v933_v22, %v2649_v53 }
 0x1cd   : > { %v1217_v6 = vadd.f32 %v1201_v55, %v1185_v2  ;;  %v1115_v46 = vsel %vm681_vm3, %v1091_v0, %v1107_v20  ;;  %v1123_v13 = vsel %vm681_vm3, %v1107_v20, %v1091_v0 }
 0x1ce   : > { %v1225_v1 = vadd.f32 %v1224_v8, %v1216_v52  ;;  %v1139_v62 = vsel %vm262_vm4, %v1123_v13, 0.0  ;;  %v1202_v23 = vmul.f32 %v1115_v46, %v2601_v48  ;;  %946 = vst.msk [vmem:[%s247_s10] sm:$0x3] %vm2674_vm5, %v940_v10 }
 0x1cf   : > { %v1238_v12 = vadd.f32 %v1237_v44, %v1217_v6  ;;  %v1203_v57 = vmul.f32 %v1139_v62, %v2601_v48 }
 0x1d0   : > { %v1218_v34 = vadd.f32 %v1202_v23, %v1186_v37 }
 0x1d1   : > { %v1219_v7 = vadd.f32 %v1203_v57, %v1187_v60 }
 0x1d2   : > { %v1226_v4 = vadd.f32 %v1225_v1, %v1218_v34 }
 0x1d3   : > { %v1239_v43 = vadd.f32 %v1238_v12, %v1219_v7 }
 0x1d4   : > { %v1227_v54 = vrot.slane %v1226_v4, 4 }
 0x1d5   : > { %v1240_v42 = vrot.slane %v1239_v43, 4 }
 0x1d6   : > { %v1228_v40 = vadd.f32 %v1227_v54, %v1226_v4 }
 0x1d7   : > { %v1241_v9 = vadd.f32 %v1240_v42, %v1239_v43 }
 0x1d8   : > { %v1229_v38 = vrot.slane %v1228_v40, 2 }
 0x1d9   : > { %v1242_v61 = vrot.slane %v1241_v9, 2 }
 0x1da   : > { %v1230_v14 = vadd.f32 %v1229_v38, %v1228_v40 }
 0x1db   : > { %v1243_v35 = vadd.f32 %v1242_v61, %v1241_v9 }
 0x1dc   : > { %v1231_v3 = vrot.slane %v1230_v14, 1 }
 0x1dd   : > { %v1244_v59 = vrot.slane %v1243_v35, 1 }
 0x1de   : > { %v1232_v51 = vadd.f32 %v1231_v3, %v1230_v14 }
 0x1df   : > { %v1245_v33 = vadd.f32 %v1244_v59, %v1243_v35 }
 0x1e1   : > { %v1248_v48 = vcombine.low %v1232_v51, %v1245_v33 }
 0x1e3   : > { %v1255_v5 = vrot.slane %v1248_v48, %v2649_v53 }
 0x1e5   : > { %v1262_v49 = vrot.slane %v1255_v5, %v2649_v53 }
 0x1e7   : > { %1367 = vst.msk [vmem:[%s247_s10 + $0x2] sm:$0x3] %vm2674_vm5, %v1262_v49 }
 0x1e8   : > { %1461 = shalt.err (!%p1458_p3)
}
 0x1e9   : > { %s1462_s20 = scalar_lea.hbm %s2698_s15, 64  ;;  %s1466_s29 = scalar_lea.hbm %s2754_s6, 128 }
 0x1ea   : > { %p1463_p4 = scmp.ne.s32.totalorder %s2698_s15, %s1462_s20  ;;  %p1467_p9 = scmp.lt.u32.totalorder %s2698_s15, %s2754_s6 }
 0x1eb   : > { %p1468_p10 = scmp.lt.u32.totalorder %s1466_s29, %s1462_s20  ;;  %p1470_p12 = scmp.lt.u32.totalorder %s1462_s20, %s2698_s15 }
 0x1ec   : > { %p1464_p7 = pnand %p1463_p4, %p1594_p5 }
 0x1ed   : > { %p1469_p11 = por %p1468_p10, %p1467_p9 }
 0x1ee   : > { %p1465_p8 = pneg %p1464_p7 }
 0x1ef   : > { %p1471_p13 = por %p1470_p12, %p1469_p11 }
 0x1f1   : > { %p1472_p0 = pnand %p1471_p13, %p1465_p8 }
 0x1f3   : > { %1475 = shalt.err (!%p1472_p0)
}
 0x1f4   : > { %s1519_s11 = smov 32   ;;  %s1520_s13 = smov 2  }
 0x1f5   : > { %1377 = dma.vmem_to_hbm [thread:$0]  (%p1594_p5), %s2700_s12, 64, %s2698_s15, %s2707_s25, %s1519_s11, %s1519_s11, %s1520_s13  }
 0x1f6 PF: > { %p1383_p1 = scmp.ge.s32.totalorder %s1510_s24, 2  ;;  %s1296_s14 = sand.u32 1, %s1498_s21  }
 0x1f7   : > { %s1297_s16 = scalar_lea.sflag [#allocation3], %s1296_s14 }
 0x1f8   : > { %p1380_p2 = pnand %p1383_p1, %p1598_p6 }
 0x1fa   : > { %1493 = dma.done.wait (!%p1380_p2), %s1297_s16, 64  }
 0x1fb   : > { %1495 = vsyncadd (!%p1380_p2), %s1297_s16, 4294967232  ;;  %p16_p3 = scmp.ge.s32.totalorder %s1581_s27, 4   ;;  %s2794_s21 = smov %s1502_s22 }
 0x1fc   : > { %s2795_s22 = smov %s1506_s23  ;;  %s2796_s23 = smov %s1592_s30 }
 0x1fd   : > { %s2797_s24 = smov %s1581_s27  ;;  %18 = sbr.rel (!%p16_p3) target bundleno = 3 (0x3), region = 81 }
 0x204   :  { %1302 = vsyncpa [#allocation3], 1 }
 0x205   :  { %1304 = vsyncpa [#allocation3 + $0x1], 1 }

</bundles_post_ra>
